<compile_context>
chip_gen: v5e
topology: v5e:2x2
jax: 0.10.0
libtpu: 0.0.40
codegen_flags: <defaults>
</compile_context>

<pallas_src>
import functools

import jax
import jax.numpy as jnp
import numpy as np
from jax import lax
from jax.experimental import pallas as pl
from jax.experimental.pallas import tpu as pltpu

EPS = 1e-5  # PyTorch BatchNorm default eps


def _round_up(x, m):
    return ((x + m - 1) // m) * m


# ---------------------------------------------------------------------------
# Pallas kernel: one batch tile, HID processed in lane-aligned chunks
# ---------------------------------------------------------------------------
def _conve_fused_kernel(x_ref, a_ref, w_ref, b2_ref, o_ref, *, chunk):
    # x_ref : VMEM (tb, KP)    f32   flattened concat(h, r) image + ones column
    # a_ref : VMEM (KP, HIDP)  f32   conv-as-matmul weight (bn0+bn1 fused, bias row)
    # w_ref : VMEM (HIDP, EP)  bf16  fc weight (reordered, bn2 fused, lane-padded)
    # b2_ref: VMEM (1, EP)     f32   fc bias (bn2 fused, lane-padded)
    # o_ref : VMEM (tb, EP)    f32
    x = x_ref[...]
    hidp = a_ref.shape[1]
    acc = jnp.zeros((x.shape[0], o_ref.shape[1]), jnp.float32)
    for c0 in range(0, hidp, chunk):          # static -> unrolled at trace time
        feat = jnp.dot(x, a_ref[:, c0:c0 + chunk],
                       preferred_element_type=jnp.float32)
        feat = jnp.maximum(feat, 0.0)         # conv bias already inside A
        acc = acc + jnp.dot(feat.astype(jnp.bfloat16), w_ref[c0:c0 + chunk, :],
                            preferred_element_type=jnp.float32)
    o_ref[...] = jnp.maximum(acc + b2_ref[...], 0.0)


# ---------------------------------------------------------------------------
# One-time (numpy) parameter fusion — hoisted out of the per-call path
# ---------------------------------------------------------------------------
def prepare_conve_params(p, E, img_h):
    p = {k: np.asarray(v, np.float32) for k, v in p.items()}
    img_w = E // img_h
    H, W = 2 * img_h, img_w
    OH, OW = H - 2, W - 2
    HW = H * W
    HID = 32 * OH * OW
    KP = _round_up(HW + 1, 128)       # +1: ones column carries the conv bias
    HIDP = _round_up(HID, 128)
    EP = _round_up(E, 128)

    # fold eval-mode BatchNorms (exact; conv is VALID => bn0 folds fully)
    s0 = (p["bn0_g"] / np.sqrt(p["bn0_rv"] + EPS))[0]
    t0 = p["bn0_b"][0] - p["bn0_rm"][0] * s0
    s1 = p["bn1_g"] / np.sqrt(p["bn1_rv"] + EPS)
    t1 = p["bn1_b"] - p["bn1_rm"] * s1
    s2 = p["bn2_g"] / np.sqrt(p["bn2_rv"] + EPS)
    t2 = p["bn2_b"] - p["bn2_rm"] * s2

    # conv_w: (32, 1, 3, 3) -> taps (9, 32), tap index t = dy*3 + dx
    w_taps = np.transpose(p["conv_w"][:, 0], (1, 2, 0)).reshape(9, 32)
    w_eff = w_taps * (s0 * s1)[None, :]                              # bn0+bn1 scale
    b_eff = s1 * (t0 * np.sum(w_taps, axis=0) + p["conv_b"]) + t1    # bn0 shift + bn1

    # dense conv matrix A: column index = (oh*OW + ow)*32 + c; row HW = bias row
    a = np.zeros((KP, HIDP), np.float32)
    for oh in range(OH):
        for ow in range(OW):
            col = (oh * OW + ow) * 32
            for dy in range(3):
                for dx in range(3):
                    a[(oh + dy) * W + (ow + dx), col:col + 32] = w_eff[dy * 3 + dx]
            a[HW, col:col + 32] = b_eff          # hit by x's ones column

    # fc weight: torch flatten order is (c, oh, ow); our feature order is (oh, ow, c)
    fc_w = p["fc_w"].reshape(E, 32, OH, OW)
    fc_w = np.transpose(fc_w, (2, 3, 1, 0)).reshape(HID, E) * s2[None, :]
    w_pad = np.zeros((HIDP, EP), np.float32)
    w_pad[:HID, :E] = fc_w
    b2 = np.zeros((1, EP), np.float32)
    b2[0, :E] = p["fc_b"] * s2 + t2

    return dict(
        a=jnp.asarray(a, jnp.float32),
        w=jnp.asarray(w_pad, jnp.bfloat16),
        b2=jnp.asarray(b2, jnp.float32),
        E=E, img_h=img_h, img_w=img_w, HW=HW, KP=KP, HIDP=HIDP, EP=EP,
    )


# ---------------------------------------------------------------------------
# Tiling: 1 grid step on single-TC chips, 2 parallel steps on v7x
# ---------------------------------------------------------------------------
def _preferred_grid_steps():
    try:
        kind = jax.devices()[0].device_kind.lower()
    except Exception:
        kind = ""
    return 2 if "v7" in kind else 1


def _choose_tiling(B):
    steps = _preferred_grid_steps()
    tb = _round_up(max(1, -(-B // steps)), 8)
    if tb > 512:                       # cap the VMEM tile; add more grid steps
        tb = 512
        steps = -(-B // tb)
        if _preferred_grid_steps() == 2 and steps % 2:
            steps += 1                 # keep both v7x TensorCores busy
    return tb, steps


# ---------------------------------------------------------------------------
# Forward wrapper: pack inputs + one gridded pallas_call
# ---------------------------------------------------------------------------
def conve_forward(h, r, fused, *, tb=None):
    B = h.shape[0]
    E, img_h, img_w = fused["E"], fused["img_h"], fused["img_w"]
    HW, KP, HIDP, EP = fused["HW"], fused["KP"], fused["HIDP"], fused["EP"]

    if tb is None:
        tb, steps = _choose_tiling(B)
    else:
        steps = -(-B // tb)
    Bp = steps * tb

    # (B, H*W) flattened concat image, ones column for the fused conv bias,
    # lane-pad the contraction dim to KP and pad batch to the tile grid.
    x = jnp.concatenate(
        [h.reshape(B, img_h, img_w), r.reshape(B, img_h, img_w)], axis=1
    ).reshape(B, HW).astype(jnp.float32)
    x = jnp.concatenate([x, jnp.ones((B, 1), jnp.float32)], axis=1)
    x = jnp.pad(x, ((0, Bp - B), (0, KP - HW - 1)))

    chunk = next(c for c in (512, 384, 256, 128) if HIDP % c == 0)

    flops = 2 * Bp * (KP * HIDP + HIDP * EP)
    bytes_accessed = (Bp * KP * 4 + KP * HIDP * 4 + HIDP * EP * 2
                      + EP * 4 + Bp * EP * 4)

    out = pl.pallas_call(
        functools.partial(_conve_fused_kernel, chunk=chunk),
        out_shape=jax.ShapeDtypeStruct((Bp, EP), jnp.float32),
        grid_spec=pltpu.PrefetchScalarGridSpec(
            num_scalar_prefetch=0,
            grid=(steps,),
            in_specs=[
                pl.BlockSpec((tb, KP), lambda i: (i, 0)),      # per-tile activations
                pl.BlockSpec((KP, HIDP), lambda i: (0, 0)),    # resident conv matrix
                pl.BlockSpec((HIDP, EP), lambda i: (0, 0)),    # resident fc weight
                pl.BlockSpec((1, EP), lambda i: (0, 0)),       # resident fc bias
            ],
            out_specs=pl.BlockSpec((tb, EP), lambda i: (i, 0)),
        ),
        compiler_params=pltpu.CompilerParams(
            dimension_semantics=("parallel",),     # shards batch tiles across TCs
            vmem_limit_bytes=32 * 1024 * 1024,     # safe on v7x's 64 MiB VMEM
        ),
        cost_estimate=pl.CostEstimate(
            flops=flops, transcendentals=0, bytes_accessed=bytes_accessed),
    )(x, fused["a"], fused["w"], fused["b2"])
    return out[:B, :E]


# ---------------------------------------------------------------------------
# Deterministic parameter init (same shapes as the torch module)
# ---------------------------------------------------------------------------
def init_params(key, E, img_h):
    img_w = E // img_h
    OH, OW = 2 * img_h - 2, img_w - 2
    HID = 32 * OH * OW
    ks = jax.random.split(key, 16)

    def n(k, shape, scale):
        return scale * jax.random.normal(k, shape, jnp.float32)

    return dict(
        conv_w=n(ks[0], (32, 1, 3, 3), 0.2),
        conv_b=n(ks[1], (32,), 0.05),
        fc_w=n(ks[2], (E, HID), 0.03),
        fc_b=n(ks[3], (E,), 0.05),
        bn0_g=1.0 + n(ks[4], (1,), 0.1),
        bn0_b=n(ks[5], (1,), 0.05),
        bn0_rm=n(ks[6], (1,), 0.1),
        bn0_rv=jax.random.uniform(ks[7], (1,), jnp.float32, 0.5, 1.5),
        bn1_g=1.0 + n(ks[8], (32,), 0.1),
        bn1_b=n(ks[9], (32,), 0.05),
        bn1_rm=n(ks[10], (32,), 0.1),
        bn1_rv=jax.random.uniform(ks[11], (32,), jnp.float32, 0.5, 1.5),
        bn2_g=1.0 + n(ks[12], (E,), 0.1),
        bn2_b=n(ks[13], (E,), 0.05),
        bn2_rm=n(ks[14], (E,), 0.1),
        bn2_rv=jax.random.uniform(ks[15], (E,), jnp.float32, 0.5, 1.5),
    )


# ---------------------------------------------------------------------------
# Pure-JAX reference (mirrors the torch forward in eval mode, full f32)
# ---------------------------------------------------------------------------
def reference_forward(h, r, p, img_h):
    B, E = h.shape
    img_w = E // img_h

    def bn(v, g, b, rm, rv, shp):
        return (v - rm.reshape(shp)) / jnp.sqrt(rv.reshape(shp) + EPS) * g.reshape(shp) + b.reshape(shp)

    x = jnp.concatenate(
        [h.reshape(B, 1, img_h, img_w), r.reshape(B, 1, img_h, img_w)], axis=2
    )  # NCHW
    x = bn(x, p["bn0_g"], p["bn0_b"], p["bn0_rm"], p["bn0_rv"], (1, 1, 1, 1))
    z = lax.conv_general_dilated(
        x, p["conv_w"], (1, 1), "VALID", dimension_numbers=("NCHW", "OIHW", "NCHW")
    ) + p["conv_b"].reshape(1, 32, 1, 1)
    z = bn(z, p["bn1_g"], p["bn1_b"], p["bn1_rm"], p["bn1_rv"], (1, 32, 1, 1))
    z = jnp.maximum(z, 0.0)
    z = z.reshape(B, -1)
    z = z @ p["fc_w"].T + p["fc_b"]
    z = bn(z, p["bn2_g"], p["bn2_b"], p["bn2_rm"], p["bn2_rv"], (1, E))
    return jnp.maximum(z, 0.0)


if __name__ == "__main__":
    E, IMG_H, B = 40, 10, 256        # img_w = 4, hidden_size = 18*2*32 = 1152
    key = jax.random.PRNGKey(0)
    kp, kh, kr = jax.random.split(key, 3)
    params = init_params(kp, E, IMG_H)
    h = jax.random.normal(kh, (B, E), jnp.float32)
    r = jax.random.normal(kr, (B, E), jnp.float32)

    # Weight fusion / expansion done exactly once, outside the jitted forward.
    fused = prepare_conve_params(params, E, IMG_H)
    fwd = jax.jit(lambda hh, rr: conve_forward(hh, rr, fused))
    out = jax.block_until_ready(fwd(h, r))

    ref = reference_forward(h, r, params, IMG_H)
    assert out.shape == (B, E)
    # fc weight / feat are bf16 (f32 accumulation); first matmul is full f32.
    np.testing.assert_allclose(np.asarray(out), np.asarray(ref), rtol=3e-2, atol=6e-2)
    print("KERNEL_OK")
</pallas_src>

<mosaic_0001>
module attributes {stable_mosaic.version = 11 : i64} {
  func.func @_conve_fused_kernel(%arg0: i32, %arg1: memref<256x128xf32, #tpu.memory_space<vmem>>, %arg2: memref<128x1152xf32, #tpu.memory_space<vmem>>, %arg3: memref<1152x128xbf16, #tpu.memory_space<vmem>>, %arg4: memref<1x128xf32, #tpu.memory_space<vmem>>, %arg5: memref<256x128xf32, #tpu.memory_space<vmem>>) attributes {dimension_semantics = [#tpu.dimension_semantics<parallel>], iteration_bounds = array<i64: 1>, scalar_prefetch = 0 : i64, scratch_operands = 0 : i64, tpu.core_type = #tpu.core_type<tc>, window_params = [{transform_indices = @transform_0, window_bounds = array<i64: 256, 128>}, {pipeline_mode = #tpu.pipeline_mode<synchronous>, transform_indices = @transform_1, window_bounds = array<i64: 128, 1152>}, {pipeline_mode = #tpu.pipeline_mode<synchronous>, transform_indices = @transform_2, window_bounds = array<i64: 1152, 128>}, {pipeline_mode = #tpu.pipeline_mode<synchronous>, transform_indices = @transform_3, window_bounds = array<i64: 1, 128>}, {transform_indices = @transform_4, window_bounds = array<i64: 256, 128>}]} {
    %c0 = arith.constant 0 : index
    %c0_0 = arith.constant 0 : index
    %0 = vector.load %arg1[%c0, %c0_0] : memref<256x128xf32, #tpu.memory_space<vmem>>, vector<256x128xf32>
    %cst = arith.constant 0.000000e+00 : f32
    %1 = vector.broadcast %cst : f32 to vector<256x128xf32>
    %c0_1 = arith.constant 0 : index
    %c0_2 = arith.constant 0 : index
    %2 = vector.load %arg2[%c0_1, %c0_2] : memref<128x1152xf32, #tpu.memory_space<vmem>>, vector<128x384xf32>
    %cst_3 = arith.constant dense<0.000000e+00> : vector<256x384xf32>
    %3 = tpu.matmul %0, %2, %cst_3 {dimension_numbers = #tpu.dot_dimension_numbers<[1], [0], [0], [1], [0, 0, 1, 1], [], []>} : vector<256x128xf32>, vector<128x384xf32>, vector<256x384xf32> -> vector<256x384xf32>
    %cst_4 = arith.constant 0.000000e+00 : f32
    %4 = vector.broadcast %cst_4 : f32 to vector<256x384xf32>
    %5 = arith.maximumf %3, %4 : vector<256x384xf32>
    %6 = arith.truncf %5 : vector<256x384xf32> to vector<256x384xbf16>
    %c0_5 = arith.constant 0 : index
    %c0_6 = arith.constant 0 : index
    %7 = vector.load %arg3[%c0_5, %c0_6] : memref<1152x128xbf16, #tpu.memory_space<vmem>>, vector<384x128xbf16>
    %cst_7 = arith.constant dense<0.000000e+00> : vector<256x128xf32>
    %8 = tpu.matmul %6, %7, %cst_7 {dimension_numbers = #tpu.dot_dimension_numbers<[1], [0], [0], [1], [0, 0, 1, 1], [], []>} : vector<256x384xbf16>, vector<384x128xbf16>, vector<256x128xf32> -> vector<256x128xf32>
    %9 = arith.addf %1, %8 : vector<256x128xf32>
    %c0_8 = arith.constant 0 : index
    %c384 = arith.constant 384 : index
    %10 = vector.load %arg2[%c0_8, %c384] : memref<128x1152xf32, #tpu.memory_space<vmem>>, vector<128x384xf32>
    %cst_9 = arith.constant dense<0.000000e+00> : vector<256x384xf32>
    %11 = tpu.matmul %0, %10, %cst_9 {dimension_numbers = #tpu.dot_dimension_numbers<[1], [0], [0], [1], [0, 0, 1, 1], [], []>} : vector<256x128xf32>, vector<128x384xf32>, vector<256x384xf32> -> vector<256x384xf32>
    %cst_10 = arith.constant 0.000000e+00 : f32
    %12 = vector.broadcast %cst_10 : f32 to vector<256x384xf32>
    %13 = arith.maximumf %11, %12 : vector<256x384xf32>
    %14 = arith.truncf %13 : vector<256x384xf32> to vector<256x384xbf16>
    %c384_11 = arith.constant 384 : index
    %c0_12 = arith.constant 0 : index
    %15 = vector.load %arg3[%c384_11, %c0_12] : memref<1152x128xbf16, #tpu.memory_space<vmem>>, vector<384x128xbf16>
    %cst_13 = arith.constant dense<0.000000e+00> : vector<256x128xf32>
    %16 = tpu.matmul %14, %15, %cst_13 {dimension_numbers = #tpu.dot_dimension_numbers<[1], [0], [0], [1], [0, 0, 1, 1], [], []>} : vector<256x384xbf16>, vector<384x128xbf16>, vector<256x128xf32> -> vector<256x128xf32>
    %17 = arith.addf %9, %16 : vector<256x128xf32>
    %c0_14 = arith.constant 0 : index
    %c768 = arith.constant 768 : index
    %18 = vector.load %arg2[%c0_14, %c768] : memref<128x1152xf32, #tpu.memory_space<vmem>>, vector<128x384xf32>
    %cst_15 = arith.constant dense<0.000000e+00> : vector<256x384xf32>
    %19 = tpu.matmul %0, %18, %cst_15 {dimension_numbers = #tpu.dot_dimension_numbers<[1], [0], [0], [1], [0, 0, 1, 1], [], []>} : vector<256x128xf32>, vector<128x384xf32>, vector<256x384xf32> -> vector<256x384xf32>
    %cst_16 = arith.constant 0.000000e+00 : f32
    %20 = vector.broadcast %cst_16 : f32 to vector<256x384xf32>
    %21 = arith.maximumf %19, %20 : vector<256x384xf32>
    %22 = arith.truncf %21 : vector<256x384xf32> to vector<256x384xbf16>
    %c768_17 = arith.constant 768 : index
    %c0_18 = arith.constant 0 : index
    %23 = vector.load %arg3[%c768_17, %c0_18] : memref<1152x128xbf16, #tpu.memory_space<vmem>>, vector<384x128xbf16>
    %cst_19 = arith.constant dense<0.000000e+00> : vector<256x128xf32>
    %24 = tpu.matmul %22, %23, %cst_19 {dimension_numbers = #tpu.dot_dimension_numbers<[1], [0], [0], [1], [0, 0, 1, 1], [], []>} : vector<256x384xbf16>, vector<384x128xbf16>, vector<256x128xf32> -> vector<256x128xf32>
    %25 = arith.addf %17, %24 : vector<256x128xf32>
    %c0_20 = arith.constant 0 : index
    %c0_21 = arith.constant 0 : index
    %26 = vector.load %arg4[%c0_20, %c0_21] : memref<1x128xf32, #tpu.memory_space<vmem>>, vector<1x128xf32>
    %27 = vector.broadcast %26 : vector<1x128xf32> to vector<256x128xf32>
    %28 = arith.addf %25, %27 : vector<256x128xf32>
    %cst_22 = arith.constant 0.000000e+00 : f32
    %29 = vector.broadcast %cst_22 : f32 to vector<256x128xf32>
    %30 = arith.maximumf %28, %29 : vector<256x128xf32>
    %c0_23 = arith.constant 0 : index
    %c0_24 = arith.constant 0 : index
    %31 = vector.load %arg5[%c0_23, %c0_24] : memref<256x128xf32, #tpu.memory_space<vmem>>, vector<256x128xf32>
    tpu.vector_store %arg5[%c0_23, %c0_24], %30 {strides = array<i32>} : memref<256x128xf32, #tpu.memory_space<vmem>>, vector<256x128xf32>,
    return
  }
  func.func @transform_0(%arg0: i32) -> (i32, i32) {
    %c0_i32 = arith.constant 0 : i32
    %c0_i32_0 = arith.constant 0 : i32
    return %arg0, %c0_i32 : i32, i32
  }
  func.func @transform_1(%arg0: i32) -> (i32, i32) {
    %c0_i32 = arith.constant 0 : i32
    %c0_i32_0 = arith.constant 0 : i32
    %c0_i32_1 = arith.constant 0 : i32
    return %c0_i32, %c0_i32_0 : i32, i32
  }
  func.func @transform_2(%arg0: i32) -> (i32, i32) {
    %c0_i32 = arith.constant 0 : i32
    %c0_i32_0 = arith.constant 0 : i32
    %c0_i32_1 = arith.constant 0 : i32
    return %c0_i32, %c0_i32_0 : i32, i32
  }
  func.func @transform_3(%arg0: i32) -> (i32, i32) {
    %c0_i32 = arith.constant 0 : i32
    %c0_i32_0 = arith.constant 0 : i32
    %c0_i32_1 = arith.constant 0 : i32
    return %c0_i32, %c0_i32_0 : i32, i32
  }
  func.func @transform_4(%arg0: i32) -> (i32, i32) {
    %c0_i32 = arith.constant 0 : i32
    %c0_i32_0 = arith.constant 0 : i32
    return %arg0, %c0_i32 : i32, i32
  }
}

</mosaic_0001>

<bundles_post_ra>
// kernel: _lambda_.1
= control target key start
LH: loop header
LB: loop body
LE: loop exit
PB: predicated region body
PF: predicated region fallthrough
CT: control target
= control target key end

     0   :  { %s5873_s1 = inlined_call_operand.vmem [shape: f32[128,1152], index: 1, kind: input, shape index: {}]   ;;  %s5874_s0 = inlined_call_operand.vmem [shape: f32[256,128], index: 0, kind: input, shape index: {}]   ;;  %s5875_s2 = inlined_call_operand.vmem [shape: bf16[1152,128], index: 2, kind: input, shape index: {}]   ;;  %s5876_s3 = inlined_call_operand.vmem [shape: f32[1,128], index: 3, kind: input, shape index: {}]   ;;  %s5877_s4 = inlined_call_operand.vmem [shape: f32[256,128], index: 4, kind: output, shape index: {}]  }
   0x1   :  { %v94_v0 = vld [vmem:[%s5873_s1 + $0x438] sm:$0xff]  ;;  %v95_v1 = vld [vmem:[%s5873_s1 + $0x440] sm:$0xff]  ;;  %v91_v2 = vld [vmem:[%s5873_s1 + $0x3f0] sm:$0xff] }
   0x2   :  { %3515 = vmatpush.msra.mxu2 %v94_v0  ;;  %210 = vmatpush.msra.mxu1 %v95_v1  ;;  %v92_v3 = vld [vmem:[%s5873_s1 + $0x3f8] sm:$0xff]  ;;  %v88_v4 = vld [vmem:[%s5873_s1 + $0x3a8] sm:$0xff]  ;;  %v89_v5 = vld [vmem:[%s5873_s1 + $0x3b0] sm:$0xff] }
   0x3   :  { %3531 = vmatpush.msra.mxu3 %v95_v1  ;;  %97 = vmatpush.msra.mxu0 %v94_v0  ;;  %v85_v6 = vld [vmem:[%s5873_s1 + $0x360] sm:$0xff]  ;;  %v86_v7 = vld [vmem:[%s5873_s1 + $0x368] sm:$0xff]  ;;  %v82_v8 = vld [vmem:[%s5873_s1 + $0x318] sm:$0xff] }
   0x4   :  { %3516 = vmatpush.msra.mxu2 %v91_v2  ;;  %211 = vmatpush.msra.mxu1 %v92_v3  ;;  %v83_v9 = vld [vmem:[%s5873_s1 + $0x320] sm:$0xff]  ;;  %v79_v10 = vld [vmem:[%s5873_s1 + $0x2d0] sm:$0xff]  ;;  %v80_v11 = vld [vmem:[%s5873_s1 + $0x2d8] sm:$0xff] }
   0x5   :  { %3532 = vmatpush.msra.mxu3 %v92_v3  ;;  %98 = vmatpush.msra.mxu0 %v91_v2  ;;  %v76_v12 = vld [vmem:[%s5873_s1 + $0x288] sm:$0xff]  ;;  %v77_v13 = vld [vmem:[%s5873_s1 + $0x290] sm:$0xff]  ;;  %v73_v14 = vld [vmem:[%s5873_s1 + $0x240] sm:$0xff] }
   0x6   :  { %3517 = vmatpush.msra.mxu2 %v88_v4  ;;  %212 = vmatpush.msra.mxu1 %v89_v5  ;;  %v74_v15 = vld [vmem:[%s5873_s1 + $0x248] sm:$0xff]  ;;  %v70_v16 = vld [vmem:[%s5873_s1 + $0x1f8] sm:$0xff]  ;;  %v71_v17 = vld [vmem:[%s5873_s1 + $0x200] sm:$0xff] }
   0x7   :  { %3533 = vmatpush.msra.mxu3 %v89_v5  ;;  %99 = vmatpush.msra.mxu0 %v88_v4  ;;  %v67_v18 = vld [vmem:[%s5873_s1 + $0x1b0] sm:$0xff]  ;;  %v68_v19 = vld [vmem:[%s5873_s1 + $0x1b8] sm:$0xff]  ;;  %v64_v20 = vld [vmem:[%s5873_s1 + $0x168] sm:$0xff] }
   0x8   :  { %3518 = vmatpush.msra.mxu2 %v85_v6  ;;  %213 = vmatpush.msra.mxu1 %v86_v7  ;;  %v65_v21 = vld [vmem:[%s5873_s1 + $0x170] sm:$0xff]  ;;  %v61_v22 = vld [vmem:[%s5873_s1 + $0x120] sm:$0xff]  ;;  %v62_v23 = vld [vmem:[%s5873_s1 + $0x128] sm:$0xff] }
   0x9   :  { %3534 = vmatpush.msra.mxu3 %v86_v7  ;;  %100 = vmatpush.msra.mxu0 %v85_v6  ;;  %v58_v24 = vld [vmem:[%s5873_s1 + $0xd8] sm:$0xff]  ;;  %v59_v25 = vld [vmem:[%s5873_s1 + $0xe0] sm:$0xff]  ;;  %v55_v26 = vld [vmem:[%s5873_s1 + $0x90] sm:$0xff] }
   0xa   :  { %3519 = vmatpush.msra.mxu2 %v82_v8  ;;  %214 = vmatpush.msra.mxu1 %v83_v9  ;;  %v56_v27 = vld [vmem:[%s5873_s1 + $0x98] sm:$0xff]  ;;  %v52_v28 = vld [vmem:[%s5873_s1 + $0x48] sm:$0xff]  ;;  %v53_v29 = vld [vmem:[%s5873_s1 + $0x50] sm:$0xff] }
   0xb   :  { %3535 = vmatpush.msra.mxu3 %v83_v9  ;;  %101 = vmatpush.msra.mxu0 %v82_v8  ;;  %v49_v30 = vld [vmem:[%s5873_s1] sm:$0xff]  ;;  %v50_v31 = vld [vmem:[%s5873_s1 + $0x8] sm:$0xff]  ;;  %v90_v36 = vld [vmem:[%s5873_s1 + $0x3b8] sm:$0xff] }
   0xc   :  { %3520 = vmatpush.msra.mxu2 %v79_v10  ;;  %215 = vmatpush.msra.mxu1 %v80_v11  ;;  %v3704_v32 = vld [vmem:[%s5874_s0 + $0x80] sm:$0xff]  ;;  %v96_v34 = vld [vmem:[%s5873_s1 + $0x448] sm:$0xff]  ;;  %v87_v39 = vld [vmem:[%s5873_s1 + $0x370] sm:$0xff] }
   0xd   :  { %3536 = vmatpush.msra.mxu3 %v80_v11  ;;  %102 = vmatpush.msra.mxu0 %v79_v10  ;;  %v3709_v33 = vld [vmem:[%s5874_s0] sm:$0xff]  ;;  %v3727_v37 = vld [vmem:[%s5874_s0 + $0x88] sm:$0xff]  ;;  %v3750_v42 = vld [vmem:[%s5874_s0 + $0x90] sm:$0xff] }
   0xe   :  { %3521 = vmatpush.msra.mxu2 %v76_v12  ;;  %216 = vmatpush.msra.mxu1 %v77_v13  ;;  %v93_v35 = vld [vmem:[%s5873_s1 + $0x400] sm:$0xff]  ;;  %v3732_v38 = vld [vmem:[%s5874_s0 + $0x8] sm:$0xff]  ;;  %v3755_v43 = vld [vmem:[%s5874_s0 + $0x10] sm:$0xff] }
   0xf   :  { %3537 = vmatpush.msra.mxu3 %v77_v13  ;;  %103 = vmatpush.msra.mxu0 %v76_v12  ;;  %v84_v40 = vld [vmem:[%s5873_s1 + $0x328] sm:$0xff]  ;;  %v81_v41 = vld [vmem:[%s5873_s1 + $0x2e0] sm:$0xff]  ;;  %v78_v44 = vld [vmem:[%s5873_s1 + $0x298] sm:$0xff] }
  0x10   :  { %3522 = vmatpush.msra.mxu2 %v73_v14  ;;  %217 = vmatpush.msra.mxu1 %v74_v15  ;;  %v3767_v45 = vld [vmem:[%s5874_s0 + $0x98] sm:$0xff]  ;;  %v75_v47 = vld [vmem:[%s5873_s1 + $0x250] sm:$0xff]  ;;  %v3784_v48 = vld [vmem:[%s5874_s0 + $0xa0] sm:$0xff] }
  0x11   :  { %3538 = vmatpush.msra.mxu3 %v74_v15  ;;  %104 = vmatpush.msra.mxu0 %v73_v14  ;;  %v3772_v46 = vld [vmem:[%s5874_s0 + $0x18] sm:$0xff]  ;;  %v3789_v49 = vld [vmem:[%s5874_s0 + $0x20] sm:$0xff]  ;;  %v72_v50 = vld [vmem:[%s5873_s1 + $0x208] sm:$0xff] }
  0x12   :  { %3523 = vmatpush.msra.mxu2 %v70_v16  ;;  %218 = vmatpush.msra.mxu1 %v71_v17  ;;  %v3801_v51 = vld [vmem:[%s5874_s0 + $0xa8] sm:$0xff]  ;;  %v69_v53 = vld [vmem:[%s5873_s1 + $0x1c0] sm:$0xff]  ;;  %v3818_v54 = vld [vmem:[%s5874_s0 + $0xb0] sm:$0xff] }
  0x13   :  { %3539 = vmatpush.msra.mxu3 %v71_v17  ;;  %105 = vmatpush.msra.mxu0 %v70_v16  ;;  %v3806_v52 = vld [vmem:[%s5874_s0 + $0x28] sm:$0xff]  ;;  %v3823_v55 = vld [vmem:[%s5874_s0 + $0x30] sm:$0xff]  ;;  %v66_v56 = vld [vmem:[%s5873_s1 + $0x178] sm:$0xff] }
  0x14   :  { %3524 = vmatpush.msra.mxu2 %v67_v18  ;;  %219 = vmatpush.msra.mxu1 %v68_v19  ;;  %v3835_v57 = vld [vmem:[%s5874_s0 + $0xb8] sm:$0xff]  ;;  %v63_v59 = vld [vmem:[%s5873_s1 + $0x130] sm:$0xff]  ;;  %v3852_v60 = vld [vmem:[%s5874_s0 + $0xc0] sm:$0xff] }
  0x15   :  { %3540 = vmatpush.msra.mxu3 %v68_v19  ;;  %106 = vmatpush.msra.mxu0 %v67_v18  ;;  %v3840_v58 = vld [vmem:[%s5874_s0 + $0x38] sm:$0xff]  ;;  %v3857_v61 = vld [vmem:[%s5874_s0 + $0x40] sm:$0xff]  ;;  %v60_v62 = vld [vmem:[%s5873_s1 + $0xe8] sm:$0xff] }
  0x16   :  { %3525 = vmatpush.msra.mxu2 %v64_v20  ;;  %220 = vmatpush.msra.mxu1 %v65_v21  ;;  %v673_v63 = vld [vmem:[%s5873_s1 + $0x450] sm:$0xff]  ;;  %v675_v0 = vld [vmem:[%s5873_s1 + $0x460] sm:$0xff]  ;;  %v670_v1 = vld [vmem:[%s5873_s1 + $0x408] sm:$0xff] }
  0x17   :  { %3541 = vmatpush.msra.mxu3 %v65_v21  ;;  %107 = vmatpush.msra.mxu0 %v64_v20  ;;  %v672_v2 = vld [vmem:[%s5873_s1 + $0x418] sm:$0xff]  ;;  %v667_v3 = vld [vmem:[%s5873_s1 + $0x3c0] sm:$0xff]  ;;  %v669_v4 = vld [vmem:[%s5873_s1 + $0x3d0] sm:$0xff] }
  0x18   :  { %3526 = vmatpush.msra.mxu2 %v61_v22  ;;  %221 = vmatpush.msra.mxu1 %v62_v23  ;;  %v3887_v5 = vld [vmem:[%s5874_s0 + $0xc8] sm:$0xff]  ;;  %v664_v6 = vld [vmem:[%s5873_s1 + $0x378] sm:$0xff]  ;;  %v57_v9 = vld [vmem:[%s5873_s1 + $0xa0] sm:$0xff] }
  0x19   :  { %3542 = vmatpush.msra.mxu3 %v62_v23  ;;  %108 = vmatpush.msra.mxu0 %v61_v22  ;;  %v3895_v7 = vld [vmem:[%s5874_s0 + $0x48] sm:$0xff]  ;;  %v661_v10 = vld [vmem:[%s5873_s1 + $0x330] sm:$0xff]  ;;  %v674_v11 = vld [vmem:[%s5873_s1 + $0x458] sm:$0xff] }
  0x1a   :  { %3527 = vmatpush.msra.mxu2 %v58_v24  ;;  %222 = vmatpush.msra.mxu1 %v59_v25  ;;  %v666_v8 = vld [vmem:[%s5873_s1 + $0x388] sm:$0xff]  ;;  %v663_v12 = vld [vmem:[%s5873_s1 + $0x340] sm:$0xff]  ;;  %v671_v14 = vld [vmem:[%s5873_s1 + $0x410] sm:$0xff] }
  0x1b   :  { %3543 = vmatpush.msra.mxu3 %v59_v25  ;;  %109 = vmatpush.msra.mxu0 %v58_v24  ;;  %v658_v13 = vld [vmem:[%s5873_s1 + $0x2e8] sm:$0xff]  ;;  %v660_v15 = vld [vmem:[%s5873_s1 + $0x2f8] sm:$0xff]  ;;  %v655_v16 = vld [vmem:[%s5873_s1 + $0x2a0] sm:$0xff] }
  0x1c   :  { %3528 = vmatpush.msra.mxu2 %v55_v26  ;;  %223 = vmatpush.msra.mxu1 %v56_v27  ;;  %v3931_v17 = vld [vmem:[%s5874_s0 + $0xd0] sm:$0xff]  ;;  %v668_v18 = vld [vmem:[%s5873_s1 + $0x3c8] sm:$0xff]  ;;  %v652_v21 = vld [vmem:[%s5873_s1 + $0x258] sm:$0xff] }
  0x1d   :  { %3544 = vmatpush.msra.mxu3 %v56_v27  ;;  %110 = vmatpush.msra.mxu0 %v55_v26  ;;  %v3939_v19 = vld [vmem:[%s5874_s0 + $0x50] sm:$0xff]  ;;  %v665_v22 = vld [vmem:[%s5873_s1 + $0x380] sm:$0xff]  ;;  %v654_v23 = vld [vmem:[%s5873_s1 + $0x268] sm:$0xff] }
  0x1e   :  { %3529 = vmatpush.msra.mxu2 %v52_v28  ;;  %224 = vmatpush.msra.mxu1 %v53_v29  ;;  %v657_v20 = vld [vmem:[%s5873_s1 + $0x2b0] sm:$0xff]  ;;  %v54_v24 = vld [vmem:[%s5873_s1 + $0x58] sm:$0xff]  ;;  %v651_v27 = vld [vmem:[%s5873_s1 + $0x220] sm:$0xff] }
  0x1f   :  { %3545 = vmatpush.msra.mxu3 %v53_v29  ;;  %111 = vmatpush.msra.mxu0 %v52_v28  ;;  %v649_v25 = vld [vmem:[%s5873_s1 + $0x210] sm:$0xff]  ;;  %v662_v26 = vld [vmem:[%s5873_s1 + $0x338] sm:$0xff]  ;;  %v646_v28 = vld [vmem:[%s5873_s1 + $0x1c8] sm:$0xff] }
  0x20   :  { %3530 = vmatpush.msra.mxu2 %v49_v30  ;;  %225 = vmatpush.msra.mxu1 %v50_v31  ;;  %v3975_v29 = vld [vmem:[%s5874_s0 + $0xd8] sm:$0xff] }
  0x21   :  { %3546 = vmatpush.msra.mxu3 %v50_v31  ;;  %161 = vmatmul.f32.vlgmr.msra.gmra.mxu2 %v3704_v32  ;;  %v3983_v31 = vld [vmem:[%s5874_s0 + $0x58] sm:$0xff] }
  0x22   :  { %226 = vmatmul.f32.vlgmr.msra.gmra.mxu1 %v3709_v33  ;;  %274 = vmatmul.f32.vlgmr.msra.gmra.mxu3 %v3704_v32 }
  0x23   :  { %323 = vmatpush.msrb.mxu2 %v96_v34  ;;  %112 = vmatpush.msra.mxu0 %v49_v30  ;;  %v659_v30 = vld [vmem:[%s5873_s1 + $0x2f0] sm:$0xff]  ;;  %v648_v34 = vld [vmem:[%s5873_s1 + $0x1d8] sm:$0xff] }
  0x24   :  { %113 = vmatmul.f32.vlgmr.msra.gmra.mxu0 %v3709_v33  ;;  %676 = vmatpush.msrb.mxu3 %v673_v63  ;;  %v634_v63 = vld [vmem:[%s5873_s1 + $0xa8] sm:$0xff] }
  0x25   :  { %324 = vmatpush.msrb.mxu2 %v93_v35  ;;  %902 = vmatpush.msrb.mxu1 %v675_v0  ;;  %v643_v35 = vld [vmem:[%s5873_s1 + $0x180] sm:$0xff]  ;;  %v647_v0 = vld [vmem:[%s5873_s1 + $0x1d0] sm:$0xff] }
  0x26   :  { %677 = vmatpush.msrb.mxu3 %v670_v1  ;;  %789 = vmatpush.msrb.mxu0 %v674_v11  ;;  %v636_v1 = vld [vmem:[%s5873_s1 + $0xb8] sm:$0xff]  ;;  %v4071_v11 = vld [vmem:[%s5874_s0 + $0x68] sm:$0xff] }
  0x27   :  { %325 = vmatpush.msrb.mxu2 %v90_v36  ;;  %903 = vmatpush.msrb.mxu1 %v672_v2  ;;  %v656_v36 = vld [vmem:[%s5873_s1 + $0x2a8] sm:$0xff]  ;;  %v3474_v2 = vld [vmem:[%s5875_s2 + $0xf8] sm:$0xff] }
  0x28   :  { %678 = vmatpush.msrb.mxu3 %v667_v3  ;;  %790 = vmatpush.msrb.mxu0 %v671_v14  ;;  %v631_v3 = vld [vmem:[%s5873_s1 + $0x60] sm:$0xff]  ;;  %v635_v14 = vld [vmem:[%s5873_s1 + $0xb0] sm:$0xff] }
  0x29   :  { %164 = vmatmul.f32.gmra.mxu2 %v3727_v37  ;;  %904 = vmatpush.msrb.mxu1 %v669_v4  ;;  %v644_v4 = vld [vmem:[%s5873_s1 + $0x188] sm:$0xff] }
  0x2a   :  { %229 = vmatmul.f32.gmra.mxu1 %v3732_v38  ;;  %277 = vmatmul.f32.gmra.mxu3 %v3727_v37 }
  0x2b   :  { %326 = vmatpush.msrb.mxu2 %v87_v39  ;;  %679 = vmatpush.msrb.mxu3 %v664_v6  ;;  %v645_v39 = vld [vmem:[%s5873_s1 + $0x190] sm:$0xff] }
  0x2c   :  { %116 = vmatmul.f32.gmra.mxu0 %v3732_v38  ;;  %905 = vmatpush.msrb.mxu1 %v666_v8  ;;  %v633_v6 = vld [vmem:[%s5873_s1 + $0x70] sm:$0xff]  ;;  %v628_v8 = vld [vmem:[%s5873_s1 + $0x18] sm:$0xff] }
  0x2d   :  { %327 = vmatpush.msrb.mxu2 %v84_v40  ;;  %680 = vmatpush.msrb.mxu3 %v661_v10  ;;  %v51_v40 = vld [vmem:[%s5873_s1 + $0x10] sm:$0xff]  ;;  %v641_v10 = vld [vmem:[%s5873_s1 + $0x140] sm:$0xff] }
  0x2e   :  { %906 = vmatpush.msrb.mxu1 %v663_v12  ;;  %791 = vmatpush.msrb.mxu0 %v668_v18  ;;  %v630_v12 = vld [vmem:[%s5873_s1 + $0x28] sm:$0xff]  ;;  %v629_v18 = vld [vmem:[%s5873_s1 + $0x20] sm:$0xff] }
  0x2f   :  { %328 = vmatpush.msrb.mxu2 %v81_v41  ;;  %681 = vmatpush.msrb.mxu3 %v658_v13  ;;  %v640_v41 = vld [vmem:[%s5873_s1 + $0x138] sm:$0xff] }
  0x30   :  { %907 = vmatpush.msrb.mxu1 %v660_v15  ;;  %792 = vmatpush.msrb.mxu0 %v665_v22  ;;  %v638_v13 = vld [vmem:[%s5873_s1 + $0xf8] sm:$0xff]  ;;  %v632_v15 = vld [vmem:[%s5873_s1 + $0x68] sm:$0xff] }
  0x31   :  { %167 = vmatmul.f32.gmra.mxu2 %v3750_v42  ;;  %682 = vmatpush.msrb.mxu3 %v655_v16  ;;  %v4092_v16 = vld [vmem:[%s5874_s0 + $0xf0] sm:$0xff]  ;;  %v4114_v22 = vld [vmem:[%s5874_s0 + $0x78] sm:$0xff] }
  0x32   :  { %232 = vmatmul.f32.gmra.mxu1 %v3755_v43  ;;  %280 = vmatmul.f32.gmra.mxu3 %v3750_v42 }
  0x33   :  { %329 = vmatpush.msrb.mxu2 %v78_v44  ;;  %908 = vmatpush.msrb.mxu1 %v657_v20  ;;  %v653_v44 = vld [vmem:[%s5873_s1 + $0x260] sm:$0xff]  ;;  %v4100_v20 = vld [vmem:[%s5874_s0 + $0x70] sm:$0xff] }
  0x34   :  { %119 = vmatmul.f32.gmra.mxu0 %v3755_v43  ;;  %683 = vmatpush.msrb.mxu3 %v652_v21  ;;  %v4109_v21 = vld [vmem:[%s5874_s0 + $0xf8] sm:$0xff] }
  0x35   :  { %330 = vmatpush.msrb.mxu2 %v75_v47  ;;  %909 = vmatpush.msrb.mxu1 %v654_v23  ;;  %v642_v47 = vld [vmem:[%s5873_s1 + $0x148] sm:$0xff] }
  0x36   :  { %684 = vmatpush.msrb.mxu3 %v649_v25  ;;  %793 = vmatpush.msrb.mxu0 %v662_v26  ;;  %v3473_v25 = vld [vmem:[%s5875_s2 + $0xf0] sm:$0xff] }
  0x37   :  { %331 = vmatpush.msrb.mxu2 %v72_v50  ;;  %910 = vmatpush.msrb.mxu1 %v651_v27  ;;  %v637_v50 = vld [vmem:[%s5873_s1 + $0xf0] sm:$0xff] }
  0x38   :  { %685 = vmatpush.msrb.mxu3 %v646_v28  ;;  %794 = vmatpush.msrb.mxu0 %v659_v30 }
  0x39   :  { %170 = vmatmul.f32.gmra.mxu2 %v3767_v45  ;;  %911 = vmatpush.msrb.mxu1 %v648_v34 }
  0x3a   :  { %235 = vmatmul.f32.gmra.mxu1 %v3772_v46  ;;  %283 = vmatmul.f32.gmra.mxu3 %v3767_v45 }
  0x3b   :  { %332 = vmatpush.msrb.mxu2 %v69_v53  ;;  %686 = vmatpush.msrb.mxu3 %v643_v35  ;;  %v4019_v53 = vld [vmem:[%s5874_s0 + $0xe0] sm:$0xff] }
  0x3c   :  { %122 = vmatmul.f32.gmra.mxu0 %v3772_v46  ;;  %912 = vmatpush.msrb.mxu1 %v645_v39 }
  0x3d   :  { %333 = vmatpush.msrb.mxu2 %v66_v56  ;;  %795 = vmatpush.msrb.mxu0 %v656_v36  ;;  %v650_v56 = vld [vmem:[%s5873_s1 + $0x218] sm:$0xff] }
  0x3e   :  { %687 = vmatpush.msrb.mxu3 %v640_v41  ;;  %913 = vmatpush.msrb.mxu1 %v642_v47 }
  0x3f   :  { %334 = vmatpush.msrb.mxu2 %v63_v59  ;;  %v4027_v59 = vld [vmem:[%s5874_s0 + $0x60] sm:$0xff]  ;;  %796 = vmatpush.msrb.mxu0 %v653_v44 }
  0x40   :  { %688 = vmatpush.msrb.mxu3 %v637_v50 }
  0x41   :  { %173 = vmatmul.f32.gmra.mxu2 %v3784_v48  ;;  %797 = vmatpush.msrb.mxu0 %v650_v56 }
  0x42   :  { %238 = vmatmul.f32.gmra.mxu1 %v3789_v49  ;;  %286 = vmatmul.f32.gmra.mxu3 %v3784_v48 }
  0x43   :  { %335 = vmatpush.msrb.mxu2 %v60_v62  ;;  %v639_v62 = vld [vmem:[%s5873_s1 + $0x100] sm:$0xff]  ;;  %689 = vmatpush.msrb.mxu3 %v634_v63 }
  0x44   :  { %125 = vmatmul.f32.gmra.mxu0 %v3789_v49  ;;  %914 = vmatpush.msrb.mxu1 %v639_v62 }
  0x45   :  { %336 = vmatpush.msrb.mxu2 %v57_v9  ;;  %798 = vmatpush.msrb.mxu0 %v647_v0  ;;  %v4063_v9 = vld [vmem:[%s5874_s0 + $0xe8] sm:$0xff] }
  0x46   :  { %915 = vmatpush.msrb.mxu1 %v636_v1  ;;  %690 = vmatpush.msrb.mxu3 %v631_v3 }
  0x47   :  { %337 = vmatpush.msrb.mxu2 %v54_v24  ;;  %799 = vmatpush.msrb.mxu0 %v644_v4 }
  0x48   :  { %916 = vmatpush.msrb.mxu1 %v633_v6  ;;  %691 = vmatpush.msrb.mxu3 %v628_v8 }
  0x49   :  { %176 = vmatmul.f32.gmra.mxu2 %v3801_v51  ;;  %800 = vmatpush.msrb.mxu0 %v641_v10 }
  0x4a   :  { %241 = vmatmul.f32.gmra.mxu1 %v3806_v52  ;;  %289 = vmatmul.f32.gmra.mxu3 %v3801_v51 }
  0x4b   :  { %338 = vmatpush.msrb.mxu2 %v51_v40  ;;  %917 = vmatpush.msrb.mxu1 %v630_v12 }
  0x4c   :  { %128 = vmatmul.f32.gmra.mxu0 %v3806_v52 }
  0x4d   :  { %1351 = vmatpush.bf16.msra.mxu2 %v3474_v2  ;;  %801 = vmatpush.msrb.mxu0 %v638_v13 }
  0x4f   :  { %802 = vmatpush.msrb.mxu0 %v635_v14 }
  0x51   :  { %179 = vmatmul.f32.gmra.mxu2 %v3818_v54  ;;  %803 = vmatpush.msrb.mxu0 %v632_v15 }
  0x52   :  { %244 = vmatmul.f32.gmra.mxu1 %v3823_v55  ;;  %292 = vmatmul.f32.gmra.mxu3 %v3818_v54 }
  0x53   :  { %804 = vmatpush.msrb.mxu0 %v629_v18  ;;  %1352 = vmatpush.bf16.msra.mxu2 %v3473_v25 }
  0x54   :  { %131 = vmatmul.f32.gmra.mxu0 %v3823_v55 }
  0x59   :  { %182 = vmatmul.f32.gmra.mxu2 %v3835_v57 }
  0x5a   :  { %247 = vmatmul.f32.gmra.mxu1 %v3840_v58  ;;  %295 = vmatmul.f32.gmra.mxu3 %v3835_v57 }
  0x5c   :  { %134 = vmatmul.f32.gmra.mxu0 %v3840_v58 }
  0x61   :  { %185 = vmatmul.f32.gmra.mxu2 %v3852_v60 }
  0x62   :  { %250 = vmatmul.f32.gmra.mxu1 %v3857_v61  ;;  %298 = vmatmul.f32.gmra.mxu3 %v3852_v60 }
  0x64   :  { %137 = vmatmul.f32.gmra.mxu0 %v3857_v61 }
  0x69   :  { %188 = vmatmul.f32.gmra.mxu2 %v3887_v5 }
  0x6a   :  { %253 = vmatmul.f32.gmra.mxu1 %v3895_v7  ;;  %301 = vmatmul.f32.gmra.mxu3 %v3887_v5 }
  0x6c   :  { %140 = vmatmul.f32.gmra.mxu0 %v3895_v7 }
  0x71   :  { %191 = vmatmul.f32.gmra.mxu2 %v3931_v17 }
  0x72   :  { %256 = vmatmul.f32.gmra.mxu1 %v3939_v19  ;;  %304 = vmatmul.f32.gmra.mxu3 %v3931_v17 }
  0x74   :  { %143 = vmatmul.f32.gmra.mxu0 %v3939_v19 }
  0x79   :  { %194 = vmatmul.f32.gmra.mxu2 %v3975_v29 }
  0x7a   :  { %259 = vmatmul.f32.gmra.mxu1 %v3983_v31  ;;  %307 = vmatmul.f32.gmra.mxu3 %v3975_v29 }
  0x7c   :  { %146 = vmatmul.f32.gmra.mxu0 %v3983_v31 }
  0x81   :  { %197 = vmatmul.f32.gmra.mxu2 %v4019_v53 }
  0x82   :  { %262 = vmatmul.f32.gmra.mxu1 %v4027_v59  ;;  %310 = vmatmul.f32.gmra.mxu3 %v4019_v53 }
  0x84   :  { %149 = vmatmul.f32.gmra.mxu0 %v4027_v59 }
  0x89   :  { %200 = vmatmul.f32.gmra.mxu2 %v4063_v9 }
  0x8a   :  { %265 = vmatmul.f32.gmra.mxu1 %v4071_v11  ;;  %313 = vmatmul.f32.gmra.mxu3 %v4063_v9 }
  0x8c   :  { %152 = vmatmul.f32.gmra.mxu0 %v4071_v11 }
  0x91   :  { %203 = vmatmul.f32.gmra.mxu2 %v4092_v16 }
  0x92   :  { %268 = vmatmul.f32.gmra.mxu1 %v4100_v20  ;;  %316 = vmatmul.f32.gmra.mxu3 %v4092_v16 }
  0x94   :  { %155 = vmatmul.f32.gmra.mxu0 %v4100_v20 }
  0x99   :  { %206 = vmatmul.f32.gmra.mxu2 %v4109_v21 }
  0x9a   :  { %271 = vmatmul.f32.gmra.mxu1 %v4114_v22  ;;  %319 = vmatmul.f32.gmra.mxu3 %v4109_v21 }
  0x9c   :  { %158 = vmatmul.f32.gmra.mxu0 %v4114_v22 }
  0x9f   :  { %v4120_v23 = vpop.f32.mrf.mxu1 }
  0xa0   :  { %5888 = vst [vmem:[#allocation2_spill] sm:$0xff] %v4120_v23 }
  0xa1   :  { %339 = vmatmul.f32.vlgmr.msrb.gmra.mxu2 %v3709_v33  ;;  %v4123_v24 = vpop.f32.mrf.mxu0 }
  0xa2   :  { %692 = vmatmul.f32.vlgmr.msrb.gmra.mxu3 %v3709_v33  ;;  %918 = vmatmul.f32.vlgmr.msrb.gmra.mxu1 %v3709_v33 }
  0xa4   :  { %v162_v26 = vpop.f32.mrf.mxu2  ;;  %805 = vmatmul.f32.vlgmr.msrb.gmra.mxu0 %v3709_v33 }
  0xa5   :  { %v275_v27 = vpop.f32.mrf.mxu3  ;;  %v484_v36 = vmax.f32 %v162_v26, 0.0 }
  0xa6   :  { %v485_v34 = vmax.f32 %v275_v27, 0.0 }
  0xa7   :  { %v4131_v28 = vpop.f32.mrf.mxu1 }
  0xa8   :  { %5889 = vst [vmem:[#allocation3_spill] sm:$0xff] %v4131_v28 }
  0xa9   :  { %342 = vmatmul.f32.gmra.mxu2 %v3732_v38  ;;  %v4134_v30 = vpop.f32.mrf.mxu0 }
  0xaa   :  { %695 = vmatmul.f32.gmra.mxu3 %v3732_v38  ;;  %921 = vmatmul.f32.gmra.mxu1 %v3732_v38 }
  0xac   :  { %v165_v35 = vpop.f32.mrf.mxu2  ;;  %808 = vmatmul.f32.gmra.mxu0 %v3732_v38 }
  0xad   :  { %v487_v39 = vmax.f32 %v165_v35, 0.0  ;;  %v278_v40 = vpop.f32.mrf.mxu3 }
  0xae   :  { %v488_v33 = vmax.f32 %v278_v40, 0.0 }
  0xaf   :  { %v4139_v41 = vpack.c.bf16 %v487_v39, %v484_v36  ;;  %v4141_v44 = vpop.f32.mrf.mxu1 }
  0xb0   :  { %5891 = vst [vmem:[#allocation5_spill] sm:$0xff] %v4141_v44  ;;  %v4143_v47 = vpack.c.bf16 %v488_v33, %v485_v34  ;;  %v3488_v44 = vld [vmem:[%s5875_s2 + $0x168] sm:$0xff] }
  0xb1   :  { %5890 = vst [vmem:[#allocation4_spill] sm:$0xff] %v4139_v41  ;;  %345 = vmatmul.f32.gmra.mxu2 %v3755_v43  ;;  %v4146_v50 = vpop.f32.mrf.mxu0 }
  0xb2   :  { %5892 = vst [vmem:[#allocation6_spill] sm:$0xff] %v4143_v47  ;;  %698 = vmatmul.f32.gmra.mxu3 %v3755_v43  ;;  %924 = vmatmul.f32.gmra.mxu1 %v3755_v43 }
  0xb4   :  { %v168_v56 = vpop.f32.mrf.mxu2  ;;  %811 = vmatmul.f32.gmra.mxu0 %v3755_v43 }
  0xb5   :  { %v281_v38 = vpop.f32.mrf.mxu3  ;;  %v490_v2 = vmax.f32 %v168_v56, 0.0 }
  0xb6   :  { %v491_v0 = vmax.f32 %v281_v38, 0.0 }
  0xb7   :  { %v4151_v62 = vpop.f32.mrf.mxu1 }
  0xb8   :  { %5893 = vst [vmem:[#allocation7_spill] sm:$0xff] %v4151_v62 }
  0xb9   :  { %348 = vmatmul.f32.gmra.mxu2 %v3772_v46  ;;  %v4154_v63 = vpop.f32.mrf.mxu0 }
  0xba   :  { %701 = vmatmul.f32.gmra.mxu3 %v3772_v46  ;;  %927 = vmatmul.f32.gmra.mxu1 %v3772_v46 }
  0xbc   :  { %v171_v1 = vpop.f32.mrf.mxu2  ;;  %814 = vmatmul.f32.gmra.mxu0 %v3772_v46  ;;  %v3472_v46 = vld [vmem:[%s5875_s2 + $0xe8] sm:$0xff] }
  0xbd   :  { %v493_v3 = vmax.f32 %v171_v1, 0.0  ;;  %v284_v4 = vpop.f32.mrf.mxu3  ;;  %1353 = vmatpush.bf16.msra.mxu2 %v3472_v46 }
  0xbe   :  { %v494_v6 = vmax.f32 %v284_v4, 0.0 }
  0xbf   :  { %v4159_v43 = vpack.c.bf16 %v493_v3, %v490_v2  ;;  %v4161_v8 = vpop.f32.mrf.mxu1 }
  0xc0   :  { %5895 = vst [vmem:[#allocation9_spill] sm:$0xff] %v4161_v8  ;;  %v4163_v10 = vpack.c.bf16 %v494_v6, %v491_v0 }
  0xc1   :  { %5894 = vst [vmem:[#allocation8_spill] sm:$0xff] %v4159_v43  ;;  %351 = vmatmul.f32.gmra.mxu2 %v3789_v49  ;;  %v4166_v12 = vpop.f32.mrf.mxu0 }
  0xc2   :  { %5896 = vst [vmem:[#allocation10_spill] sm:$0xff] %v4163_v10  ;;  %704 = vmatmul.f32.gmra.mxu3 %v3789_v49  ;;  %930 = vmatmul.f32.gmra.mxu1 %v3789_v49 }
  0xc4   :  { %v174_v13 = vpop.f32.mrf.mxu2  ;;  %817 = vmatmul.f32.gmra.mxu0 %v3789_v49 }
  0xc5   :  { %v287_v14 = vpop.f32.mrf.mxu3  ;;  %v496_v27 = vmax.f32 %v174_v13, 0.0 }
  0xc6   :  { %v497_v25 = vmax.f32 %v287_v14, 0.0 }
  0xc7   :  { %v4174_v15 = vpop.f32.mrf.mxu1 }
  0xc8   :  { %5897 = vst [vmem:[#allocation11_spill] sm:$0xff] %v4174_v15 }
  0xc9   :  { %354 = vmatmul.f32.gmra.mxu2 %v3806_v52  ;;  %v4177_v18 = vpop.f32.mrf.mxu0 }
  0xca   :  { %707 = vmatmul.f32.gmra.mxu3 %v3806_v52  ;;  %933 = vmatmul.f32.gmra.mxu1 %v3806_v52 }
  0xcc   :  { %v177_v26 = vpop.f32.mrf.mxu2  ;;  %820 = vmatmul.f32.gmra.mxu0 %v3806_v52 }
  0xcd   :  { %v499_v34 = vmax.f32 %v177_v26, 0.0  ;;  %v290_v35 = vpop.f32.mrf.mxu3 }
  0xce   :  { %v500_v49 = vmax.f32 %v290_v35, 0.0 }
  0xcf   :  { %v4182_v36 = vpack.c.bf16 %v499_v34, %v496_v27  ;;  %v4184_v39 = vpop.f32.mrf.mxu1 }
  0xd0   :  { %5899 = vst [vmem:[#allocation13_spill] sm:$0xff] %v4184_v39  ;;  %v4186_v40 = vpack.c.bf16 %v500_v49, %v497_v25  ;;  %v3480_v39 = vld [vmem:[%s5875_s2 + $0x128] sm:$0xff] }
  0xd1   :  { %5898 = vst [vmem:[#allocation12_spill] sm:$0xff] %v4182_v36  ;;  %357 = vmatmul.f32.gmra.mxu2 %v3823_v55  ;;  %v4189_v33 = vpop.f32.mrf.mxu0  ;;  %v3487_v36 = vld [vmem:[%s5875_s2 + $0x160] sm:$0xff] }
  0xd2   :  { %5900 = vst [vmem:[#allocation14_spill] sm:$0xff] %v4186_v40  ;;  %710 = vmatmul.f32.gmra.mxu3 %v3823_v55  ;;  %936 = vmatmul.f32.gmra.mxu1 %v3823_v55 }
  0xd4   :  { %v180_v56 = vpop.f32.mrf.mxu2  ;;  %823 = vmatmul.f32.gmra.mxu0 %v3823_v55 }
  0xd5   :  { %v293_v52 = vpop.f32.mrf.mxu3  ;;  %v502_v3 = vmax.f32 %v180_v56, 0.0 }
  0xd6   :  { %v503_v1 = vmax.f32 %v293_v52, 0.0 }
  0xd7   :  { %v4194_v38 = vpop.f32.mrf.mxu1 }
  0xd8   :  { %5901 = vst [vmem:[#allocation15_spill] sm:$0xff] %v4194_v38 }
  0xd9   :  { %360 = vmatmul.f32.gmra.mxu2 %v3840_v58  ;;  %v4197_v0 = vpop.f32.mrf.mxu0 }
  0xda   :  { %713 = vmatmul.f32.gmra.mxu3 %v3840_v58  ;;  %939 = vmatmul.f32.gmra.mxu1 %v3840_v58 }
  0xdc   :  { %v183_v2 = vpop.f32.mrf.mxu2  ;;  %826 = vmatmul.f32.gmra.mxu0 %v3840_v58  ;;  %v3471_v58 = vld [vmem:[%s5875_s2 + $0xe0] sm:$0xff] }
  0xdd   :  { %v505_v4 = vmax.f32 %v183_v2, 0.0  ;;  %v296_v6 = vpop.f32.mrf.mxu3  ;;  %1354 = vmatpush.bf16.msra.mxu2 %v3471_v58 }
  0xde   :  { %v506_v46 = vmax.f32 %v296_v6, 0.0 }
  0xdf   :  { %v4202_v55 = vpack.c.bf16 %v505_v4, %v502_v3  ;;  %v4204_v13 = vpop.f32.mrf.mxu1 }
  0xe0   :  { %5903 = vst [vmem:[#allocation17_spill] sm:$0xff] %v4204_v13  ;;  %v4206_v14 = vpack.c.bf16 %v506_v46, %v503_v1 }
  0xe1   :  { %5902 = vst [vmem:[#allocation16_spill] sm:$0xff] %v4202_v55  ;;  %363 = vmatmul.f32.gmra.mxu2 %v3857_v61  ;;  %v4209_v25 = vpop.f32.mrf.mxu0 }
  0xe2   :  { %5904 = vst [vmem:[#allocation18_spill] sm:$0xff] %v4206_v14  ;;  %716 = vmatmul.f32.gmra.mxu3 %v3857_v61  ;;  %942 = vmatmul.f32.gmra.mxu1 %v3857_v61 }
  0xe4   :  { %v186_v26 = vpop.f32.mrf.mxu2  ;;  %829 = vmatmul.f32.gmra.mxu0 %v3857_v61 }
  0xe5   :  { %v299_v27 = vpop.f32.mrf.mxu3  ;;  %v508_v52 = vmax.f32 %v186_v26, 0.0 }
  0xe6   :  { %v509_v49 = vmax.f32 %v299_v27, 0.0 }
  0xe7   :  { %v4217_v34 = vpop.f32.mrf.mxu1 }
  0xe8   :  { %5905 = vst [vmem:[#allocation19_spill] sm:$0xff] %v4217_v34 }
  0xe9   :  { %366 = vmatmul.f32.gmra.mxu2 %v3895_v7  ;;  %v4220_v35 = vpop.f32.mrf.mxu0 }
  0xea   :  { %719 = vmatmul.f32.gmra.mxu3 %v3895_v7  ;;  %945 = vmatmul.f32.gmra.mxu1 %v3895_v7 }
  0xec   :  { %v189_v56 = vpop.f32.mrf.mxu2  ;;  %832 = vmatmul.f32.gmra.mxu0 %v3895_v7 }
  0xed   :  { %v511_v1 = vmax.f32 %v189_v56, 0.0  ;;  %v302_v2 = vpop.f32.mrf.mxu3 }
  0xee   :  { %v512_v61 = vmax.f32 %v302_v2, 0.0 }
  0xef   :  { %v4225_v3 = vpack.c.bf16 %v511_v1, %v508_v52  ;;  %v4227_v4 = vpop.f32.mrf.mxu1 }
  0xf0   :  { %5907 = vst [vmem:[#allocation21_spill] sm:$0xff] %v4227_v4  ;;  %v4229_v6 = vpack.c.bf16 %v512_v61, %v509_v49 }
  0xf1   :  { %5906 = vst [vmem:[#allocation20_spill] sm:$0xff] %v4225_v3  ;;  %369 = vmatmul.f32.gmra.mxu2 %v3939_v19  ;;  %v4232_v46 = vpop.f32.mrf.mxu0 }
  0xf2   :  { %5908 = vst [vmem:[#allocation22_spill] sm:$0xff] %v4229_v6  ;;  %722 = vmatmul.f32.gmra.mxu3 %v3939_v19  ;;  %948 = vmatmul.f32.gmra.mxu1 %v3939_v19 }
  0xf4   :  { %v192_v58 = vpop.f32.mrf.mxu2  ;;  %835 = vmatmul.f32.gmra.mxu0 %v3939_v19 }
  0xf5   :  { %v305_v7 = vpop.f32.mrf.mxu3  ;;  %v514_v52 = vmax.f32 %v192_v58, 0.0 }
  0xf6   :  { %v515_v49 = vmax.f32 %v305_v7, 0.0 }
  0xf7   :  { %v4237_v26 = vpop.f32.mrf.mxu1 }
  0xf8   :  { %5909 = vst [vmem:[#allocation23_spill] sm:$0xff] %v4237_v26  ;;  %v3489_v26 = vld [vmem:[%s5875_s2 + $0x170] sm:$0xff] }
  0xf9   :  { %372 = vmatmul.f32.gmra.mxu2 %v3983_v31  ;;  %v4240_v27 = vpop.f32.mrf.mxu0 }
  0xfa   :  { %725 = vmatmul.f32.gmra.mxu3 %v3983_v31  ;;  %951 = vmatmul.f32.gmra.mxu1 %v3983_v31 }
  0xfc   :  { %v195_v56 = vpop.f32.mrf.mxu2  ;;  %838 = vmatmul.f32.gmra.mxu0 %v3983_v31  ;;  %v3470_v31 = vld [vmem:[%s5875_s2 + $0xd8] sm:$0xff] }
  0xfd   :  { %v517_v1 = vmax.f32 %v195_v56, 0.0  ;;  %v308_v2 = vpop.f32.mrf.mxu3  ;;  %1355 = vmatpush.bf16.msra.mxu2 %v3470_v31 }
  0xfe   :  { %v518_v61 = vmax.f32 %v308_v2, 0.0 }
  0xff   :  { %v4245_v19 = vpack.c.bf16 %v517_v1, %v514_v52  ;;  %v4247_v6 = vpop.f32.mrf.mxu1  ;;  %v3482_v52 = vld [vmem:[%s5875_s2 + $0x138] sm:$0xff] }
 0x100   :  { %5911 = vst [vmem:[#allocation25_spill] sm:$0xff] %v4247_v6  ;;  %v4249_v14 = vpack.c.bf16 %v518_v61, %v515_v49  ;;  %1440 = vmatpush.bf16.msra.mxu3 %v3482_v52  ;;  %v3490_v6 = vld [vmem:[%s5875_s2 + $0x178] sm:$0xff] }
 0x101   :  { %5910 = vst [vmem:[#allocation24_spill] sm:$0xff] %v4245_v19  ;;  %375 = vmatmul.f32.gmra.mxu2 %v4027_v59  ;;  %v4252_v40 = vpop.f32.mrf.mxu0  ;;  %1529 = vmatpush.bf16.msra.mxu0 %v3490_v6  ;;  %v3447_v19 = vld [vmem:[%s5875_s2 + $0x20] sm:$0xff] }
 0x102   :  { %5912 = vst [vmem:[#allocation26_spill] sm:$0xff] %v4249_v14  ;;  %728 = vmatmul.f32.gmra.mxu3 %v4027_v59  ;;  %954 = vmatmul.f32.gmra.mxu1 %v4027_v59 }
 0x103   :  { %5913 = vst [vmem:[#allocation27_spill] sm:$0xff] %v4252_v40 }
 0x104   :  { %v198_v58 = vpop.f32.mrf.mxu2  ;;  %841 = vmatmul.f32.gmra.mxu0 %v4027_v59 }
 0x105   :  { %v311_v7 = vpop.f32.mrf.mxu3  ;;  %v520_v59 = vmax.f32 %v198_v58, 0.0  ;;  %1530 = vmatpush.bf16.msra.mxu0 %v3489_v26 }
 0x106   :  { %v521_v1 = vmax.f32 %v311_v7, 0.0 }
 0x107   :  { %v4260_v56 = vpop.f32.mrf.mxu1 }
 0x108   :  { %5914 = vst [vmem:[#allocation28_spill] sm:$0xff] %v4260_v56 }
 0x109   :  { %378 = vmatmul.f32.gmra.mxu2 %v4071_v11  ;;  %v4263_v49 = vpop.f32.mrf.mxu0  ;;  %1531 = vmatpush.bf16.msra.mxu0 %v3488_v44 }
 0x10a   :  { %5915 = vst [vmem:[#allocation29_spill] sm:$0xff] %v4263_v49  ;;  %731 = vmatmul.f32.gmra.mxu3 %v4071_v11  ;;  %957 = vmatmul.f32.gmra.mxu1 %v4071_v11 }
 0x10c   :  { %v201_v2 = vpop.f32.mrf.mxu2  ;;  %844 = vmatmul.f32.gmra.mxu0 %v4071_v11  ;;  %v3450_v11 = vld [vmem:[%s5875_s2 + $0x38] sm:$0xff] }
 0x10d   :  { %v523_v61 = vmax.f32 %v201_v2, 0.0  ;;  %v314_v31 = vpop.f32.mrf.mxu3  ;;  %1762 = vmatpush.bf16.msra.mxu1 %v3450_v11  ;;  %1532 = vmatpush.bf16.msra.mxu0 %v3487_v36 }
 0x10e   :  { %v524_v14 = vmax.f32 %v314_v31, 0.0 }
 0x10f   :  { %v4271_v10 = vpack.c.bf16 %v523_v61, %v520_v59  ;;  %v4273_v47 = vpop.f32.mrf.mxu1 }
 0x110   :  { %5917 = vst [vmem:[#allocation31_spill] sm:$0xff] %v4273_v47  ;;  %v4275_v56 = vpack.c.bf16 %v524_v14, %v521_v1 }
 0x111   :  { %5916 = vst [vmem:[#allocation30_spill] sm:$0xff] %v4271_v10  ;;  %381 = vmatmul.f32.gmra.mxu2 %v4100_v20  ;;  %v4281_v7 = vpop.f32.mrf.mxu0 }
 0x112   :  { %5918 = vst [vmem:[#allocation32_spill] sm:$0xff] %v4275_v56  ;;  %734 = vmatmul.f32.gmra.mxu3 %v4100_v20  ;;  %960 = vmatmul.f32.gmra.mxu1 %v4100_v20 }
 0x113   :  { %5919 = vst [vmem:[#allocation33_spill] sm:$0xff] %v4281_v7  ;;  %v3485_v7 = vld [vmem:[%s5875_s2 + $0x150] sm:$0xff] }
 0x114   :  { %v204_v58 = vpop.f32.mrf.mxu2  ;;  %847 = vmatmul.f32.gmra.mxu0 %v4100_v20 }
 0x115   :  { %v317_v14 = vpop.f32.mrf.mxu3  ;;  %v526_v6 = vmax.f32 %v204_v58, 0.0 }
 0x116   :  { %v527_v2 = vmax.f32 %v317_v14, 0.0 }
 0x117   :  { %v4289_v52 = vpop.f32.mrf.mxu1 }
 0x118   :  { %5920 = vst [vmem:[#allocation34_spill] sm:$0xff] %v4289_v52 }
 0x119   :  { %384 = vmatmul.f32.gmra.mxu2 %v4114_v22  ;;  %v4292_v1 = vpop.f32.mrf.mxu0 }
 0x11a   :  { %5921 = vst [vmem:[#allocation35_spill] sm:$0xff] %v4292_v1  ;;  %737 = vmatmul.f32.gmra.mxu3 %v4114_v22  ;;  %963 = vmatmul.f32.gmra.mxu1 %v4114_v22  ;;  %v3475_v1 = vld [vmem:[%s5875_s2 + $0x100] sm:$0xff] }
 0x11c   :  { %v207_v59 = vpop.f32.mrf.mxu2  ;;  %850 = vmatmul.f32.gmra.mxu0 %v4114_v22  ;;  %v3469_v22 = vld [vmem:[%s5875_s2 + $0xd0] sm:$0xff] }
 0x11d   :  { %v529_v61 = vmax.f32 %v207_v59, 0.0  ;;  %v320_v31 = vpop.f32.mrf.mxu3  ;;  %1356 = vmatpush.bf16.msra.mxu2 %v3469_v22 }
 0x11e   :  { %v530_v20 = vmax.f32 %v320_v31, 0.0 }
 0x11f   :  { %v4297_v11 = vpack.c.bf16 %v529_v61, %v526_v6  ;;  %v4299_v56 = vpop.f32.mrf.mxu1  ;;  %v3481_v6 = vld [vmem:[%s5875_s2 + $0x130] sm:$0xff] }
 0x120   :  { %v4301_v52 = vpack.c.bf16 %v530_v20, %v527_v2  ;;  %1441 = vmatpush.bf16.msra.mxu3 %v3481_v6 }
 0x121   :  { %5922 = vst [vmem:[#allocation36_spill] sm:$0xff] %v4297_v11  ;;  %387 = vmatmul.f32.gmra.mxu2 %v3704_v32  ;;  %v4304_v47 = vpop.f32.mrf.mxu0 }
 0x122   :  { %5923 = vst [vmem:[#allocation37_spill] sm:$0xff] %v4301_v52  ;;  %740 = vmatmul.f32.gmra.mxu3 %v3704_v32  ;;  %966 = vmatmul.f32.gmra.mxu1 %v3704_v32 }
 0x124   :  { %v340_v58 = vpop.f32.mrf.mxu2  ;;  %853 = vmatmul.f32.gmra.mxu0 %v3704_v32  ;;  %1442 = vmatpush.bf16.msra.mxu3 %v3480_v39 }
 0x125   :  { %v4312_v14 = vpop.f32.mrf.mxu3  ;;  %v438_v32 = vmax.f32 %v340_v58, 0.0 }
 0x127   :  { %v4314_v2 = vpop.f32.mrf.mxu1 }
 0x129   :  { %390 = vmatmul.f32.gmra.mxu2 %v3727_v37  ;;  %v4317_v59 = vpop.f32.mrf.mxu0 }
 0x12a   :  { %743 = vmatmul.f32.gmra.mxu3 %v3727_v37  ;;  %969 = vmatmul.f32.gmra.mxu1 %v3727_v37 }
 0x12c   :  { %v343_v61 = vpop.f32.mrf.mxu2  ;;  %856 = vmatmul.f32.gmra.mxu0 %v3727_v37  ;;  %v3449_v37 = vld [vmem:[%s5875_s2 + $0x30] sm:$0xff] }
 0x12d   :  { %v441_v31 = vmax.f32 %v343_v61, 0.0  ;;  %v4325_v20 = vpop.f32.mrf.mxu3  ;;  %1763 = vmatpush.bf16.msra.mxu1 %v3449_v37 }
 0x12f   :  { %v4327_v22 = vpack.c.bf16 %v441_v31, %v438_v32  ;;  %v4329_v52 = vpop.f32.mrf.mxu1 }
 0x131   :  { %5924 = vst [vmem:[#allocation38_spill] sm:$0xff] %v4327_v22  ;;  %393 = vmatmul.f32.gmra.mxu2 %v3750_v42  ;;  %v4335_v4 = vpop.f32.mrf.mxu0 }
 0x132   :  { %746 = vmatmul.f32.gmra.mxu3 %v3750_v42  ;;  %972 = vmatmul.f32.gmra.mxu1 %v3750_v42 }
 0x134   :  { %v346_v58 = vpop.f32.mrf.mxu2  ;;  %859 = vmatmul.f32.gmra.mxu0 %v3750_v42 }
 0x135   :  { %v4343_v6 = vpop.f32.mrf.mxu3  ;;  %v444_v26 = vmax.f32 %v346_v58, 0.0 }
 0x137   :  { %v4345_v61 = vpop.f32.mrf.mxu1 }
 0x139   :  { %396 = vmatmul.f32.gmra.mxu2 %v3767_v45  ;;  %v4348_v32 = vpop.f32.mrf.mxu0 }
 0x13a   :  { %749 = vmatmul.f32.gmra.mxu3 %v3767_v45  ;;  %975 = vmatmul.f32.gmra.mxu1 %v3767_v45 }
 0x13c   :  { %v349_v31 = vpop.f32.mrf.mxu2  ;;  %862 = vmatmul.f32.gmra.mxu0 %v3767_v45  ;;  %v3468_v45 = vld [vmem:[%s5875_s2 + $0xc8] sm:$0xff] }
 0x13d   :  { %v447_v34 = vmax.f32 %v349_v31, 0.0  ;;  %v4353_v13 = vpop.f32.mrf.mxu3  ;;  %1357 = vmatpush.bf16.msra.mxu2 %v3468_v45 }
 0x13f   :  { %v4355_v42 = vpack.c.bf16 %v447_v34, %v444_v26  ;;  %v4357_v37 = vpop.f32.mrf.mxu1 }
 0x141   :  { %5925 = vst [vmem:[#allocation39_spill] sm:$0xff] %v4355_v42  ;;  %399 = vmatmul.f32.gmra.mxu2 %v3784_v48  ;;  %v4360_v38 = vpop.f32.mrf.mxu0 }
 0x142   :  { %752 = vmatmul.f32.gmra.mxu3 %v3784_v48  ;;  %978 = vmatmul.f32.gmra.mxu1 %v3784_v48 }
 0x144   :  { %v352_v58 = vpop.f32.mrf.mxu2  ;;  %865 = vmatmul.f32.gmra.mxu0 %v3784_v48 }
 0x145   :  { %v4368_v34 = vpop.f32.mrf.mxu3  ;;  %v450_v48 = vmax.f32 %v352_v58, 0.0 }
 0x147   :  { %v4370_v31 = vpop.f32.mrf.mxu1 }
 0x149   :  { %402 = vmatmul.f32.gmra.mxu2 %v3801_v51  ;;  %v4373_v26 = vpop.f32.mrf.mxu0 }
 0x14a   :  { %755 = vmatmul.f32.gmra.mxu3 %v3801_v51  ;;  %981 = vmatmul.f32.gmra.mxu1 %v3801_v51 }
 0x14c   :  { %v355_v15 = vpop.f32.mrf.mxu2  ;;  %868 = vmatmul.f32.gmra.mxu0 %v3801_v51  ;;  %v3448_v51 = vld [vmem:[%s5875_s2 + $0x28] sm:$0xff] }
 0x14d   :  { %v453_v45 = vmax.f32 %v355_v15, 0.0  ;;  %v4381_v8 = vpop.f32.mrf.mxu3  ;;  %1764 = vmatpush.bf16.msra.mxu1 %v3448_v51 }
 0x14f   :  { %v4383_v42 = vpack.c.bf16 %v453_v45, %v450_v48  ;;  %v4385_v62 = vpop.f32.mrf.mxu1 }
 0x151   :  { %5926 = vst [vmem:[#allocation40_spill] sm:$0xff] %v4383_v42  ;;  %405 = vmatmul.f32.gmra.mxu2 %v3818_v54  ;;  %v4391_v22 = vpop.f32.mrf.mxu0  ;;  %1765 = vmatpush.bf16.msra.mxu1 %v3447_v19 }
 0x152   :  { %758 = vmatmul.f32.gmra.mxu3 %v3818_v54  ;;  %984 = vmatmul.f32.gmra.mxu1 %v3818_v54 }
 0x154   :  { %v358_v15 = vpop.f32.mrf.mxu2  ;;  %871 = vmatmul.f32.gmra.mxu0 %v3818_v54 }
 0x155   :  { %v4399_v39 = vpop.f32.mrf.mxu3  ;;  %v456_v44 = vmax.f32 %v358_v15, 0.0 }
 0x157   :  { %v4401_v58 = vpop.f32.mrf.mxu1 }
 0x159   :  { %408 = vmatmul.f32.gmra.mxu2 %v3835_v57  ;;  %v4404_v48 = vpop.f32.mrf.mxu0 }
 0x15a   :  { %761 = vmatmul.f32.gmra.mxu3 %v3835_v57  ;;  %987 = vmatmul.f32.gmra.mxu1 %v3835_v57 }
 0x15c   :  { %v361_v45 = vpop.f32.mrf.mxu2  ;;  %874 = vmatmul.f32.gmra.mxu0 %v3835_v57  ;;  %v3467_v57 = vld [vmem:[%s5875_s2 + $0xc0] sm:$0xff] }
 0x15d   :  { %v459_v42 = vmax.f32 %v361_v45, 0.0  ;;  %v4409_v28 = vpop.f32.mrf.mxu3  ;;  %1358 = vmatpush.bf16.msra.mxu2 %v3467_v57 }
 0x15f   :  { %v4411_v54 = vpack.c.bf16 %v459_v42, %v456_v44  ;;  %v4413_v51 = vpop.f32.mrf.mxu1 }
 0x161   :  { %5927 = vst [vmem:[#allocation41_spill] sm:$0xff] %v4411_v54  ;;  %411 = vmatmul.f32.gmra.mxu2 %v3852_v60  ;;  %v4416_v23 = vpop.f32.mrf.mxu0  ;;  %v3479_v54 = vld [vmem:[%s5875_s2 + $0x120] sm:$0xff] }
 0x162   :  { %764 = vmatmul.f32.gmra.mxu3 %v3852_v60  ;;  %990 = vmatmul.f32.gmra.mxu1 %v3852_v60 }
 0x163   :  { %1443 = vmatpush.bf16.msra.mxu3 %v3479_v54  ;;  %v3446_v54 = vld [vmem:[%s5875_s2 + $0x18] sm:$0xff] }
 0x164   :  { %v364_v15 = vpop.f32.mrf.mxu2  ;;  %877 = vmatmul.f32.gmra.mxu0 %v3852_v60  ;;  %1766 = vmatpush.bf16.msra.mxu1 %v3446_v54  ;;  %v3444_v54 = vld [vmem:[%s5875_s2 + $0x8] sm:$0xff] }
 0x165   :  { %v4424_v42 = vpop.f32.mrf.mxu3  ;;  %v462_v60 = vmax.f32 %v364_v15, 0.0 }
 0x167   :  { %v4426_v45 = vpop.f32.mrf.mxu1 }
 0x169   :  { %414 = vmatmul.f32.gmra.mxu2 %v3887_v5  ;;  %v4429_v44 = vpop.f32.mrf.mxu0 }
 0x16a   :  { %767 = vmatmul.f32.gmra.mxu3 %v3887_v5  ;;  %993 = vmatmul.f32.gmra.mxu1 %v3887_v5 }
 0x16c   :  { %v367_v11 = vpop.f32.mrf.mxu2  ;;  %880 = vmatmul.f32.gmra.mxu0 %v3887_v5 }
 0x16d   :  { %v465_v57 = vmax.f32 %v367_v11, 0.0  ;;  %v4437_v10 = vpop.f32.mrf.mxu3  ;;  %v3478_v11 = vld [vmem:[%s5875_s2 + $0x118] sm:$0xff] }
 0x16e   :  { %1444 = vmatpush.bf16.msra.mxu3 %v3478_v11  ;;  %v3486_v11 = vld [vmem:[%s5875_s2 + $0x158] sm:$0xff] }
 0x16f   :  { %v4442_v3 = vpack.c.bf16 %v465_v57, %v462_v60  ;;  %v4444_v55 = vpop.f32.mrf.mxu1  ;;  %v3477_v60 = vld [vmem:[%s5875_s2 + $0x110] sm:$0xff]  ;;  %1533 = vmatpush.bf16.msra.mxu0 %v3486_v11 }
 0x170   :  { %v3445_v57 = vld [vmem:[%s5875_s2 + $0x10] sm:$0xff] }
 0x171   :  { %5928 = vst [vmem:[#allocation42_spill] sm:$0xff] %v4442_v3  ;;  %417 = vmatmul.f32.gmra.mxu2 %v3931_v17  ;;  %v4450_v5 = vpop.f32.mrf.mxu0  ;;  %1767 = vmatpush.bf16.msra.mxu1 %v3445_v57 }
 0x172   :  { %770 = vmatmul.f32.gmra.mxu3 %v3931_v17  ;;  %996 = vmatmul.f32.gmra.mxu1 %v3931_v17 }
 0x173   :  { %1445 = vmatpush.bf16.msra.mxu3 %v3477_v60  ;;  %1534 = vmatpush.bf16.msra.mxu0 %v3485_v7 }
 0x174   :  { %v370_v19 = vpop.f32.mrf.mxu2  ;;  %883 = vmatmul.f32.gmra.mxu0 %v3931_v17  ;;  %v3476_v17 = vld [vmem:[%s5875_s2 + $0x108] sm:$0xff] }
 0x175   :  { %v4461_v15 = vpop.f32.mrf.mxu3  ;;  %1768 = vmatpush.bf16.msra.mxu1 %v3444_v54  ;;  %v468_v57 = vmax.f32 %v370_v19, 0.0  ;;  %v3484_v54 = vld [vmem:[%s5875_s2 + $0x148] sm:$0xff] }
 0x177   :  { %v4469_v3 = vpop.f32.mrf.mxu1  ;;  %1446 = vmatpush.bf16.msra.mxu3 %v3476_v17  ;;  %v3443_v17 = vld [vmem:[%s5875_s2] sm:$0xff]  ;;  %1535 = vmatpush.bf16.msra.mxu0 %v3484_v54 }
 0x179   :  { %420 = vmatmul.f32.gmra.mxu2 %v3975_v29  ;;  %v4472_v36 = vpop.f32.mrf.mxu0  ;;  %1769 = vmatpush.bf16.msra.mxu1 %v3443_v17 }
 0x17a   :  { %773 = vmatmul.f32.gmra.mxu3 %v3975_v29  ;;  %999 = vmatmul.f32.gmra.mxu1 %v3975_v29 }
 0x17b   :  { %1447 = vmatpush.bf16.msra.mxu3 %v3475_v1 }
 0x17c   :  { %v373_v60 = vpop.f32.mrf.mxu2  ;;  %886 = vmatmul.f32.gmra.mxu0 %v3975_v29 }
 0x17d   :  { %v471_v43 = vmax.f32 %v373_v60, 0.0  ;;  %v4486_v41 = vpop.f32.mrf.mxu3  ;;  %v3483_v60 = vld [vmem:[%s5875_s2 + $0x140] sm:$0xff] }
 0x17e   :  { %1536 = vmatpush.bf16.msra.mxu0 %v3483_v60 }
 0x17f   :  { %v4497_v11 = vpack.c.bf16 %v471_v43, %v468_v57  ;;  %v4499_v29 = vpop.f32.mrf.mxu1  ;;  %v3458_v43 = vld [vmem:[%s5875_s2 + $0x78] sm:$0xff] }
 0x180   :  { %5930 = vst [vmem:[#allocation44_spill] sm:$0xff] %v4499_v29  ;;  %1851 = vmatpush.bf16.msrb.mxu2 %v3458_v43 }
 0x181   :  { %5929 = vst [vmem:[#allocation43_spill] sm:$0xff] %v4497_v11  ;;  %423 = vmatmul.f32.gmra.mxu2 %v4019_v53  ;;  %v4502_v19 = vpop.f32.mrf.mxu0 }
 0x182   :  { %776 = vmatmul.f32.gmra.mxu3 %v4019_v53  ;;  %1002 = vmatmul.f32.gmra.mxu1 %v4019_v53 }
 0x184   :  { %v376_v1 = vpop.f32.mrf.mxu2  ;;  %889 = vmatmul.f32.gmra.mxu0 %v4019_v53 }
 0x185   :  { %v4513_v7 = vpop.f32.mrf.mxu3  ;;  %v474_v53 = vmax.f32 %v376_v1, 0.0 }
 0x186   :  { %5931 = vst [vmem:[#allocation45_spill] sm:$0xff] %v4513_v7 }
 0x187   :  { %v4518_v57 = vpop.f32.mrf.mxu1 }
 0x188   :  { %5932 = vst [vmem:[#allocation46_spill] sm:$0xff] %v4518_v57 }
 0x189   :  { %426 = vmatmul.f32.gmra.mxu2 %v4063_v9  ;;  %v4521_v17 = vpop.f32.mrf.mxu0 }
 0x18a   :  { %5933 = vst [vmem:[#allocation47_spill] sm:$0xff] %v4521_v17  ;;  %779 = vmatmul.f32.gmra.mxu3 %v4063_v9  ;;  %1005 = vmatmul.f32.gmra.mxu1 %v4063_v9 }
 0x18c   :  { %v379_v54 = vpop.f32.mrf.mxu2  ;;  %892 = vmatmul.f32.gmra.mxu0 %v4063_v9 }
 0x18d   :  { %v477_v43 = vmax.f32 %v379_v54, 0.0  ;;  %v4526_v11 = vpop.f32.mrf.mxu3 }
 0x18e   :  { %5934 = vst [vmem:[#allocation48_spill] sm:$0xff] %v4526_v11 }
 0x18f   :  { %v4528_v29 = vpack.c.bf16 %v477_v43, %v474_v53  ;;  %v4530_v49 = vpop.f32.mrf.mxu1  ;;  %v1016_v53 = vmax.f32 %v4304_v47, 0.0  ;;  %v1019_v43 = vmax.f32 %v4317_v59, 0.0 }
 0x190   :  { %5936 = vst [vmem:[#allocation50_spill] sm:$0xff] %v4530_v49  ;;  %v436_v49 = vmax.f32 %v4123_v24, 0.0 }
 0x191   :  { %5935 = vst [vmem:[#allocation49_spill] sm:$0xff] %v4528_v29  ;;  %429 = vmatmul.f32.gmra.mxu2 %v4092_v16  ;;  %v4533_v60 = vpop.f32.mrf.mxu0  ;;  %v1015_v29 = vmax.f32 %v4312_v14, 0.0  ;;  %v1112_v11 = vpack.c.bf16 %v1019_v43, %v1016_v53 }
 0x192   :  { %5937 = vst [vmem:[#allocation51_spill] sm:$0xff] %v4533_v60  ;;  %782 = vmatmul.f32.gmra.mxu3 %v4092_v16  ;;  %1008 = vmatmul.f32.gmra.mxu1 %v4092_v16 }
 0x194   :  { %v382_v57 = vpop.f32.mrf.mxu2  ;;  %895 = vmatmul.f32.gmra.mxu0 %v4092_v16  ;;  %v1018_v16 = vmax.f32 %v4325_v20, 0.0 }
 0x195   :  { %v4538_v9 = vpop.f32.mrf.mxu3  ;;  %v480_v47 = vmax.f32 %v382_v57, 0.0 }
 0x196   :  { %5938 = vst [vmem:[#allocation52_spill] sm:$0xff] %v4538_v9  ;;  %v1017_v9 = vmax.f32 %v4299_v56, 0.0  ;;  %v1111_v7 = vpack.c.bf16 %v1018_v16, %v1015_v29 }
 0x197   :  { %v4540_v1 = vpop.f32.mrf.mxu1 }
 0x198   :  { %5939 = vst [vmem:[#allocation53_spill] sm:$0xff] %v4540_v1  ;;  %v439_v1 = vmax.f32 %v4134_v30, 0.0 }
 0x199   :  { %432 = vmatmul.f32.gmra.mxu2 %v4109_v21  ;;  %v4543_v54 = vpop.f32.mrf.mxu0 }
 0x19a   :  { %5940 = vst [vmem:[#allocation54_spill] sm:$0xff] %v4543_v54  ;;  %785 = vmatmul.f32.gmra.mxu3 %v4109_v21  ;;  %1011 = vmatmul.f32.gmra.mxu1 %v4109_v21  ;;  %v1020_v54 = vmax.f32 %v4314_v2, 0.0  ;;  %v532_v24 = vpack.c.bf16 %v439_v1, %v436_v49  ;;  %v1022_v49 = vmax.f32 %v4335_v4, 0.0  ;;  %v445_v1 = vmax.f32 %v4154_v63, 0.0 }
 0x19c   :  { %v385_v60 = vpop.f32.mrf.mxu2  ;;  %898 = vmatmul.f32.gmra.mxu0 %v4109_v21  ;;  %v1113_v17 = vpack.c.bf16 %v1020_v54, %v1017_v9  ;;  %v3457_v21 = vld [vmem:[%s5875_s2 + $0x70] sm:$0xff]  ;;  %v442_v9 = vmax.f32 %v4146_v50, 0.0  ;;  %v1026_v54 = vmax.f32 %v4345_v61, 0.0 }
 0x19d   :  { %v483_v59 = vmax.f32 %v385_v60, 0.0  ;;  %v4556_v40 = vpop.f32.mrf.mxu3  ;;  %1852 = vmatpush.bf16.msrb.mxu2 %v3457_v21  ;;  %v1024_v60 = vmax.f32 %v4353_v13, 0.0 }
 0x19e   :  { %v535_v13 = vpack.c.bf16 %v445_v1, %v442_v9  ;;  %v451_v9 = vmax.f32 %v4177_v18, 0.0  ;;  %v1029_v1 = vmax.f32 %v4357_v37, 0.0  ;;  %v3456_v18 = vld [vmem:[%s5875_s2 + $0x68] sm:$0xff] }
 0x19f   :  { %v4558_v14 = vpack.c.bf16 %v483_v59, %v480_v47  ;;  %v4560_v20 = vpop.f32.mrf.mxu1 }
 0x1a1   :  { %5941 = vst [vmem:[#allocation55_spill] sm:$0xff] %v4558_v14  ;;  %1359 = vmatmul.bf16.vlgmr.msra.gmra.mxu2 %v1111_v7  ;;  %v4562_v30 = vpop.f32.mrf.mxu0  ;;  %v1025_v7 = vmax.f32 %v4348_v32, 0.0 }
 0x1a2   :  { %1448 = vmatmul.bf16.vlgmr.msra.gmra.mxu3 %v1112_v11  ;;  %1770 = vmatmul.bf16.vlgmr.msra.gmra.mxu1 %v532_v24  ;;  %v1021_v11 = vmax.f32 %v4343_v6, 0.0 }
 0x1a3   :  { %v1115_v4 = vpack.c.bf16 %v1025_v7, %v1022_v49  ;;  %v1031_v49 = vmax.f32 %v4373_v26, 0.0  ;;  %v1027_v7 = vmax.f32 %v4368_v34, 0.0  ;;  %1853 = vmatpush.bf16.msrb.mxu2 %v3456_v18  ;;  %v1043_v18 = vmax.f32 %v4429_v44, 0.0 }
 0x1a4   :  { %v388_v56 = vpop.f32.mrf.mxu2  ;;  %1537 = vmatmul.bf16.vlgmr.msra.gmra.mxu0 %v1113_v17  ;;  %v1023_v17 = vmax.f32 %v4329_v52, 0.0  ;;  %v1114_v59 = vpack.c.bf16 %v1024_v60, %v1021_v11  ;;  %v1030_v11 = vmax.f32 %v4381_v8, 0.0  ;;  %v448_v60 = vmax.f32 %v4166_v12, 0.0 }
 0x1a5   :  { %v4567_v2 = vpop.f32.mrf.mxu3  ;;  %v486_v43 = vmax.f32 %v388_v56, 0.0  ;;  %v1028_v56 = vmax.f32 %v4360_v38, 0.0 }
 0x1a6   :  { %v1116_v24 = vpack.c.bf16 %v1026_v54, %v1023_v17  ;;  %v1032_v17 = vmax.f32 %v4370_v31, 0.0  ;;  %v538_v8 = vpack.c.bf16 %v451_v9, %v448_v60  ;;  %v457_v60 = vmax.f32 %v4197_v0, 0.0 }
 0x1a7   :  { %v4569_v29 = vpop.f32.mrf.mxu1  ;;  %v1118_v38 = vpack.c.bf16 %v1031_v49, %v1028_v56  ;;  %v1037_v56 = vmax.f32 %v4404_v48, 0.0  ;;  %v1033_v49 = vmax.f32 %v4399_v39, 0.0  ;;  %v1035_v9 = vmax.f32 %v4385_v62, 0.0 }
 0x1a9   :  { %v4571_v57 = vpop.f32.mrf.mxu0 }
 0x1ac   :  { %v391_v53 = vpop.f32.mrf.mxu2 }
 0x1ad   :  { %v489_v16 = vmax.f32 %v391_v53, 0.0  ;;  %v4581_v47 = vpop.f32.mrf.mxu3 }
 0x1af   :  { %v4583_v32 = vpack.c.bf16 %v489_v16, %v486_v43  ;;  %v4585_v6 = vpop.f32.mrf.mxu1 }
 0x1b1   :  { %5942 = vst [vmem:[#allocation56_spill] sm:$0xff] %v4583_v32  ;;  %1364 = vmatmul.bf16.gmra.mxu2 %v1114_v59  ;;  %v4587_v50 = vpop.f32.mrf.mxu0  ;;  %v1119_v59 = vpack.c.bf16 %v1032_v17, %v1029_v1  ;;  %v1038_v1 = vmax.f32 %v4401_v58, 0.0 }
 0x1b2   :  { %1453 = vmatmul.bf16.gmra.mxu3 %v1115_v4  ;;  %1775 = vmatmul.bf16.gmra.mxu1 %v535_v13  ;;  %v1117_v4 = vpack.c.bf16 %v1030_v11, %v1027_v7  ;;  %v1036_v7 = vmax.f32 %v4409_v28, 0.0  ;;  %v454_v11 = vmax.f32 %v4189_v33, 0.0 }
 0x1b4   :  { %v394_v63 = vpop.f32.mrf.mxu2  ;;  %1542 = vmatmul.bf16.gmra.mxu0 %v1116_v24  ;;  %v541_v28 = vpack.c.bf16 %v457_v60, %v454_v11  ;;  %v1044_v11 = vmax.f32 %v4426_v45, 0.0 }
 0x1b5   :  { %v4589_v52 = vpop.f32.mrf.mxu3  ;;  %v492_v53 = vmax.f32 %v394_v63, 0.0  ;;  %v1034_v63 = vmax.f32 %v4391_v22, 0.0 }
 0x1b7   :  { %v4591_v61 = vpop.f32.mrf.mxu1  ;;  %v1121_v22 = vpack.c.bf16 %v1037_v56, %v1034_v63  ;;  %v1042_v63 = vmax.f32 %v4437_v10, 0.0  ;;  %v460_v56 = vmax.f32 %v4209_v25, 0.0 }
 0x1b9   :  { %v4593_v21 = vpop.f32.mrf.mxu0 }
 0x1bc   :  { %v397_v54 = vpop.f32.mrf.mxu2 }
 0x1bd   :  { %v495_v43 = vmax.f32 %v397_v54, 0.0  ;;  %v4603_v16 = vpop.f32.mrf.mxu3 }
 0x1bf   :  { %v4605_v26 = vpack.c.bf16 %v495_v43, %v492_v53  ;;  %v4607_v34 = vpop.f32.mrf.mxu1 }
 0x1c1   :  { %5943 = vst [vmem:[#allocation57_spill] sm:$0xff] %v4605_v26  ;;  %1369 = vmatmul.bf16.gmra.mxu2 %v1117_v4  ;;  %v4609_v12 = vpop.f32.mrf.mxu0  ;;  %v1122_v4 = vpack.c.bf16 %v1038_v1, %v1035_v9 }
 0x1c2   :  { %1458 = vmatmul.bf16.gmra.mxu3 %v1118_v38  ;;  %1780 = vmatmul.bf16.gmra.mxu1 %v538_v8  ;;  %v1120_v38 = vpack.c.bf16 %v1036_v7, %v1033_v49  ;;  %v463_v49 = vmax.f32 %v4220_v35, 0.0  ;;  %v1041_v7 = vmax.f32 %v4413_v51, 0.0  ;;  %v3455_v35 = vld [vmem:[%s5875_s2 + $0x60] sm:$0xff] }
 0x1c3   :  { %1854 = vmatpush.bf16.msrb.mxu2 %v3455_v35  ;;  %v5948_v35 = vld [vmem:[#allocation45_spill] sm:$0xff] }
 0x1c4   :  { %v400_v37 = vpop.f32.mrf.mxu2  ;;  %1547 = vmatmul.bf16.gmra.mxu0 %v1119_v59  ;;  %v1040_v59 = vmax.f32 %v4416_v23, 0.0  ;;  %v544_v10 = vpack.c.bf16 %v463_v49, %v460_v56  ;;  %v1050_v56 = vmax.f32 %v4469_v3, 0.0 }
 0x1c5   :  { %v4614_v31 = vpop.f32.mrf.mxu3  ;;  %v498_v54 = vmax.f32 %v400_v37, 0.0  ;;  %v1039_v37 = vmax.f32 %v4424_v42, 0.0 }
 0x1c6   :  { %v1124_v23 = vpack.c.bf16 %v1043_v18, %v1040_v59  ;;  %v1048_v59 = vmax.f32 %v4486_v41, 0.0  ;;  %v466_v18 = vmax.f32 %v4232_v46, 0.0 }
 0x1c7   :  { %v4616_v13 = vpop.f32.mrf.mxu1 }
 0x1c9   :  { %v4618_v24 = vpop.f32.mrf.mxu0 }
 0x1cc   :  { %v403_v17 = vpop.f32.mrf.mxu2 }
 0x1cd   :  { %v501_v53 = vmax.f32 %v403_v17, 0.0  ;;  %v4628_v43 = vpop.f32.mrf.mxu3 }
 0x1cf   :  { %v4630_v48 = vpack.c.bf16 %v501_v53, %v498_v54  ;;  %v4632_v39 = vpop.f32.mrf.mxu1  ;;  %v1123_v54 = vpack.c.bf16 %v1042_v63, %v1039_v37  ;;  %v1125_v53 = vpack.c.bf16 %v1044_v11, %v1041_v7  ;;  %v469_v37 = vmax.f32 %v4240_v27, 0.0 }
 0x1d0   :  { %v1047_v63 = vmax.f32 %v4444_v55, 0.0 }
 0x1d1   :  { %5944 = vst [vmem:[#allocation58_spill] sm:$0xff] %v4630_v48  ;;  %1374 = vmatmul.bf16.gmra.mxu2 %v1120_v38  ;;  %v4634_v33 = vpop.f32.mrf.mxu0  ;;  %v547_v41 = vpack.c.bf16 %v469_v37, %v466_v18  ;;  %v5951_v18 = vld [vmem:[#allocation29_spill] sm:$0xff] }
 0x1d2   :  { %1463 = vmatmul.bf16.gmra.mxu3 %v1121_v22  ;;  %1785 = vmatmul.bf16.gmra.mxu1 %v541_v28  ;;  %v1046_v28 = vmax.f32 %v4450_v5, 0.0  ;;  %v475_v37 = vmax.f32 %v5951_v18, 0.0 }
 0x1d4   :  { %v406_v62 = vpop.f32.mrf.mxu2  ;;  %1552 = vmatmul.bf16.gmra.mxu0 %v1122_v4  ;;  %v1049_v4 = vmax.f32 %v4472_v36, 0.0 }
 0x1d5   :  { %v4636_v0 = vpop.f32.mrf.mxu3  ;;  %v504_v9 = vmax.f32 %v406_v62, 0.0  ;;  %v1045_v62 = vmax.f32 %v4461_v15, 0.0 }
 0x1d6   :  { %v1127_v5 = vpack.c.bf16 %v1049_v4, %v1046_v28  ;;  %v5949_v28 = vld [vmem:[#allocation48_spill] sm:$0xff] }
 0x1d7   :  { %v4638_v58 = vpop.f32.mrf.mxu1  ;;  %v1054_v4 = vmax.f32 %v5949_v28, 0.0 }
 0x1d9   :  { %v4640_v8 = vpop.f32.mrf.mxu0 }
 0x1dc   :  { %v409_v60 = vpop.f32.mrf.mxu2 }
 0x1dd   :  { %v507_v1 = vmax.f32 %v409_v60, 0.0  ;;  %v4650_v17 = vpop.f32.mrf.mxu3 }
 0x1df   :  { %v4652_v44 = vpack.c.bf16 %v507_v1, %v504_v9  ;;  %v4654_v42 = vpop.f32.mrf.mxu1  ;;  %v1126_v9 = vpack.c.bf16 %v1048_v59, %v1045_v62  ;;  %v1128_v1 = vpack.c.bf16 %v1050_v56, %v1047_v63  ;;  %v5950_v62 = vld [vmem:[#allocation27_spill] sm:$0xff]  ;;  %v5952_v63 = vld [vmem:[#allocation44_spill] sm:$0xff] }
 0x1e0   :  { %v472_v59 = vmax.f32 %v5950_v62, 0.0  ;;  %v1053_v56 = vmax.f32 %v5952_v63, 0.0  ;;  %v5956_v63 = vld [vmem:[#allocation54_spill] sm:$0xff] }
 0x1e1   :  { %5945 = vst [vmem:[#allocation59_spill] sm:$0xff] %v4652_v44  ;;  %1379 = vmatmul.bf16.gmra.mxu2 %v1123_v54  ;;  %v4656_v25 = vpop.f32.mrf.mxu0  ;;  %v1052_v54 = vmax.f32 %v4502_v19, 0.0 }
 0x1e2   :  { %1468 = vmatmul.bf16.gmra.mxu3 %v1124_v23  ;;  %1790 = vmatmul.bf16.gmra.mxu1 %v544_v10  ;;  %v5947_v10 = vld [vmem:[#allocation47_spill] sm:$0xff]  ;;  %v550_v28 = vpack.c.bf16 %v475_v37, %v472_v59 }
 0x1e3   :  { %v5955_v59 = vld [vmem:[#allocation51_spill] sm:$0xff] }
 0x1e4   :  { %v412_v51 = vpop.f32.mrf.mxu2  ;;  %1557 = vmatmul.bf16.gmra.mxu0 %v1125_v53  ;;  %v1055_v53 = vmax.f32 %v5947_v10, 0.0  ;;  %v1058_v37 = vmax.f32 %v5955_v59, 0.0 }
 0x1e5   :  { %v4661_v45 = vpop.f32.mrf.mxu3  ;;  %v510_v7 = vmax.f32 %v412_v51, 0.0  ;;  %v1051_v51 = vmax.f32 %v5948_v35, 0.0 }
 0x1e6   :  { %v1130_v19 = vpack.c.bf16 %v1055_v53, %v1052_v54 }
 0x1e7   :  { %v4663_v22 = vpop.f32.mrf.mxu1 }
 0x1e9   :  { %v4665_v38 = vpop.f32.mrf.mxu0 }
 0x1ec   :  { %v415_v49 = vpop.f32.mrf.mxu2 }
 0x1ed   :  { %v513_v11 = vmax.f32 %v415_v49, 0.0  ;;  %v4675_v60 = vpop.f32.mrf.mxu3  ;;  %v5953_v49 = vld [vmem:[#allocation46_spill] sm:$0xff] }
 0x1ef   :  { %v4677_v36 = vpack.c.bf16 %v513_v11, %v510_v7  ;;  %v4679_v15 = vpop.f32.mrf.mxu1  ;;  %v1056_v7 = vmax.f32 %v5953_v49, 0.0  ;;  %v5957_v49 = vld [vmem:[#allocation52_spill] sm:$0xff] }
 0x1f1   :  { %5946 = vst [vmem:[#allocation60_spill] sm:$0xff] %v4677_v36  ;;  %1384 = vmatmul.bf16.gmra.mxu2 %v1126_v9  ;;  %v4681_v46 = vpop.f32.mrf.mxu0  ;;  %v1131_v36 = vpack.c.bf16 %v1056_v7, %v1053_v56  ;;  %v1061_v56 = vmax.f32 %v5956_v63, 0.0  ;;  %v1057_v7 = vmax.f32 %v5957_v49, 0.0 }
 0x1f2   :  { %1473 = vmatmul.bf16.gmra.mxu3 %v1127_v5  ;;  %1795 = vmatmul.bf16.gmra.mxu1 %v547_v41 }
 0x1f3   :  { %v1133_v59 = vpack.c.bf16 %v1061_v56, %v1058_v37  ;;  %v1064_v37 = vmax.f32 %v4562_v30, 0.0  ;;  %v1067_v56 = vmax.f32 %v4571_v57, 0.0 }
 0x1f4   :  { %v418_v55 = vpop.f32.mrf.mxu2  ;;  %1562 = vmatmul.bf16.gmra.mxu0 %v1128_v1  ;;  %v1129_v1 = vpack.c.bf16 %v1054_v4, %v1051_v51  ;;  %v3466_v51 = vld [vmem:[%s5875_s2 + $0xb8] sm:$0xff] }
 0x1f5   :  { %v4683_v3 = vpop.f32.mrf.mxu3  ;;  %v516_v5 = vmax.f32 %v418_v55, 0.0  ;;  %v3454_v55 = vld [vmem:[%s5875_s2 + $0x58] sm:$0xff]  ;;  %1940 = vmatpush.bf16.msrb.mxu3 %v3466_v51 }
 0x1f6   :  { %1855 = vmatpush.bf16.msrb.mxu2 %v3454_v55  ;;  %v5961_v55 = vld [vmem:[#allocation53_spill] sm:$0xff] }
 0x1f7   :  { %v4685_v27 = vpop.f32.mrf.mxu1 }
 0x1f9   :  { %v4687_v23 = vpop.f32.mrf.mxu0 }
 0x1fc   :  { %v421_v11 = vpop.f32.mrf.mxu2 }
 0x1fd   :  { %v519_v9 = vmax.f32 %v421_v11, 0.0  ;;  %v4697_v41 = vpop.f32.mrf.mxu3  ;;  %v5958_v11 = vld [vmem:[#allocation33_spill] sm:$0xff] }
 0x1ff   :  { %v4699_v10 = vpack.c.bf16 %v519_v9, %v516_v5  ;;  %v4701_v35 = vpop.f32.mrf.mxu1  ;;  %v478_v5 = vmax.f32 %v5958_v11, 0.0  ;;  %v5959_v9 = vld [vmem:[#allocation35_spill] sm:$0xff] }
 0x200   :  { %v2074_v11 = vld [vmem:[%s5873_s1 + $0x468] sm:$0xff] }
 0x201   :  { %5954 = vst [vmem:[#allocation47_spill] sm:$0xff] %v4699_v10  ;;  %1389 = vmatmul.bf16.gmra.mxu2 %v1129_v1  ;;  %v4703_v62 = vpop.f32.mrf.mxu0  ;;  %v5960_v1 = vld [vmem:[#allocation50_spill] sm:$0xff]  ;;  %v1062_v10 = vmax.f32 %v5961_v55, 0.0  ;;  %2077 = vmatpush.msrb.mxu0 %v2074_v11 }
 0x202   :  { %1478 = vmatmul.bf16.gmra.mxu3 %v1130_v19  ;;  %1800 = vmatmul.bf16.gmra.mxu1 %v550_v28  ;;  %v481_v19 = vmax.f32 %v5959_v9, 0.0  ;;  %v1059_v28 = vmax.f32 %v5960_v1, 0.0 }
 0x204   :  { %v424_v18 = vpop.f32.mrf.mxu2  ;;  %1567 = vmatmul.bf16.gmra.mxu0 %v1131_v36  ;;  %v1060_v36 = vmax.f32 %v4556_v40, 0.0  ;;  %v553_v40 = vpack.c.bf16 %v481_v19, %v478_v5  ;;  %v1134_v14 = vpack.c.bf16 %v1062_v10, %v1059_v28  ;;  %v1065_v5 = vmax.f32 %v4560_v20, 0.0  ;;  %v5962_v20 = vld [vmem:[#allocation4_spill] sm:$0xff] }
 0x205   :  { %v4708_v54 = vpop.f32.mrf.mxu3  ;;  %v522_v48 = vmax.f32 %v424_v18, 0.0  ;;  %v1068_v19 = vmax.f32 %v4569_v29, 0.0  ;;  %v3453_v29 = vld [vmem:[%s5875_s2 + $0x50] sm:$0xff] }
 0x206   :  { %v1132_v63 = vpack.c.bf16 %v1060_v36, %v1057_v7  ;;  %v1063_v7 = vmax.f32 %v4567_v2, 0.0  ;;  %v1066_v36 = vmax.f32 %v4581_v47, 0.0  ;;  %v2071_v2 = vld [vmem:[%s5873_s1 + $0x420] sm:$0xff]  ;;  %v2072_v47 = vld [vmem:[%s5873_s1 + $0x428] sm:$0xff]  ;;  %1856 = vmatpush.bf16.msrb.mxu2 %v3453_v29 }
 0x207   :  { %v4710_v53 = vpop.f32.mrf.mxu1  ;;  %v1137_v11 = vpack.c.bf16 %v1068_v19, %v1065_v5  ;;  %2078 = vmatpush.msrb.mxu0 %v2071_v2  ;;  %v1070_v19 = vmax.f32 %v4587_v50, 0.0 }
 0x209   :  { %v4715_v4 = vpop.f32.mrf.mxu0 }
 0x20c   :  { %v427_v44 = vpop.f32.mrf.mxu2 }
 0x20d   :  { %v525_v26 = vmax.f32 %v427_v44, 0.0  ;;  %v4725_v32 = vpop.f32.mrf.mxu3  ;;  %v2075_v44 = vld [vmem:[%s5873_s1 + $0x470] sm:$0xff] }
 0x20e   :  { %2190 = vmatpush.msrb.mxu1 %v2075_v44 }
 0x20f   :  { %v4727_v51 = vpack.c.bf16 %v525_v26, %v522_v48  ;;  %v4729_v49 = vpop.f32.mrf.mxu1 }
 0x210   :  { %2191 = vmatpush.msrb.mxu1 %v2072_v47 }
 0x211   :  { %1394 = vmatmul.bf16.gmra.mxu2 %v1132_v63  ;;  %v4734_v9 = vpop.f32.mrf.mxu0  ;;  %v1135_v63 = vpack.c.bf16 %v1066_v36, %v1063_v7  ;;  %v3465_v36 = vld [vmem:[%s5875_s2 + $0xb0] sm:$0xff] }
 0x212   :  { %1483 = vmatmul.bf16.gmra.mxu3 %v1133_v59  ;;  %1805 = vmatmul.bf16.gmra.mxu1 %v553_v40  ;;  %v1136_v59 = vpack.c.bf16 %v1067_v56, %v1064_v37 }
 0x213   :  { %1941 = vmatpush.bf16.msrb.mxu3 %v3465_v36 }
 0x214   :  { %v430_v26 = vpop.f32.mrf.mxu2  ;;  %1572 = vmatmul.bf16.gmra.mxu0 %v1134_v14 }
 0x215   :  { %v4739_v48 = vpop.f32.mrf.mxu3  ;;  %v528_v14 = vmax.f32 %v430_v26, 0.0 }
 0x217   :  { %v4741_v10 = vpop.f32.mrf.mxu1 }
 0x219   :  { %v4743_v18 = vpop.f32.mrf.mxu0 }
 0x21c   :  { %v433_v1 = vpop.f32.mrf.mxu2 }
 0x21d   :  { %v531_v28 = vmax.f32 %v433_v1, 0.0  ;;  %v4751_v55 = vpop.f32.mrf.mxu3  ;;  %v1073_v1 = vmax.f32 %v4593_v21, 0.0  ;;  %v2068_v21 = vld [vmem:[%s5873_s1 + $0x3d8] sm:$0xff] }
 0x21e   :  { %2079 = vmatpush.msrb.mxu0 %v2068_v21 }
 0x21f   :  { %v4753_v40 = vpack.c.bf16 %v531_v28, %v528_v14  ;;  %v1771_v30 = vpop.f32.mrf.mxu1  ;;  %v1069_v28 = vmax.f32 %v4589_v52, 0.0 }
 0x221   :  { %1399 = vmatmul.bf16.gmra.mxu2 %v1135_v63  ;;  %v1538_v57 = vpop.f32.mrf.mxu0  ;;  %v1071_v63 = vmax.f32 %v4585_v6, 0.0  ;;  %v2069_v6 = vld [vmem:[%s5873_s1 + $0x3e0] sm:$0xff] }
 0x222   :  { %1488 = vmatmul.bf16.gmra.mxu3 %v1136_v59  ;;  %1810 = vmatmul.bf16.gmra.mxu1 %v5962_v20  ;;  %v1072_v59 = vmax.f32 %v4603_v16, 0.0  ;;  %v1139_v20 = vpack.c.bf16 %v1073_v1, %v1070_v19  ;;  %v5963_v16 = vld [vmem:[#allocation8_spill] sm:$0xff]  ;;  %v1076_v1 = vmax.f32 %v4609_v12, 0.0 }
 0x223   :  { %2192 = vmatpush.msrb.mxu1 %v2069_v6  ;;  %v2065_v12 = vld [vmem:[%s5873_s1 + $0x390] sm:$0xff] }
 0x224   :  { %v1360_v44 = vpop.f32.mrf.mxu2  ;;  %1577 = vmatmul.bf16.gmra.mxu0 %v1137_v11  ;;  %v1074_v11 = vmax.f32 %v4591_v61, 0.0  ;;  %v1138_v47 = vpack.c.bf16 %v1072_v59, %v1069_v28  ;;  %v1079_v28 = vmax.f32 %v4618_v24, 0.0 }
 0x225   :  { %v1449_v26 = vpop.f32.mrf.mxu3  ;;  %2080 = vmatpush.msrb.mxu0 %v2065_v12 }
 0x226   :  { %v1450_v37 = vadd.f32 %v1449_v26, %v1360_v44  ;;  %v1140_v50 = vpack.c.bf16 %v1074_v11, %v1071_v63  ;;  %v1075_v63 = vmax.f32 %v4614_v31, 0.0  ;;  %v1078_v11 = vmax.f32 %v4628_v43, 0.0  ;;  %v5964_v31 = vld [vmem:[#allocation12_spill] sm:$0xff] }
 0x227   :  { %v1773_v56 = vpop.f32.mrf.mxu1 }
 0x228   :  { %v1539_v7 = vadd.f32 %v1538_v57, %v1450_v37 }
 0x229   :  { %v1540_v5 = vpop.f32.mrf.mxu0 }
 0x22a   :  { %v4770_v14 = vadd.f32 %v1771_v30, %v1539_v7 }
 0x22c   :  { %v1362_v2 = vpop.f32.mrf.mxu2 }
 0x22d   :  { %v1451_v57 = vpop.f32.mrf.mxu3 }
 0x22e   :  { %v1452_v29 = vadd.f32 %v1451_v57, %v1362_v2  ;;  %v1080_v2 = vmax.f32 %v4616_v13, 0.0  ;;  %v2066_v13 = vld [vmem:[%s5873_s1 + $0x398] sm:$0xff] }
 0x22f   :  { %v1776_v44 = vpop.f32.mrf.mxu1  ;;  %2193 = vmatpush.msrb.mxu1 %v2066_v13  ;;  %v1088_v13 = vmax.f32 %v4656_v25, 0.0  ;;  %v2059_v25 = vld [vmem:[%s5873_s1 + $0x300] sm:$0xff] }
 0x230   :  { %v1541_v26 = vadd.f32 %v1540_v5, %v1452_v29  ;;  %v1142_v29 = vpack.c.bf16 %v1079_v28, %v1076_v1  ;;  %v1081_v1 = vmax.f32 %v4636_v0, 0.0  ;;  %v1084_v28 = vmax.f32 %v4650_v17, 0.0  ;;  %v5965_v17 = vld [vmem:[#allocation16_spill] sm:$0xff] }
 0x231   :  { %1404 = vmatmul.bf16.gmra.mxu2 %v1138_v47  ;;  %v1543_v52 = vpop.f32.mrf.mxu0 }
 0x232   :  { %1493 = vmatmul.bf16.gmra.mxu3 %v1139_v20  ;;  %1815 = vmatmul.bf16.gmra.mxu1 %v5963_v16  ;;  %v4783_v61 = vadd.f32 %v1773_v56, %v1541_v26  ;;  %v1077_v56 = vmax.f32 %v4607_v34, 0.0  ;;  %v3452_v34 = vld [vmem:[%s5875_s2 + $0x48] sm:$0xff] }
 0x233   :  { %1857 = vmatpush.bf16.msrb.mxu2 %v3452_v34 }
 0x234   :  { %v1365_v30 = vpop.f32.mrf.mxu2  ;;  %1582 = vmatmul.bf16.gmra.mxu0 %v1140_v50  ;;  %v1141_v50 = vpack.c.bf16 %v1078_v11, %v1075_v63  ;;  %v1143_v26 = vpack.c.bf16 %v1080_v2, %v1077_v56  ;;  %v1083_v63 = vmax.f32 %v4632_v39, 0.0  ;;  %v1086_v11 = vmax.f32 %v4638_v58, 0.0  ;;  %v2063_v39 = vld [vmem:[%s5873_s1 + $0x350] sm:$0xff] }
 0x235   :  { %v1454_v37 = vpop.f32.mrf.mxu3  ;;  %2194 = vmatpush.msrb.mxu1 %v2063_v39  ;;  %v1095_v39 = vmax.f32 %v4679_v15, 0.0  ;;  %v3462_v15 = vld [vmem:[%s5875_s2 + $0x98] sm:$0xff] }
 0x236   :  { %v1455_v7 = vadd.f32 %v1454_v37, %v1365_v30  ;;  %v3464_v37 = vld [vmem:[%s5875_s2 + $0xa8] sm:$0xff] }
 0x237   :  { %v1778_v5 = vpop.f32.mrf.mxu1  ;;  %1942 = vmatpush.bf16.msrb.mxu3 %v3464_v37  ;;  %v1092_v37 = vmax.f32 %v4663_v22, 0.0  ;;  %v2060_v22 = vld [vmem:[%s5873_s1 + $0x308] sm:$0xff] }
 0x238   :  { %v1544_v36 = vadd.f32 %v1543_v52, %v1455_v7  ;;  %2195 = vmatpush.msrb.mxu1 %v2060_v22 }
 0x239   :  { %v1545_v19 = vpop.f32.mrf.mxu0 }
 0x23a   :  { %v4787_v59 = vadd.f32 %v1776_v44, %v1544_v36  ;;  %v1082_v36 = vmax.f32 %v4634_v33, 0.0  ;;  %v1146_v33 = vpack.c.bf16 %v1086_v11, %v1083_v63 }
 0x23c   :  { %v1367_v57 = vpop.f32.mrf.mxu2 }
 0x23d   :  { %v1456_v20 = vpop.f32.mrf.mxu3 }
 0x23e   :  { %v1457_v47 = vadd.f32 %v1456_v20, %v1367_v57 }
 0x23f   :  { %v1781_v44 = vpop.f32.mrf.mxu1 }
 0x240   :  { %v1546_v21 = vadd.f32 %v1545_v19, %v1457_v47  ;;  %v1085_v19 = vmax.f32 %v4640_v8, 0.0  ;;  %v1144_v47 = vpack.c.bf16 %v1084_v28, %v1081_v1  ;;  %v2062_v8 = vld [vmem:[%s5873_s1 + $0x348] sm:$0xff] }
 0x241   :  { %1409 = vmatmul.bf16.gmra.mxu2 %v1141_v50  ;;  %v1548_v24 = vpop.f32.mrf.mxu0  ;;  %2081 = vmatpush.msrb.mxu0 %v2062_v8  ;;  %v1097_v8 = vmax.f32 %v4687_v23, 0.0  ;;  %v2057_v23 = vld [vmem:[%s5873_s1 + $0x2c0] sm:$0xff] }
 0x242   :  { %1498 = vmatmul.bf16.gmra.mxu3 %v1142_v29  ;;  %1820 = vmatmul.bf16.gmra.mxu1 %v5964_v31  ;;  %v4803_v43 = vadd.f32 %v1778_v5, %v1546_v21  ;;  %v1145_v20 = vpack.c.bf16 %v1085_v19, %v1082_v36 }
 0x243   :  { %2082 = vmatpush.msrb.mxu0 %v2059_v25  ;;  %2196 = vmatpush.msrb.mxu1 %v2057_v23  ;;  %v1101_v25 = vmax.f32 %v4701_v35, 0.0 }
 0x244   :  { %v1370_v52 = vpop.f32.mrf.mxu2  ;;  %1587 = vmatmul.bf16.gmra.mxu0 %v1143_v26 }
 0x245   :  { %v1459_v16 = vpop.f32.mrf.mxu3 }
 0x246   :  { %v1460_v6 = vadd.f32 %v1459_v16, %v1370_v52  ;;  %v1087_v16 = vmax.f32 %v4661_v45, 0.0 }
 0x247   :  { %v1783_v2 = vpop.f32.mrf.mxu1 }
 0x248   :  { %v1549_v30 = vadd.f32 %v1548_v24, %v1460_v6  ;;  %v1090_v6 = vmax.f32 %v4675_v60, 0.0  ;;  %v5966_v60 = vld [vmem:[#allocation20_spill] sm:$0xff] }
 0x249   :  { %v1550_v7 = vpop.f32.mrf.mxu0 }
 0x24a   :  { %v4810_v5 = vadd.f32 %v1781_v44, %v1549_v30  ;;  %v1091_v44 = vmax.f32 %v4665_v38, 0.0  ;;  %v1089_v30 = vmax.f32 %v4654_v42, 0.0  ;;  %v1147_v28 = vpack.c.bf16 %v1090_v6, %v1087_v16  ;;  %v3451_v42 = vld [vmem:[%s5875_s2 + $0x40] sm:$0xff]  ;;  %v3461_v6 = vld [vmem:[%s5875_s2 + $0x90] sm:$0xff] }
 0x24b   :  { %1858 = vmatpush.bf16.msrb.mxu2 %v3451_v42 }
 0x24c   :  { %v1372_v56 = vpop.f32.mrf.mxu2  ;;  %v1148_v19 = vpack.c.bf16 %v1091_v44, %v1088_v13  ;;  %v1149_v63 = vpack.c.bf16 %v1092_v37, %v1089_v30 }
 0x24d   :  { %v1461_v57 = vpop.f32.mrf.mxu3 }
 0x24e   :  { %v1462_v29 = vadd.f32 %v1461_v57, %v1372_v56 }
 0x24f   :  { %v1786_v24 = vpop.f32.mrf.mxu1 }
 0x250   :  { %v1551_v50 = vadd.f32 %v1550_v7, %v1462_v29 }
 0x251   :  { %1414 = vmatmul.bf16.gmra.mxu2 %v1144_v47  ;;  %v1553_v0 = vpop.f32.mrf.mxu0  ;;  %v3463_v47 = vld [vmem:[%s5875_s2 + $0xa0] sm:$0xff] }
 0x252   :  { %1503 = vmatmul.bf16.gmra.mxu3 %v1145_v20  ;;  %1825 = vmatmul.bf16.gmra.mxu1 %v5965_v17  ;;  %v4823_v58 = vadd.f32 %v1783_v2, %v1551_v50  ;;  %v1094_v50 = vmax.f32 %v4681_v46, 0.0  ;;  %v1096_v17 = vmax.f32 %v4697_v41, 0.0  ;;  %v2056_v46 = vld [vmem:[%s5873_s1 + $0x2b8] sm:$0xff] }
 0x253   :  { %1943 = vmatpush.bf16.msrb.mxu3 %v3463_v47  ;;  %2083 = vmatpush.msrb.mxu0 %v2056_v46  ;;  %v2054_v47 = vld [vmem:[%s5873_s1 + $0x278] sm:$0xff]  ;;  %v1105_v46 = vmax.f32 %v4739_v48, 0.0 }
 0x254   :  { %v1375_v26 = vpop.f32.mrf.mxu2  ;;  %1592 = vmatmul.bf16.gmra.mxu0 %v1146_v33  ;;  %2197 = vmatpush.msrb.mxu1 %v2054_v47  ;;  %v4958_v47 = vld [vmem:[%s5874_s0] sm:$0xff] }
 0x255   :  { %v1464_v21 = vpop.f32.mrf.mxu3 }
 0x256   :  { %v1465_v12 = vadd.f32 %v1464_v21, %v1375_v26  ;;  %v1098_v26 = vmax.f32 %v4685_v27, 0.0  ;;  %v5967_v27 = vld [vmem:[#allocation24_spill] sm:$0xff] }
 0x257   :  { %v1788_v38 = vpop.f32.mrf.mxu1  ;;  %1944 = vmatpush.bf16.msrb.mxu3 %v3462_v15  ;;  %v1107_v15 = vmax.f32 %v4729_v49, 0.0  ;;  %v2051_v49 = vld [vmem:[%s5873_s1 + $0x230] sm:$0xff] }
 0x258   :  { %v1554_v31 = vadd.f32 %v1553_v0, %v1465_v12  ;;  %v1093_v0 = vmax.f32 %v4683_v3, 0.0  ;;  %v1152_v13 = vpack.c.bf16 %v1098_v26, %v1095_v39  ;;  %v2035_v26 = vld [vmem:[%s5873_s1 + $0xc0] sm:$0xff]  ;;  %2198 = vmatpush.msrb.mxu1 %v2051_v49 }
 0x259   :  { %v1555_v34 = vpop.f32.mrf.mxu0 }
 0x25a   :  { %v4827_v52 = vadd.f32 %v1786_v24, %v1554_v31  ;;  %v1151_v24 = vpack.c.bf16 %v1097_v8, %v1094_v50  ;;  %v2041_v50 = vld [vmem:[%s5873_s1 + $0x150] sm:$0xff] }
 0x25b   :  { %1945 = vmatpush.bf16.msrb.mxu3 %v3461_v6 }
 0x25c   :  { %v1377_v7 = vpop.f32.mrf.mxu2 }
 0x25d   :  { %v1466_v36 = vpop.f32.mrf.mxu3 }
 0x25e   :  { %v1467_v1 = vadd.f32 %v1466_v36, %v1377_v7  ;;  %v3460_v7 = vld [vmem:[%s5875_s2 + $0x88] sm:$0xff]  ;;  %v2053_v36 = vld [vmem:[%s5873_s1 + $0x270] sm:$0xff] }
 0x25f   :  { %2084 = vmatpush.msrb.mxu0 %v2053_v36  ;;  %1946 = vmatpush.bf16.msrb.mxu3 %v3460_v7  ;;  %v4931_v7 = vpop.f32.mrf.mxu1 }
 0x260   :  { %v1556_v11 = vadd.f32 %v1555_v34, %v1467_v1  ;;  %v1150_v34 = vpack.c.bf16 %v1096_v17, %v1093_v0  ;;  %v1100_v1 = vmax.f32 %v4703_v62, 0.0  ;;  %v3459_v62 = vld [vmem:[%s5875_s2 + $0x80] sm:$0xff]  ;;  %v2038_v0 = vld [vmem:[%s5873_s1 + $0x108] sm:$0xff] }
 0x261   :  { %1419 = vmatmul.bf16.gmra.mxu2 %v1147_v28  ;;  %v1558_v45 = vpop.f32.mrf.mxu0  ;;  %v1103_v28 = vmax.f32 %v4715_v4, 0.0 }
 0x262   :  { %1508 = vmatmul.bf16.gmra.mxu3 %v1148_v19  ;;  %1830 = vmatmul.bf16.gmra.mxu1 %v5966_v60  ;;  %v4843_v56 = vadd.f32 %v1788_v38, %v1556_v11  ;;  %v1102_v11 = vmax.f32 %v4725_v32, 0.0  ;;  %v1104_v38 = vmax.f32 %v4710_v53, 0.0  ;;  %v2050_v60 = vld [vmem:[%s5873_s1 + $0x228] sm:$0xff]  ;;  %v2047_v32 = vld [vmem:[%s5873_s1 + $0x1e0] sm:$0xff] }
 0x263   :  { %2085 = vmatpush.msrb.mxu0 %v2050_v60  ;;  %v1154_v4 = vpack.c.bf16 %v1103_v28, %v1100_v1  ;;  %1947 = vmatpush.bf16.msrb.mxu3 %v3459_v62 }
 0x264   :  { %v1380_v2 = vpop.f32.mrf.mxu2  ;;  %1597 = vmatmul.bf16.gmra.mxu0 %v1149_v63  ;;  %v1099_v63 = vmax.f32 %v4708_v54, 0.0  ;;  %v1155_v53 = vpack.c.bf16 %v1104_v38, %v1101_v25  ;;  %v5971_v38 = vld [vmem:[#allocation3_spill] sm:$0xff] }
 0x265   :  { %v1469_v57 = vpop.f32.mrf.mxu3  ;;  %2086 = vmatpush.msrb.mxu0 %v2047_v32 }
 0x266   :  { %v1470_v20 = vadd.f32 %v1469_v57, %v1380_v2  ;;  %v1153_v35 = vpack.c.bf16 %v1102_v11, %v1099_v63  ;;  %v2044_v2 = vld [vmem:[%s5873_s1 + $0x198] sm:$0xff]  ;;  %v5970_v11 = vld [vmem:[#allocation2_spill] sm:$0xff] }
 0x267   :  { %2087 = vmatpush.msrb.mxu0 %v2044_v2  ;;  %v437_v25 = vmax.f32 %v5970_v11, 0.0  ;;  %v4944_v60 = vpop.f32.mrf.mxu1  ;;  %v2048_v2 = vld [vmem:[%s5873_s1 + $0x1e8] sm:$0xff] }
 0x268   :  { %v4845_v29 = vadd.f32 %v1558_v45, %v1470_v20  ;;  %v5968_v20 = vld [vmem:[#allocation30_spill] sm:$0xff]  ;;  %2199 = vmatpush.msrb.mxu1 %v2048_v2  ;;  %v2064_v2 = vld [vmem:[%s5873_s1 + $0x358] sm:$0xff] }
 0x269   :  { %v1560_v33 = vpop.f32.mrf.mxu0  ;;  %2088 = vmatpush.msrb.mxu0 %v2041_v50 }
 0x26b   :  { %2089 = vmatpush.msrb.mxu0 %v2038_v0 }
 0x26c   :  { %v1382_v21 = vpop.f32.mrf.mxu2 }
 0x26d   :  { %v1471_v12 = vpop.f32.mrf.mxu3  ;;  %2090 = vmatpush.msrb.mxu0 %v2035_v26 }
 0x26e   :  { %v1472_v31 = vadd.f32 %v1471_v12, %v1382_v21  ;;  %v2032_v12 = vld [vmem:[%s5873_s1 + $0x78] sm:$0xff] }
 0x26f   :  { %2091 = vmatpush.msrb.mxu0 %v2032_v12  ;;  %v5974_v12 = vld [vmem:[#allocation7_spill] sm:$0xff] }
 0x270   :  { %v4856_v44 = vadd.f32 %v1560_v33, %v1472_v31  ;;  %v2076_v33 = vld [vmem:[%s5873_s1 + $0x478] sm:$0xff]  ;;  %v1106_v31 = vmax.f32 %v4734_v9, 0.0 }
 0x271   :  { %1424 = vmatmul.bf16.gmra.mxu2 %v1150_v34  ;;  %v1563_v3 = vpop.f32.mrf.mxu0  ;;  %v1109_v34 = vmax.f32 %v4743_v18, 0.0 }
 0x272   :  { %1513 = vmatmul.bf16.gmra.mxu3 %v1151_v24  ;;  %1835 = vmatmul.bf16.gmra.mxu1 %v5967_v27  ;;  %v1110_v27 = vmax.f32 %v4741_v10, 0.0  ;;  %v2073_v10 = vld [vmem:[%s5873_s1 + $0x430] sm:$0xff] }
 0x273   :  { %2303 = vmatpush.msra.mxu2 %v2076_v33  ;;  %v4961_v33 = vpop.f32.mrf.mxu1 }
 0x274   :  { %v1385_v41 = vpop.f32.mrf.mxu2  ;;  %1602 = vmatmul.bf16.gmra.mxu0 %v1152_v13  ;;  %v2029_v13 = vld [vmem:[%s5873_s1 + $0x30] sm:$0xff]  ;;  %v1158_v18 = vpack.c.bf16 %v1110_v27, %v1107_v15 }
 0x275   :  { %v1474_v16 = vpop.f32.mrf.mxu3  ;;  %2092 = vmatpush.msrb.mxu0 %v2029_v13  ;;  %2304 = vmatpush.msra.mxu2 %v2073_v10 }
 0x276   :  { %v1475_v30 = vadd.f32 %v1474_v16, %v1385_v41  ;;  %v1157_v16 = vpack.c.bf16 %v1109_v34, %v1106_v31  ;;  %v4970_v34 = vld [vmem:[%s5874_s0 + $0x8] sm:$0xff] }
 0x278   :  { %v4871_v37 = vadd.f32 %v1563_v3, %v1475_v30  ;;  %v1108_v3 = vmax.f32 %v4751_v55, 0.0  ;;  %v5969_v55 = vld [vmem:[#allocation36_spill] sm:$0xff] }
 0x279   :  { %v1565_v19 = vpop.f32.mrf.mxu0 }
 0x27a   :  { %v1156_v6 = vpack.c.bf16 %v1108_v3, %v1105_v46 }
 0x27b   :  { %v4973_v15 = vpop.f32.mrf.mxu1 }
 0x27c   :  { %v1387_v45 = vpop.f32.mrf.mxu2 }
 0x27d   :  { %v1476_v42 = vpop.f32.mrf.mxu3 }
 0x27e   :  { %v1477_v54 = vadd.f32 %v1476_v42, %v1387_v45  ;;  %v440_v45 = vmax.f32 %v5971_v38, 0.0  ;;  %v4999_v38 = vld [vmem:[%s5874_s0 + $0x18] sm:$0xff] }
 0x280   :  { %v4894_v22 = vadd.f32 %v1565_v19, %v1477_v54  ;;  %v533_v54 = vpack.c.bf16 %v440_v45, %v437_v25 }
 0x281   :  { %1429 = vmatmul.bf16.gmra.mxu2 %v1153_v35  ;;  %v1568_v57 = vpop.f32.mrf.mxu0 }
 0x282   :  { %1518 = vmatmul.bf16.gmra.mxu3 %v1154_v4  ;;  %1840 = vmatmul.bf16.gmra.mxu1 %v5968_v20 }
 0x283   :  { %v4992_v10 = vpop.f32.mrf.mxu1 }
 0x284   :  { %v1390_v8 = vpop.f32.mrf.mxu2  ;;  %1607 = vmatmul.bf16.gmra.mxu0 %v1155_v53  ;;  %v5972_v53 = vld [vmem:[#allocation38_spill] sm:$0xff] }
 0x285   :  { %v1479_v17 = vpop.f32.mrf.mxu3 }
 0x286   :  { %v1480_v39 = vadd.f32 %v1479_v17, %v1390_v8 }
 0x288   :  { %v4915_v21 = vadd.f32 %v1568_v57, %v1480_v39  ;;  %v2070_v57 = vld [vmem:[%s5873_s1 + $0x3e8] sm:$0xff]  ;;  %v5973_v39 = vld [vmem:[#allocation5_spill] sm:$0xff] }
 0x289   :  { %v1570_v24 = vpop.f32.mrf.mxu0  ;;  %2305 = vmatpush.msra.mxu2 %v2070_v57  ;;  %v443_v26 = vmax.f32 %v5973_v39, 0.0 }
 0x28b   :  { %v5011_v57 = vpop.f32.mrf.mxu1 }
 0x28c   :  { %v1392_v23 = vpop.f32.mrf.mxu2 }
 0x28d   :  { %v1481_v41 = vpop.f32.mrf.mxu3 }
 0x28e   :  { %v1482_v9 = vadd.f32 %v1481_v41, %v1392_v23  ;;  %v5975_v41 = vld [vmem:[#allocation39_spill] sm:$0xff] }
 0x290   :  { %v4929_v30 = vadd.f32 %v1570_v24, %v1482_v9  ;;  %v446_v24 = vmax.f32 %v5974_v12, 0.0  ;;  %v2067_v9 = vld [vmem:[%s5873_s1 + $0x3a0] sm:$0xff]  ;;  %v5979_v12 = vld [vmem:[#allocation13_spill] sm:$0xff] }
 0x291   :  { %1434 = vmatmul.bf16.gmra.mxu2 %v1156_v6  ;;  %v1573_v48 = vpop.f32.mrf.mxu0 }
 0x292   :  { %1523 = vmatmul.bf16.gmra.mxu3 %v1157_v16  ;;  %1845 = vmatmul.bf16.gmra.mxu1 %v5969_v55  ;;  %v536_v3 = vpack.c.bf16 %v446_v24, %v443_v26  ;;  %v2045_v16 = vld [vmem:[%s5873_s1 + $0x1a0] sm:$0xff]  ;;  %v455_v24 = vmax.f32 %v5979_v12, 0.0 }
 0x293   :  { %2200 = vmatpush.msrb.mxu1 %v2045_v16  ;;  %2306 = vmatpush.msra.mxu2 %v2067_v9 }
 0x294   :  { %v1395_v36 = vpop.f32.mrf.mxu2  ;;  %1612 = vmatmul.bf16.gmra.mxu0 %v1158_v18  ;;  %v4987_v18 = vld [vmem:[%s5874_s0 + $0x10] sm:$0xff] }
 0x295   :  { %v1484_v19 = vpop.f32.mrf.mxu3  ;;  %2307 = vmatpush.msra.mxu2 %v2064_v2 }
 0x296   :  { %v1485_v1 = vadd.f32 %v1484_v19, %v1395_v36  ;;  %v5976_v19 = vld [vmem:[#allocation9_spill] sm:$0xff] }
 0x298   :  { %v4940_v28 = vadd.f32 %v1573_v48, %v1485_v1  ;;  %v449_v1 = vmax.f32 %v5976_v19, 0.0  ;;  %v2061_v19 = vld [vmem:[%s5873_s1 + $0x310] sm:$0xff] }
 0x299   :  { %v1575_v63 = vpop.f32.mrf.mxu0  ;;  %2308 = vmatpush.msra.mxu2 %v2061_v19 }
 0x29c   :  { %v1397_v42 = vpop.f32.mrf.mxu2 }
 0x29d   :  { %v1486_v62 = vpop.f32.mrf.mxu3 }
 0x29e   :  { %v1487_v4 = vadd.f32 %v1486_v62, %v1397_v42 }
 0x2a0   :  { %v4946_v32 = vadd.f32 %v1575_v63, %v1487_v4  ;;  %v5977_v63 = vld [vmem:[#allocation11_spill] sm:$0xff] }
 0x2a1   :  { %1859 = vmatmul.bf16.vlgmr.msrb.gmra.mxu2 %v533_v54  ;;  %v1578_v35 = vpop.f32.mrf.mxu0  ;;  %v452_v11 = vmax.f32 %v5977_v63, 0.0  ;;  %v5043_v63 = vld [vmem:[%s5874_s0 + $0x30] sm:$0xff] }
 0x2a2   :  { %1948 = vmatmul.bf16.vlgmr.msrb.gmra.mxu3 %v5972_v53  ;;  %v2042_v53 = vld [vmem:[%s5873_s1 + $0x158] sm:$0xff]  ;;  %5983 = vst [vmem:[#allocation48_spill] sm:$0xff] %v5043_v63 }
 0x2a3   :  { %v539_v62 = vpack.c.bf16 %v452_v11, %v449_v1  ;;  %2201 = vmatpush.msrb.mxu1 %v2042_v53  ;;  %v5986_v53 = vld [vmem:[#allocation19_spill] sm:$0xff] }
 0x2a4   :  { %v1400_v20 = vpop.f32.mrf.mxu2  ;;  %2093 = vmatmul.f32.vlgmr.msrb.gmra.mxu0 %v4958_v47  ;;  %v464_v2 = vmax.f32 %v5986_v53, 0.0 }
 0x2a5   :  { %v1489_v50 = vpop.f32.mrf.mxu3 }
 0x2a6   :  { %v1490_v8 = vadd.f32 %v1489_v50, %v1400_v20  ;;  %v5016_v50 = vld [vmem:[%s5874_s0 + $0x20] sm:$0xff] }
 0x2a8   :  { %v4963_v0 = vadd.f32 %v1578_v35, %v1490_v8  ;;  %v5978_v35 = vld [vmem:[#allocation40_spill] sm:$0xff] }
 0x2a9   :  { %v1580_v17 = vpop.f32.mrf.mxu0 }
 0x2ac   :  { %v1402_v31 = vpop.f32.mrf.mxu2  ;;  %2096 = vmatmul.f32.gmra.mxu0 %v4970_v34 }
 0x2ad   :  { %v1491_v13 = vpop.f32.mrf.mxu3 }
 0x2ae   :  { %v1492_v46 = vadd.f32 %v1491_v13, %v1402_v31  ;;  %v5980_v31 = vld [vmem:[#allocation15_spill] sm:$0xff] }
 0x2af   :  { %v458_v13 = vmax.f32 %v5980_v31, 0.0 }
 0x2b0   :  { %v4975_v27 = vadd.f32 %v1580_v17, %v1492_v46 }
 0x2b1   :  { %1864 = vmatmul.bf16.gmra.mxu2 %v536_v3  ;;  %v1583_v23 = vpop.f32.mrf.mxu0  ;;  %v5026_v3 = vld [vmem:[%s5874_s0 + $0x28] sm:$0xff]  ;;  %v542_v9 = vpack.c.bf16 %v458_v13, %v455_v24 }
 0x2b2   :  { %1953 = vmatmul.bf16.gmra.mxu3 %v5975_v41 }
 0x2b4   :  { %v1405_v6 = vpop.f32.mrf.mxu2  ;;  %2099 = vmatmul.f32.gmra.mxu0 %v4987_v18 }
 0x2b5   :  { %v1494_v48 = vpop.f32.mrf.mxu3 }
 0x2b6   :  { %v1495_v55 = vadd.f32 %v1494_v48, %v1405_v6 }
 0x2b8   :  { %v4990_v49 = vadd.f32 %v1583_v23, %v1495_v55  ;;  %v5029_v23 = vpop.f32.mrf.mxu1  ;;  %v5982_v55 = vld [vmem:[#allocation41_spill] sm:$0xff] }
 0x2b9   :  { %v1585_v36 = vpop.f32.mrf.mxu0 }
 0x2bc   :  { %v1407_v25 = vpop.f32.mrf.mxu2  ;;  %2102 = vmatmul.f32.gmra.mxu0 %v4999_v38 }
 0x2bd   :  { %v1496_v45 = vpop.f32.mrf.mxu3 }
 0x2be   :  { %v1497_v42 = vadd.f32 %v1496_v45, %v1407_v25 }
 0x2c0   :  { %v5002_v4 = vadd.f32 %v1585_v36, %v1497_v42  ;;  %v2039_v36 = vld [vmem:[%s5873_s1 + $0x110] sm:$0xff]  ;;  %v5046_v45 = vpop.f32.mrf.mxu1 }
 0x2c1   :  { %1869 = vmatmul.bf16.gmra.mxu2 %v539_v62  ;;  %v1588_v54 = vpop.f32.mrf.mxu0  ;;  %2202 = vmatpush.msrb.mxu1 %v2039_v36 }
 0x2c2   :  { %1958 = vmatmul.bf16.gmra.mxu3 %v5978_v35 }
 0x2c4   :  { %v1410_v20 = vpop.f32.mrf.mxu2  ;;  %2105 = vmatmul.f32.gmra.mxu0 %v5016_v50 }
 0x2c5   :  { %v1499_v8 = vpop.f32.mrf.mxu3 }
 0x2c6   :  { %v1500_v17 = vadd.f32 %v1499_v8, %v1410_v20  ;;  %v5055_v8 = vld [vmem:[%s5874_s0 + $0x38] sm:$0xff] }
 0x2c7   :  { %5987 = vst [vmem:[#allocation29_spill] sm:$0xff] %v5055_v8 }
 0x2c8   :  { %v5019_v39 = vadd.f32 %v1588_v54, %v1500_v17  ;;  %v5985_v54 = vld [vmem:[#allocation17_spill] sm:$0xff]  ;;  %v5060_v31 = vpop.f32.mrf.mxu1 }
 0x2c9   :  { %v1590_v26 = vpop.f32.mrf.mxu0  ;;  %v461_v35 = vmax.f32 %v5985_v54, 0.0 }
 0x2cb   :  { %v545_v12 = vpack.c.bf16 %v464_v2, %v461_v35  ;;  %v5084_v2 = vld [vmem:[%s5874_s0 + $0x48] sm:$0xff] }
 0x2cc   :  { %v1412_v46 = vpop.f32.mrf.mxu2  ;;  %2108 = vmatmul.f32.gmra.mxu0 %v5026_v3  ;;  %5994 = vst [vmem:[#allocation54_spill] sm:$0xff] %v5084_v2 }
 0x2cd   :  { %v1501_v41 = vpop.f32.mrf.mxu3 }
 0x2ce   :  { %v1502_v16 = vadd.f32 %v1501_v41, %v1412_v46  ;;  %v5989_v46 = vld [vmem:[#allocation42_spill] sm:$0xff]  ;;  %v2036_v41 = vld [vmem:[%s5873_s1 + $0xc8] sm:$0xff] }
 0x2cf   :  { %2203 = vmatpush.msrb.mxu1 %v2036_v41  ;;  %v2033_v41 = vld [vmem:[%s5873_s1 + $0x80] sm:$0xff] }
 0x2d0   :  { %v5031_v6 = vadd.f32 %v1590_v26, %v1502_v16  ;;  %v2058_v16 = vld [vmem:[%s5873_s1 + $0x2c8] sm:$0xff]  ;;  %v5079_v35 = vpop.f32.mrf.mxu1 }
 0x2d1   :  { %1874 = vmatmul.bf16.gmra.mxu2 %v542_v9  ;;  %v1593_v48 = vpop.f32.mrf.mxu0  ;;  %2204 = vmatpush.msrb.mxu1 %v2033_v41 }
 0x2d2   :  { %5981 = vst [vmem:[#allocation45_spill] sm:$0xff] %v5031_v6  ;;  %1963 = vmatmul.bf16.gmra.mxu3 %v5982_v55  ;;  %2309 = vmatpush.msra.mxu2 %v2058_v16  ;;  %v2055_v16 = vld [vmem:[%s5873_s1 + $0x280] sm:$0xff]  ;;  %v6022_v6 = vld [vmem:[#allocation57_spill] sm:$0xff] }
 0x2d4   :  { %v1415_v1 = vpop.f32.mrf.mxu2  ;;  %2111 = vmatmul.f32.gmra.mxu0 %v5043_v63  ;;  %2310 = vmatpush.msra.mxu2 %v2055_v16 }
 0x2d5   :  { %v1504_v11 = vpop.f32.mrf.mxu3 }
 0x2d6   :  { %v1505_v25 = vadd.f32 %v1504_v11, %v1415_v1  ;;  %v5992_v11 = vld [vmem:[#allocation21_spill] sm:$0xff] }
 0x2d8   :  { %v5048_v42 = vadd.f32 %v1593_v48, %v1505_v25  ;;  %v5072_v48 = vld [vmem:[%s5874_s0 + $0x40] sm:$0xff]  ;;  %v467_v25 = vmax.f32 %v5992_v11, 0.0 }
 0x2d9   :  { %v1595_v62 = vpop.f32.mrf.mxu0  ;;  %5990 = vst [vmem:[#allocation46_spill] sm:$0xff] %v5072_v48 }
 0x2da   :  { %5984 = vst [vmem:[#allocation27_spill] sm:$0xff] %v5048_v42 }
 0x2dc   :  { %v1417_v20 = vpop.f32.mrf.mxu2  ;;  %2114 = vmatmul.f32.gmra.mxu0 %v5055_v8 }
 0x2dd   :  { %v1506_v17 = vpop.f32.mrf.mxu3 }
 0x2de   :  { %v1507_v26 = vadd.f32 %v1506_v17, %v1417_v20 }
 0x2e0   :  { %v5058_v24 = vadd.f32 %v1595_v62, %v1507_v26  ;;  %v5993_v62 = vld [vmem:[#allocation23_spill] sm:$0xff] }
 0x2e1   :  { %1879 = vmatmul.bf16.gmra.mxu2 %v545_v12  ;;  %v1598_v13 = vpop.f32.mrf.mxu0  ;;  %v470_v54 = vmax.f32 %v5993_v62, 0.0 }
 0x2e2   :  { %5988 = vst [vmem:[#allocation44_spill] sm:$0xff] %v5058_v24  ;;  %1968 = vmatmul.bf16.gmra.mxu3 %v5989_v46  ;;  %v5996_v46 = vld [vmem:[#allocation43_spill] sm:$0xff]  ;;  %v2049_v24 = vld [vmem:[%s5873_s1 + $0x1f0] sm:$0xff] }
 0x2e3   :  { %v548_v26 = vpack.c.bf16 %v470_v54, %v467_v25  ;;  %v5999_v54 = vld [vmem:[#allocation25_spill] sm:$0xff] }
 0x2e4   :  { %v1420_v9 = vpop.f32.mrf.mxu2  ;;  %2117 = vmatmul.f32.gmra.mxu0 %v5072_v48 }
 0x2e5   :  { %v1509_v55 = vpop.f32.mrf.mxu3 }
 0x2e6   :  { %v1510_v36 = vadd.f32 %v1509_v55, %v1420_v9  ;;  %v5099_v55 = vld [vmem:[%s5874_s0 + $0x50] sm:$0xff] }
 0x2e7   :  { %5997 = vst [vmem:[#allocation33_spill] sm:$0xff] %v5099_v55 }
 0x2e8   :  { %v5075_v19 = vadd.f32 %v1598_v13, %v1510_v36  ;;  %v5102_v36 = vpop.f32.mrf.mxu1 }
 0x2e9   :  { %v1600_v1 = vpop.f32.mrf.mxu0 }
 0x2ea   :  { %5991 = vst [vmem:[#allocation51_spill] sm:$0xff] %v5075_v19 }
 0x2ec   :  { %v1422_v53 = vpop.f32.mrf.mxu2  ;;  %2120 = vmatmul.f32.gmra.mxu0 %v5084_v2 }
 0x2ed   :  { %v1511_v20 = vpop.f32.mrf.mxu3 }
 0x2ee   :  { %v1512_v17 = vadd.f32 %v1511_v20, %v1422_v53  ;;  %v473_v53 = vmax.f32 %v5999_v54, 0.0  ;;  %v6000_v20 = vld [vmem:[#allocation28_spill] sm:$0xff]  ;;  %v2052_v54 = vld [vmem:[%s5873_s1 + $0x238] sm:$0xff] }
 0x2ef   :  { %2311 = vmatpush.msra.mxu2 %v2052_v54  ;;  %v6006_v54 = vld [vmem:[#allocation34_spill] sm:$0xff] }
 0x2f0   :  { %v5087_v12 = vadd.f32 %v1600_v1, %v1512_v17  ;;  %v476_v17 = vmax.f32 %v6000_v20, 0.0  ;;  %v5114_v19 = vpop.f32.mrf.mxu1 }
 0x2f1   :  { %1884 = vmatmul.bf16.gmra.mxu2 %v548_v26  ;;  %v1603_v13 = vpop.f32.mrf.mxu0 }
 0x2f2   :  { %5995 = vst [vmem:[#allocation52_spill] sm:$0xff] %v5087_v12  ;;  %1973 = vmatmul.bf16.gmra.mxu3 %v5996_v46  ;;  %v5111_v46 = vld [vmem:[%s5874_s0 + $0x58] sm:$0xff]  ;;  %v551_v12 = vpack.c.bf16 %v476_v17, %v473_v53  ;;  %2312 = vmatpush.msra.mxu2 %v2049_v24 }
 0x2f3   :  { %6001 = vst [vmem:[#allocation50_spill] sm:$0xff] %v5111_v46  ;;  %v3498_v17 = vld [vmem:[%s5875_s2 + $0x1b8] sm:$0xff] }
 0x2f4   :  { %v1425_v9 = vpop.f32.mrf.mxu2  ;;  %2123 = vmatmul.f32.gmra.mxu0 %v5099_v55  ;;  %2752 = vmatpush.bf16.msra.mxu3 %v3498_v17  ;;  %v3506_v17 = vld [vmem:[%s5875_s2 + $0x1f8] sm:$0xff] }
 0x2f5   :  { %v1514_v1 = vpop.f32.mrf.mxu3  ;;  %2841 = vmatpush.bf16.msra.mxu0 %v3506_v17  ;;  %v5175_v24 = vld [vmem:[%s5874_s0 + $0x78] sm:$0xff] }
 0x2f6   :  { %v1515_v11 = vadd.f32 %v1514_v1, %v1425_v9  ;;  %v2030_v9 = vld [vmem:[%s5873_s1 + $0x38] sm:$0xff] }
 0x2f7   :  { %2205 = vmatpush.msrb.mxu1 %v2030_v9  ;;  %v6005_v9 = vld [vmem:[#allocation31_spill] sm:$0xff] }
 0x2f8   :  { %v5104_v25 = vadd.f32 %v1603_v13, %v1515_v11  ;;  %v6003_v11 = vld [vmem:[#allocation49_spill] sm:$0xff]  ;;  %2206 = vmatmul.f32.vlgmr.msrb.gmra.mxu1 %v4958_v47 }
 0x2f9   :  { %v1605_v62 = vpop.f32.mrf.mxu0 }
 0x2fa   :  { %5998 = vst [vmem:[#allocation35_spill] sm:$0xff] %v5104_v25 }
 0x2fc   :  { %v1427_v26 = vpop.f32.mrf.mxu2  ;;  %2126 = vmatmul.f32.gmra.mxu0 %v5111_v46 }
 0x2fd   :  { %v1516_v41 = vpop.f32.mrf.mxu3 }
 0x2fe   :  { %v1517_v16 = vadd.f32 %v1516_v41, %v1427_v26  ;;  %v5137_v41 = vpop.f32.mrf.mxu1 }
 0x300   :  { %v5116_v13 = vadd.f32 %v1605_v62, %v1517_v16  ;;  %v5129_v62 = vld [vmem:[%s5874_s0 + $0x60] sm:$0xff]  ;;  %2209 = vmatmul.f32.gmra.mxu1 %v4970_v34 }
 0x301   :  { %1889 = vmatmul.bf16.gmra.mxu2 %v551_v12  ;;  %v1608_v1 = vpop.f32.mrf.mxu0 }
 0x302   :  { %6002 = vst [vmem:[#allocation53_spill] sm:$0xff] %v5116_v13  ;;  %1978 = vmatmul.bf16.gmra.mxu3 %v6003_v11  ;;  %v479_v11 = vmax.f32 %v6005_v9, 0.0  ;;  %v482_v13 = vmax.f32 %v6006_v54, 0.0  ;;  %v6008_v54 = vld [vmem:[#allocation55_spill] sm:$0xff] }
 0x304   :  { %v1430_v53 = vpop.f32.mrf.mxu2  ;;  %2129 = vmatmul.f32.gmra.mxu0 %v5129_v62 }
 0x305   :  { %v1519_v12 = vpop.f32.mrf.mxu3 }
 0x306   :  { %v1520_v20 = vadd.f32 %v1519_v12, %v1430_v53  ;;  %v5145_v53 = vld [vmem:[%s5874_s0 + $0x68] sm:$0xff] }
 0x308   :  { %v5135_v26 = vadd.f32 %v1608_v1, %v1520_v20  ;;  %v554_v20 = vpack.c.bf16 %v482_v13, %v479_v11  ;;  %2212 = vmatmul.f32.gmra.mxu1 %v4987_v18  ;;  %v5161_v13 = vpop.f32.mrf.mxu1  ;;  %v5166_v11 = vld [vmem:[%s5874_s0 + $0x70] sm:$0xff] }
 0x309   :  { %v1610_v16 = vpop.f32.mrf.mxu0  ;;  %6009 = vst [vmem:[#allocation12_spill] sm:$0xff] %v5161_v13 }
 0x30a   :  { %6004 = vst [vmem:[#allocation4_spill] sm:$0xff] %v5135_v26 }
 0x30b   :  { %6010 = vst [vmem:[#allocation16_spill] sm:$0xff] %v5166_v11 }
 0x30c   :  { %v1432_v25 = vpop.f32.mrf.mxu2  ;;  %2132 = vmatmul.f32.gmra.mxu0 %v5145_v53 }
 0x30d   :  { %v1521_v1 = vpop.f32.mrf.mxu3 }
 0x30e   :  { %v1522_v12 = vadd.f32 %v1521_v1, %v1432_v25  ;;  %v3514_v25 = vld [vmem:[%s5875_s2 + $0x238] sm:$0xff] }
 0x30f   :  { %2930 = vmatpush.bf16.msra.mxu1 %v3514_v25 }
 0x310   :  { %v5151_v26 = vadd.f32 %v1610_v16, %v1522_v12  ;;  %2215 = vmatmul.f32.gmra.mxu1 %v4999_v38 }
 0x311   :  { %1894 = vmatmul.bf16.gmra.mxu2 %v554_v20  ;;  %v1613_v9 = vpop.f32.mrf.mxu0 }
 0x312   :  { %6007 = vst [vmem:[#allocation8_spill] sm:$0xff] %v5151_v26  ;;  %1983 = vmatmul.bf16.gmra.mxu3 %v6008_v54  ;;  %v5178_v26 = vpop.f32.mrf.mxu1 }
 0x313   :  { %6012 = vst [vmem:[#allocation24_spill] sm:$0xff] %v5178_v26  ;;  %v5210_v26 = vld [vmem:[%s5874_s0 + $0x88] sm:$0xff] }
 0x314   :  { %v1435_v16 = vpop.f32.mrf.mxu2  ;;  %2135 = vmatmul.f32.gmra.mxu0 %v5166_v11  ;;  %6018 = vst [vmem:[#allocation3_spill] sm:$0xff] %v5210_v26 }
 0x315   :  { %v1524_v1 = vpop.f32.mrf.mxu3 }
 0x316   :  { %v1525_v12 = vadd.f32 %v1524_v1, %v1435_v16  ;;  %v6014_v16 = vld [vmem:[#allocation6_spill] sm:$0xff]  ;;  %v6015_v1 = vld [vmem:[#allocation56_spill] sm:$0xff] }
 0x318   :  { %v5169_v20 = vadd.f32 %v1613_v9, %v1525_v12  ;;  %2218 = vmatmul.f32.gmra.mxu1 %v5016_v50  ;;  %v2046_v12 = vld [vmem:[%s5873_s1 + $0x1a8] sm:$0xff] }
 0x319   :  { %v1615_v17 = vpop.f32.mrf.mxu0  ;;  %2313 = vmatpush.msra.mxu2 %v2046_v12 }
 0x31a   :  { %6011 = vst [vmem:[#allocation20_spill] sm:$0xff] %v5169_v20 }
 0x31c   :  { %v1437_v54 = vpop.f32.mrf.mxu2  ;;  %2138 = vmatmul.f32.gmra.mxu0 %v5175_v24 }
 0x31d   :  { %v1526_v42 = vpop.f32.mrf.mxu3 }
 0x31e   :  { %v1527_v13 = vadd.f32 %v1526_v42, %v1437_v54  ;;  %v5193_v42 = vld [vmem:[%s5874_s0 + $0x80] sm:$0xff]  ;;  %v5197_v54 = vpop.f32.mrf.mxu1 }
 0x31f   :  { %6016 = vst [vmem:[#allocation36_spill] sm:$0xff] %v5197_v54 }
 0x320   :  { %v5180_v25 = vadd.f32 %v1615_v17, %v1527_v13  ;;  %2221 = vmatmul.f32.gmra.mxu1 %v5026_v3 }
 0x321   :  { %1899 = vmatmul.bf16.gmra.mxu2 %v6014_v16  ;;  %v5183_v9 = vpop.f32.mrf.mxu0 }
 0x322   :  { %6013 = vst [vmem:[#allocation30_spill] sm:$0xff] %v5180_v25  ;;  %1988 = vmatmul.bf16.gmra.mxu3 %v6015_v1  ;;  %v3497_v1 = vld [vmem:[%s5875_s2 + $0x1b0] sm:$0xff] }
 0x323   :  { %2753 = vmatpush.bf16.msra.mxu3 %v3497_v1 }
 0x324   :  { %v1860_v20 = vpop.f32.mrf.mxu2  ;;  %2141 = vmatmul.f32.gmra.mxu0 %v5193_v42 }
 0x325   :  { %v1861_v13 = vadd.f32 %v1860_v20, %v4770_v14  ;;  %v1949_v17 = vpop.f32.mrf.mxu3 }
 0x326   :  { %v5219_v1 = vpop.f32.mrf.mxu1 }
 0x327   :  { %v5199_v16 = vadd.f32 %v1949_v17, %v1861_v13  ;;  %v3505_v17 = vld [vmem:[%s5875_s2 + $0x1f0] sm:$0xff]  ;;  %6020 = vst [vmem:[#allocation5_spill] sm:$0xff] %v5219_v1 }
 0x328   :  { %2842 = vmatpush.bf16.msra.mxu0 %v3505_v17  ;;  %2224 = vmatmul.f32.gmra.mxu1 %v5043_v63  ;;  %v5249_v63 = vld [vmem:[%s5874_s0 + $0x98] sm:$0xff] }
 0x329   :  { %6017 = vst [vmem:[#allocation2_spill] sm:$0xff] %v5199_v16  ;;  %v5204_v12 = vpop.f32.mrf.mxu0  ;;  %v6021_v16 = vld [vmem:[#allocation10_spill] sm:$0xff] }
 0x32a   :  { %6026 = vst [vmem:[#allocation11_spill] sm:$0xff] %v5249_v63 }
 0x32c   :  { %v1862_v25 = vpop.f32.mrf.mxu2  ;;  %2144 = vmatmul.f32.gmra.mxu0 %v5210_v26 }
 0x32d   :  { %v1863_v14 = vadd.f32 %v1862_v25, %v4783_v61  ;;  %v1951_v20 = vpop.f32.mrf.mxu3  ;;  %v2043_v61 = vld [vmem:[%s5873_s1 + $0x160] sm:$0xff]  ;;  %v3513_v25 = vld [vmem:[%s5875_s2 + $0x230] sm:$0xff] }
 0x32e   :  { %2314 = vmatpush.msra.mxu2 %v2043_v61  ;;  %2931 = vmatpush.bf16.msra.mxu1 %v3513_v25  ;;  %v5244_v1 = vpop.f32.mrf.mxu1 }
 0x32f   :  { %v5214_v13 = vadd.f32 %v1951_v20, %v1863_v14  ;;  %6025 = vst [vmem:[#allocation9_spill] sm:$0xff] %v5244_v1  ;;  %v2040_v1 = vld [vmem:[%s5873_s1 + $0x118] sm:$0xff] }
 0x330   :  { %2227 = vmatmul.f32.gmra.mxu1 %v5055_v8  ;;  %2315 = vmatpush.msra.mxu2 %v2040_v1 }
 0x331   :  { %6019 = vst [vmem:[#allocation38_spill] sm:$0xff] %v5214_v13  ;;  %1904 = vmatmul.bf16.gmra.mxu2 %v6021_v16  ;;  %v5222_v54 = vpop.f32.mrf.mxu0  ;;  %v5235_v16 = vld [vmem:[%s5874_s0 + $0x90] sm:$0xff] }
 0x332   :  { %1993 = vmatmul.bf16.gmra.mxu3 %v6022_v6  ;;  %6023 = vst [vmem:[#allocation7_spill] sm:$0xff] %v5235_v16 }
 0x334   :  { %v1865_v14 = vpop.f32.mrf.mxu2  ;;  %2147 = vmatmul.f32.gmra.mxu0 %v5235_v16 }
 0x335   :  { %v1866_v6 = vadd.f32 %v1865_v14, %v4787_v59  ;;  %v1954_v20 = vpop.f32.mrf.mxu3 }
 0x337   :  { %v5239_v17 = vadd.f32 %v1954_v20, %v1866_v6  ;;  %v6028_v6 = vld [vmem:[#allocation14_spill] sm:$0xff] }
 0x338   :  { %2230 = vmatmul.f32.gmra.mxu1 %v5072_v48  ;;  %v5283_v48 = vld [vmem:[%s5874_s0 + $0xa8] sm:$0xff] }
 0x339   :  { %6024 = vst [vmem:[#allocation39_spill] sm:$0xff] %v5239_v17  ;;  %v5241_v13 = vpop.f32.mrf.mxu0  ;;  %v6029_v17 = vld [vmem:[#allocation58_spill] sm:$0xff] }
 0x33c   :  { %v1867_v61 = vpop.f32.mrf.mxu2  ;;  %2150 = vmatmul.f32.gmra.mxu0 %v5249_v63 }
 0x33d   :  { %v1868_v25 = vadd.f32 %v1867_v61, %v4803_v43  ;;  %v1956_v59 = vpop.f32.mrf.mxu3  ;;  %v5266_v43 = vld [vmem:[%s5874_s0 + $0xa0] sm:$0xff]  ;;  %v5269_v61 = vpop.f32.mrf.mxu1 }
 0x33e   :  { %6030 = vst [vmem:[#allocation13_spill] sm:$0xff] %v5269_v61 }
 0x33f   :  { %v5253_v14 = vadd.f32 %v1956_v59, %v1868_v25 }
 0x340   :  { %2233 = vmatmul.f32.gmra.mxu1 %v5084_v2  ;;  %v6035_v2 = vld [vmem:[#allocation59_spill] sm:$0xff] }
 0x341   :  { %6027 = vst [vmem:[#allocation40_spill] sm:$0xff] %v5253_v14  ;;  %1909 = vmatmul.bf16.gmra.mxu2 %v6028_v6  ;;  %v5256_v20 = vpop.f32.mrf.mxu0  ;;  %v3496_v6 = vld [vmem:[%s5875_s2 + $0x1a8] sm:$0xff] }
 0x342   :  { %1998 = vmatmul.bf16.gmra.mxu3 %v6029_v17 }
 0x343   :  { %2754 = vmatpush.bf16.msra.mxu3 %v3496_v6  ;;  %v3504_v6 = vld [vmem:[%s5875_s2 + $0x1e8] sm:$0xff] }
 0x344   :  { %v1870_v8 = vpop.f32.mrf.mxu2  ;;  %2153 = vmatmul.f32.gmra.mxu0 %v5266_v43 }
 0x345   :  { %v1871_v25 = vadd.f32 %v1870_v8, %v4810_v5  ;;  %v1959_v17 = vpop.f32.mrf.mxu3  ;;  %2843 = vmatpush.bf16.msra.mxu0 %v3504_v6 }
 0x347   :  { %v5272_v59 = vadd.f32 %v1959_v17, %v1871_v25  ;;  %v5287_v25 = vpop.f32.mrf.mxu1 }
 0x348   :  { %6032 = vst [vmem:[#allocation41_spill] sm:$0xff] %v5287_v25  ;;  %2236 = vmatmul.f32.gmra.mxu1 %v5099_v55  ;;  %v5322_v55 = vld [vmem:[%s5874_s0 + $0xb8] sm:$0xff] }
 0x349   :  { %6031 = vst [vmem:[#allocation15_spill] sm:$0xff] %v5272_v59  ;;  %v5277_v1 = vpop.f32.mrf.mxu0  ;;  %v6034_v59 = vld [vmem:[#allocation18_spill] sm:$0xff] }
 0x34c   :  { %v1872_v14 = vpop.f32.mrf.mxu2  ;;  %2156 = vmatmul.f32.gmra.mxu0 %v5283_v48 }
 0x34d   :  { %v1873_v5 = vadd.f32 %v1872_v14, %v4823_v58  ;;  %v1961_v8 = vpop.f32.mrf.mxu3  ;;  %v2037_v58 = vld [vmem:[%s5873_s1 + $0xd0] sm:$0xff]  ;;  %v3512_v14 = vld [vmem:[%s5875_s2 + $0x228] sm:$0xff] }
 0x34e   :  { %2316 = vmatpush.msra.mxu2 %v2037_v58  ;;  %2932 = vmatpush.bf16.msra.mxu1 %v3512_v14 }
 0x34f   :  { %v5289_v17 = vadd.f32 %v1961_v8, %v1873_v5 }
 0x350   :  { %2239 = vmatmul.f32.gmra.mxu1 %v5111_v46 }
 0x351   :  { %6033 = vst [vmem:[#allocation17_spill] sm:$0xff] %v5289_v17  ;;  %1914 = vmatmul.bf16.gmra.mxu2 %v6034_v59  ;;  %v5295_v61 = vpop.f32.mrf.mxu0  ;;  %v5308_v59 = vld [vmem:[%s5874_s0 + $0xb0] sm:$0xff]  ;;  %v5314_v17 = vpop.f32.mrf.mxu1 }
 0x352   :  { %2003 = vmatmul.bf16.gmra.mxu3 %v6035_v2  ;;  %6037 = vst [vmem:[#allocation42_spill] sm:$0xff] %v5314_v17  ;;  %v2034_v17 = vld [vmem:[%s5873_s1 + $0x88] sm:$0xff] }
 0x353   :  { %2317 = vmatpush.msra.mxu2 %v2034_v17  ;;  %v5359_v17 = vld [vmem:[%s5874_s0 + $0xc8] sm:$0xff] }
 0x354   :  { %v1875_v5 = vpop.f32.mrf.mxu2  ;;  %2159 = vmatmul.f32.gmra.mxu0 %v5308_v59 }
 0x355   :  { %v1876_v2 = vadd.f32 %v1875_v5, %v4827_v52  ;;  %v1964_v8 = vpop.f32.mrf.mxu3 }
 0x357   :  { %v5312_v6 = vadd.f32 %v1964_v8, %v1876_v2  ;;  %v6039_v2 = vld [vmem:[#allocation22_spill] sm:$0xff] }
 0x358   :  { %2242 = vmatmul.f32.gmra.mxu1 %v5129_v62 }
 0x359   :  { %6036 = vst [vmem:[#allocation19_spill] sm:$0xff] %v5312_v6  ;;  %v5316_v25 = vpop.f32.mrf.mxu0  ;;  %v6040_v6 = vld [vmem:[#allocation60_spill] sm:$0xff]  ;;  %v5336_v46 = vpop.f32.mrf.mxu1 }
 0x35a   :  { %6041 = vst [vmem:[#allocation23_spill] sm:$0xff] %v5336_v46 }
 0x35c   :  { %v1877_v58 = vpop.f32.mrf.mxu2  ;;  %2162 = vmatmul.f32.gmra.mxu0 %v5322_v55 }
 0x35d   :  { %v1878_v14 = vadd.f32 %v1877_v58, %v4843_v56  ;;  %v1966_v52 = vpop.f32.mrf.mxu3  ;;  %v1792_v56 = vadd.f32 %v4931_v7, %v4845_v29  ;;  %v1794_v29 = vadd.f32 %v4944_v60, %v4856_v44  ;;  %v6046_v60 = vld [vmem:[#allocation47_spill] sm:$0xff] }
 0x35f   :  { %v5326_v5 = vadd.f32 %v1966_v52, %v1878_v14  ;;  %v5343_v14 = vld [vmem:[%s5874_s0 + $0xc0] sm:$0xff] }
 0x360   :  { %2245 = vmatmul.f32.gmra.mxu1 %v5145_v53 }
 0x361   :  { %6038 = vst [vmem:[#allocation21_spill] sm:$0xff] %v5326_v5  ;;  %1919 = vmatmul.bf16.gmra.mxu2 %v6039_v2  ;;  %v5329_v8 = vpop.f32.mrf.mxu0  ;;  %v3495_v5 = vld [vmem:[%s5875_s2 + $0x1a0] sm:$0xff] }
 0x362   :  { %2008 = vmatmul.bf16.gmra.mxu3 %v6040_v6 }
 0x363   :  { %2755 = vmatpush.bf16.msra.mxu3 %v3495_v5  ;;  %v3503_v5 = vld [vmem:[%s5875_s2 + $0x1e0] sm:$0xff] }
 0x364   :  { %v1880_v58 = vpop.f32.mrf.mxu2  ;;  %2165 = vmatmul.f32.gmra.mxu0 %v5343_v14 }
 0x365   :  { %v1881_v6 = vadd.f32 %v1880_v58, %v1792_v56  ;;  %v1969_v52 = vpop.f32.mrf.mxu3  ;;  %v5362_v56 = vpop.f32.mrf.mxu1  ;;  %2844 = vmatpush.bf16.msra.mxu0 %v3503_v5 }
 0x366   :  { %6043 = vst [vmem:[#allocation25_spill] sm:$0xff] %v5362_v56 }
 0x367   :  { %v5346_v2 = vadd.f32 %v1969_v52, %v1881_v6 }
 0x368   :  { %2248 = vmatmul.f32.gmra.mxu1 %v5166_v11 }
 0x369   :  { %6042 = vst [vmem:[#allocation43_spill] sm:$0xff] %v5346_v2  ;;  %v5351_v46 = vpop.f32.mrf.mxu0  ;;  %v6045_v2 = vld [vmem:[#allocation26_spill] sm:$0xff] }
 0x36c   :  { %v1882_v7 = vpop.f32.mrf.mxu2  ;;  %2168 = vmatmul.f32.gmra.mxu0 %v5359_v17 }
 0x36d   :  { %v1883_v58 = vadd.f32 %v1882_v7, %v1794_v29  ;;  %v1971_v6 = vpop.f32.mrf.mxu3  ;;  %v2031_v29 = vld [vmem:[%s5873_s1 + $0x40] sm:$0xff]  ;;  %v5391_v56 = vpop.f32.mrf.mxu1 }
 0x36e   :  { %v3511_v7 = vld [vmem:[%s5875_s2 + $0x220] sm:$0xff]  ;;  %2318 = vmatpush.msra.mxu2 %v2031_v29  ;;  %6047 = vst [vmem:[#allocation49_spill] sm:$0xff] %v5391_v56  ;;  %v1799_v29 = vadd.f32 %v4973_v15, %v4894_v22  ;;  %v3492_v22 = vld [vmem:[%s5875_s2 + $0x188] sm:$0xff] }
 0x36f   :  { %v5364_v52 = vadd.f32 %v1971_v6, %v1883_v58  ;;  %v1797_v58 = vadd.f32 %v4961_v33, %v4871_v37  ;;  %v5385_v6 = vld [vmem:[%s5874_s0 + $0xd0] sm:$0xff]  ;;  %2933 = vmatpush.bf16.msra.mxu1 %v3511_v7  ;;  %v3502_v7 = vld [vmem:[%s5875_s2 + $0x1d8] sm:$0xff] }
 0x370   :  { %v3493_v37 = vld [vmem:[%s5875_s2 + $0x190] sm:$0xff]  ;;  %2251 = vmatmul.f32.gmra.mxu1 %v5175_v24  ;;  %2845 = vmatpush.bf16.msra.mxu0 %v3502_v7  ;;  %v1802_v7 = vadd.f32 %v4992_v10, %v4915_v21  ;;  %v3499_v21 = vld [vmem:[%s5875_s2 + $0x1c0] sm:$0xff] }
 0x371   :  { %6044 = vst [vmem:[#allocation28_spill] sm:$0xff] %v5364_v52  ;;  %1924 = vmatmul.bf16.gmra.mxu2 %v6045_v2  ;;  %v5370_v44 = vpop.f32.mrf.mxu0  ;;  %v3494_v52 = vld [vmem:[%s5875_s2 + $0x198] sm:$0xff] }
 0x372   :  { %2013 = vmatmul.bf16.gmra.mxu3 %v6046_v60 }
 0x373   :  { %2756 = vmatpush.bf16.msra.mxu3 %v3494_v52  ;;  %v5409_v52 = vld [vmem:[%s5874_s0 + $0xd8] sm:$0xff] }
 0x374   :  { %v1885_v2 = vpop.f32.mrf.mxu2  ;;  %2171 = vmatmul.f32.gmra.mxu0 %v5385_v6 }
 0x375   :  { %v1886_v5 = vadd.f32 %v1885_v2, %v1797_v58  ;;  %v1974_v60 = vpop.f32.mrf.mxu3 }
 0x377   :  { %v5393_v11 = vadd.f32 %v1974_v60, %v1886_v5  ;;  %2757 = vmatpush.bf16.msra.mxu3 %v3493_v37  ;;  %v2207_v60 = vpop.f32.mrf.mxu1  ;;  %v3501_v37 = vld [vmem:[%s5875_s2 + $0x1d0] sm:$0xff] }
 0x378   :  { %2846 = vmatpush.bf16.msra.mxu0 %v3501_v37  ;;  %2254 = vmatmul.f32.gmra.mxu1 %v5193_v42 }
 0x379   :  { %6048 = vst [vmem:[#allocation31_spill] sm:$0xff] %v5393_v11  ;;  %v5398_v33 = vpop.f32.mrf.mxu0  ;;  %v6050_v11 = vld [vmem:[#allocation32_spill] sm:$0xff] }
 0x37b   :  { %2758 = vmatpush.bf16.msra.mxu3 %v3492_v22 }
 0x37c   :  { %v1887_v58 = vpop.f32.mrf.mxu2  ;;  %2174 = vmatmul.f32.gmra.mxu0 %v5409_v52 }
 0x37d   :  { %v1888_v2 = vadd.f32 %v1887_v58, %v1799_v29  ;;  %v1976_v5 = vpop.f32.mrf.mxu3  ;;  %v3491_v29 = vld [vmem:[%s5875_s2 + $0x180] sm:$0xff]  ;;  %v3500_v58 = vld [vmem:[%s5875_s2 + $0x1c8] sm:$0xff] }
 0x37e   :  { %2847 = vmatpush.bf16.msra.mxu0 %v3500_v58 }
 0x37f   :  { %v5415_v15 = vadd.f32 %v1976_v5, %v1888_v2  ;;  %2759 = vmatpush.bf16.msra.mxu3 %v3491_v29  ;;  %v5436_v2 = vld [vmem:[%s5874_s0 + $0xe0] sm:$0xff]  ;;  %v2210_v37 = vpop.f32.mrf.mxu1  ;;  %v1804_v29 = vadd.f32 %v5011_v57, %v4929_v30  ;;  %v3510_v30 = vld [vmem:[%s5875_s2 + $0x218] sm:$0xff]  ;;  %v1807_v57 = vadd.f32 %v5029_v23, %v4940_v28  ;;  %v2419_v28 = vmax.f32 %v5204_v12, 0.0 }
 0x380   :  { %2257 = vmatmul.f32.gmra.mxu1 %v5210_v26  ;;  %v1809_v23 = vadd.f32 %v5046_v45, %v4946_v32  ;;  %v2417_v26 = vmax.f32 %v2207_v60, 0.0  ;;  %v1812_v45 = vadd.f32 %v5060_v31, %v4963_v0  ;;  %v1814_v0 = vadd.f32 %v5079_v35, %v4975_v27 }
 0x381   :  { %6049 = vst [vmem:[#allocation34_spill] sm:$0xff] %v5415_v15  ;;  %1929 = vmatmul.bf16.gmra.mxu2 %v6050_v11  ;;  %v5421_v56 = vpop.f32.mrf.mxu0  ;;  %2934 = vmatpush.bf16.msra.mxu1 %v3510_v30  ;;  %v1817_v27 = vadd.f32 %v5102_v36, %v4990_v49  ;;  %v1819_v49 = vadd.f32 %v5114_v19, %v5002_v4 }
 0x382   :  { %2018 = vmatmul.bf16.gmra.mxu3 %v4727_v51  ;;  %2848 = vmatpush.bf16.msra.mxu0 %v3499_v21  ;;  %v1822_v4 = vadd.f32 %v5137_v41, %v5019_v39 }
 0x384   :  { %v1890_v11 = vpop.f32.mrf.mxu2  ;;  %2177 = vmatmul.f32.gmra.mxu0 %v5436_v2 }
 0x385   :  { %v1891_v5 = vadd.f32 %v1890_v11, %v1802_v7  ;;  %v1979_v51 = vpop.f32.mrf.mxu3  ;;  %v5452_v7 = vld [vmem:[%s5874_s0 + $0xe8] sm:$0xff] }
 0x387   :  { %v5439_v22 = vadd.f32 %v1979_v51, %v1891_v5  ;;  %v2213_v51 = vpop.f32.mrf.mxu1 }
 0x388   :  { %2260 = vmatmul.f32.gmra.mxu1 %v5235_v16  ;;  %v2416_v16 = vmax.f32 %v5183_v9, 0.0 }
 0x389   :  { %6051 = vst [vmem:[#allocation55_spill] sm:$0xff] %v5439_v22  ;;  %v5444_v10 = vpop.f32.mrf.mxu0  ;;  %v6053_v22 = vld [vmem:[#allocation37_spill] sm:$0xff] }
 0x38a   :  { %v2512_v9 = vpack.c.bf16 %v2419_v28, %v2416_v16  ;;  %v2425_v28 = vmax.f32 %v5241_v13, 0.0  ;;  %v3509_v13 = vld [vmem:[%s5875_s2 + $0x210] sm:$0xff] }
 0x38b   :  { %2935 = vmatpush.bf16.msra.mxu1 %v3509_v13 }
 0x38c   :  { %v1892_v15 = vpop.f32.mrf.mxu2  ;;  %2180 = vmatmul.f32.gmra.mxu0 %v5452_v7 }
 0x38d   :  { %v1893_v58 = vadd.f32 %v1892_v15, %v1804_v29  ;;  %v1981_v11 = vpop.f32.mrf.mxu3  ;;  %v5470_v29 = vld [vmem:[%s5874_s0 + $0xf0] sm:$0xff] }
 0x38f   :  { %v5455_v5 = vadd.f32 %v1981_v11, %v1893_v58 }
 0x390   :  { %2263 = vmatmul.f32.gmra.mxu1 %v5249_v63 }
 0x391   :  { %6052 = vst [vmem:[#allocation6_spill] sm:$0xff] %v5455_v5  ;;  %1934 = vmatmul.bf16.gmra.mxu2 %v6053_v22  ;;  %v5458_v21 = vpop.f32.mrf.mxu0  ;;  %v2216_v5 = vpop.f32.mrf.mxu1 }
 0x392   :  { %2023 = vmatmul.bf16.gmra.mxu3 %v4753_v40 }
 0x394   :  { %v1895_v15 = vpop.f32.mrf.mxu2  ;;  %2183 = vmatmul.f32.gmra.mxu0 %v5470_v29 }
 0x395   :  { %v1896_v22 = vadd.f32 %v1895_v15, %v1807_v57  ;;  %v1984_v58 = vpop.f32.mrf.mxu3  ;;  %v5485_v57 = vld [vmem:[%s5874_s0 + $0xf8] sm:$0xff]  ;;  %v2420_v15 = vmax.f32 %v2210_v37, 0.0 }
 0x397   :  { %v5473_v11 = vadd.f32 %v1984_v58, %v1896_v22  ;;  %v2513_v63 = vpack.c.bf16 %v2420_v15, %v2417_v26  ;;  %v2426_v15 = vmax.f32 %v2216_v5, 0.0 }
 0x398   :  { %2266 = vmatmul.f32.gmra.mxu1 %v5266_v43 }
 0x399   :  { %6054 = vst [vmem:[#allocation56_spill] sm:$0xff] %v5473_v11  ;;  %v5475_v40 = vpop.f32.mrf.mxu0  ;;  %v2219_v12 = vpop.f32.mrf.mxu1 }
 0x39c   :  { %v1897_v30 = vpop.f32.mrf.mxu2  ;;  %2186 = vmatmul.f32.gmra.mxu0 %v5485_v57 }
 0x39d   :  { %v1898_v22 = vadd.f32 %v1897_v30, %v1809_v23  ;;  %v1986_v58 = vpop.f32.mrf.mxu3 }
 0x39f   :  { %v5488_v11 = vadd.f32 %v1986_v58, %v1898_v22 }
 0x3a0   :  { %2269 = vmatmul.f32.gmra.mxu1 %v5283_v48 }
 0x3a1   :  { %2319 = vmatmul.f32.vlgmr.msra.gmra.mxu2 %v4958_v47  ;;  %v5491_v32 = vpop.f32.mrf.mxu0  ;;  %v2222_v16 = vpop.f32.mrf.mxu1  ;;  %v2422_v47 = vmax.f32 %v5222_v54, 0.0 }
 0x3a2   :  { %2760 = vmatmul.bf16.vlgmr.msra.gmra.mxu3 %v2512_v9 }
 0x3a3   :  { %v2515_v9 = vpack.c.bf16 %v2425_v28, %v2422_v47  ;;  %v2428_v47 = vmax.f32 %v5256_v20, 0.0  ;;  %v2431_v28 = vmax.f32 %v5277_v1, 0.0 }
 0x3a4   :  { %v1900_v60 = vpop.f32.mrf.mxu2  ;;  %2849 = vmatmul.bf16.vlgmr.msra.gmra.mxu0 %v2513_v63  ;;  %v2423_v63 = vmax.f32 %v2213_v51, 0.0 }
 0x3a5   :  { %v1901_v37 = vadd.f32 %v1900_v60, %v1812_v45  ;;  %v1989_v23 = vpop.f32.mrf.mxu3 }
 0x3a6   :  { %v2516_v60 = vpack.c.bf16 %v2426_v15, %v2423_v63 }
 0x3a7   :  { %v5496_v30 = vadd.f32 %v1989_v23, %v1901_v37 }
 0x3a8   :  { %2272 = vmatmul.f32.gmra.mxu1 %v5308_v59 }
 0x3a9   :  { %2322 = vmatmul.f32.gmra.mxu2 %v4970_v34  ;;  %v5499_v26 = vpop.f32.mrf.mxu0  ;;  %v2225_v34 = vpop.f32.mrf.mxu1 }
 0x3ac   :  { %v1902_v31 = vpop.f32.mrf.mxu2 }
 0x3ad   :  { %v1903_v22 = vadd.f32 %v1902_v31, %v1814_v0  ;;  %v1991_v58 = vpop.f32.mrf.mxu3  ;;  %v2429_v0 = vmax.f32 %v2219_v12, 0.0  ;;  %v2432_v31 = vmax.f32 %v2222_v16, 0.0 }
 0x3af   :  { %v5506_v45 = vadd.f32 %v1991_v58, %v1903_v22  ;;  %v2518_v22 = vpack.c.bf16 %v2431_v28, %v2428_v47 }
 0x3b0   :  { %2275 = vmatmul.f32.gmra.mxu1 %v5322_v55 }
 0x3b1   :  { %2325 = vmatmul.f32.gmra.mxu2 %v4987_v18  ;;  %v5509_v54 = vpop.f32.mrf.mxu0  ;;  %v2228_v18 = vpop.f32.mrf.mxu1 }
 0x3b2   :  { %2765 = vmatmul.bf16.gmra.mxu3 %v2515_v9  ;;  %v2519_v9 = vpack.c.bf16 %v2432_v31, %v2429_v0  ;;  %v2438_v47 = vmax.f32 %v2228_v18, 0.0  ;;  %v6059_v18 = vld [vmem:[#allocation24_spill] sm:$0xff] }
 0x3b4   :  { %v1905_v35 = vpop.f32.mrf.mxu2  ;;  %2854 = vmatmul.bf16.gmra.mxu0 %v2516_v60 }
 0x3b5   :  { %v1906_v5 = vadd.f32 %v1905_v35, %v1817_v27  ;;  %v1994_v51 = vpop.f32.mrf.mxu3  ;;  %v2437_v27 = vmax.f32 %v5316_v25, 0.0  ;;  %v6055_v35 = vld [vmem:[#allocation45_spill] sm:$0xff]  ;;  %v3508_v25 = vld [vmem:[%s5875_s2 + $0x208] sm:$0xff] }
 0x3b6   :  { %2936 = vmatpush.bf16.msra.mxu1 %v3508_v25 }
 0x3b7   :  { %v5517_v37 = vadd.f32 %v1994_v51, %v1906_v5  ;;  %v6056_v5 = vld [vmem:[#allocation12_spill] sm:$0xff]  ;;  %v2435_v51 = vmax.f32 %v2225_v34, 0.0  ;;  %v6058_v34 = vld [vmem:[#allocation27_spill] sm:$0xff] }
 0x3b8   :  { %2278 = vmatmul.f32.gmra.mxu1 %v5343_v14  ;;  %v1824_v39 = vadd.f32 %v6056_v5, %v6055_v35  ;;  %v2443_v35 = vmax.f32 %v5351_v46, 0.0  ;;  %v6061_v5 = vld [vmem:[#allocation44_spill] sm:$0xff]  ;;  %v6064_v46 = vld [vmem:[#allocation51_spill] sm:$0xff] }
 0x3b9   :  { %2328 = vmatmul.f32.gmra.mxu2 %v4999_v38  ;;  %v5520_v23 = vpop.f32.mrf.mxu0  ;;  %v2231_v38 = vpop.f32.mrf.mxu1  ;;  %v2522_v31 = vpack.c.bf16 %v2438_v47, %v2435_v51 }
 0x3ba   :  { %v2441_v47 = vmax.f32 %v2231_v38, 0.0 }
 0x3bc   :  { %v1907_v36 = vpop.f32.mrf.mxu2 }
 0x3bd   :  { %v1908_v63 = vadd.f32 %v1907_v36, %v1819_v49  ;;  %v1996_v15 = vpop.f32.mrf.mxu3 }
 0x3bf   :  { %v5527_v58 = vadd.f32 %v1996_v15, %v1908_v63  ;;  %v6057_v63 = vld [vmem:[#allocation48_spill] sm:$0xff]  ;;  %v1827_v15 = vadd.f32 %v6059_v18, %v6058_v34  ;;  %v6063_v18 = vld [vmem:[#allocation46_spill] sm:$0xff] }
 0x3c0   :  { %2281 = vmatmul.f32.gmra.mxu1 %v5359_v17 }
 0x3c1   :  { %2331 = vmatmul.f32.gmra.mxu2 %v5016_v50  ;;  %v5530_v20 = vpop.f32.mrf.mxu0  ;;  %v2234_v60 = vpop.f32.mrf.mxu1  ;;  %v2434_v50 = vmax.f32 %v5295_v61, 0.0 }
 0x3c2   :  { %2770 = vmatmul.bf16.gmra.mxu3 %v2518_v22 }
 0x3c3   :  { %v2521_v36 = vpack.c.bf16 %v2437_v27, %v2434_v50  ;;  %v2440_v27 = vmax.f32 %v5329_v8, 0.0 }
 0x3c4   :  { %v1910_v19 = vpop.f32.mrf.mxu2  ;;  %2859 = vmatmul.bf16.gmra.mxu0 %v2519_v9 }
 0x3c5   :  { %v1911_v1 = vadd.f32 %v1910_v19, %v1822_v4  ;;  %v1999_v12 = vpop.f32.mrf.mxu3 }
 0x3c7   :  { %v5535_v16 = vadd.f32 %v1999_v12, %v1911_v1  ;;  %v6060_v12 = vld [vmem:[#allocation29_spill] sm:$0xff] }
 0x3c8   :  { %2284 = vmatmul.f32.gmra.mxu1 %v5385_v6 }
 0x3c9   :  { %2334 = vmatmul.f32.gmra.mxu2 %v5026_v3  ;;  %v5538_v13 = vpop.f32.mrf.mxu0  ;;  %v2237_v3 = vpop.f32.mrf.mxu1 }
 0x3cc   :  { %v1912_v41 = vpop.f32.mrf.mxu2 }
 0x3cd   :  { %v1913_v28 = vadd.f32 %v1912_v41, %v1824_v39  ;;  %v2001_v49 = vpop.f32.mrf.mxu3  ;;  %v6062_v39 = vld [vmem:[#allocation36_spill] sm:$0xff] }
 0x3ce   :  { %v1829_v41 = vadd.f32 %v6062_v39, %v6061_v5  ;;  %v2446_v5 = vmax.f32 %v5370_v44, 0.0  ;;  %v2449_v39 = vmax.f32 %v5398_v33, 0.0  ;;  %v3507_v33 = vld [vmem:[%s5875_s2 + $0x200] sm:$0xff] }
 0x3cf   :  { %v5545_v0 = vadd.f32 %v2001_v49, %v1913_v28  ;;  %v2444_v28 = vmax.f32 %v2234_v60, 0.0  ;;  %2937 = vmatpush.bf16.msra.mxu1 %v3507_v33 }
 0x3d0   :  { %2287 = vmatmul.f32.gmra.mxu1 %v5409_v52 }
 0x3d1   :  { %2337 = vmatmul.f32.gmra.mxu2 %v6057_v63  ;;  %v5548_v61 = vpop.f32.mrf.mxu0  ;;  %v2240_v1 = vpop.f32.mrf.mxu1  ;;  %v2525_v34 = vpack.c.bf16 %v2444_v28, %v2441_v47 }
 0x3d2   :  { %2775 = vmatmul.bf16.gmra.mxu3 %v2521_v36 }
 0x3d4   :  { %v1915_v22 = vpop.f32.mrf.mxu2  ;;  %2864 = vmatmul.bf16.gmra.mxu0 %v2522_v31  ;;  %v2524_v31 = vpack.c.bf16 %v2443_v35, %v2440_v27  ;;  %v6066_v27 = vld [vmem:[#allocation54_spill] sm:$0xff] }
 0x3d5   :  { %v1916_v9 = vadd.f32 %v1915_v22, %v1827_v15  ;;  %v2004_v4 = vpop.f32.mrf.mxu3  ;;  %v6065_v15 = vld [vmem:[#allocation5_spill] sm:$0xff] }
 0x3d6   :  { %v1832_v22 = vadd.f32 %v6065_v15, %v6064_v46 }
 0x3d7   :  { %v5556_v19 = vadd.f32 %v2004_v4, %v1916_v9 }
 0x3d8   :  { %2290 = vmatmul.f32.gmra.mxu1 %v5436_v2 }
 0x3d9   :  { %2340 = vmatmul.f32.gmra.mxu2 %v6060_v12  ;;  %v5559_v50 = vpop.f32.mrf.mxu0  ;;  %v2243_v25 = vpop.f32.mrf.mxu1 }
 0x3dc   :  { %v1917_v51 = vpop.f32.mrf.mxu2 }
 0x3dd   :  { %v1918_v49 = vadd.f32 %v1917_v51, %v1829_v41  ;;  %v2006_v36 = vpop.f32.mrf.mxu3  ;;  %v6067_v41 = vld [vmem:[#allocation52_spill] sm:$0xff]  ;;  %v6068_v51 = vld [vmem:[#allocation9_spill] sm:$0xff] }
 0x3de   :  { %v1834_v47 = vadd.f32 %v6068_v51, %v6067_v41  ;;  %v6073_v51 = vld [vmem:[#allocation50_spill] sm:$0xff] }
 0x3df   :  { %v5566_v63 = vadd.f32 %v2006_v36, %v1918_v49  ;;  %v2447_v49 = vmax.f32 %v2237_v3, 0.0  ;;  %v2450_v36 = vmax.f32 %v2240_v1, 0.0  ;;  %v6070_v3 = vld [vmem:[#allocation35_spill] sm:$0xff]  ;;  %v6071_v1 = vld [vmem:[#allocation13_spill] sm:$0xff] }
 0x3e0   :  { %2293 = vmatmul.f32.gmra.mxu1 %v5452_v7 }
 0x3e1   :  { %2343 = vmatmul.f32.gmra.mxu2 %v6063_v18  ;;  %v5569_v8 = vpop.f32.mrf.mxu0  ;;  %v2246_v12 = vpop.f32.mrf.mxu1  ;;  %v2527_v18 = vpack.c.bf16 %v2449_v39, %v2446_v5 }
 0x3e2   :  { %2780 = vmatmul.bf16.gmra.mxu3 %v2524_v31 }
 0x3e4   :  { %v1920_v9 = vpop.f32.mrf.mxu2  ;;  %2869 = vmatmul.bf16.gmra.mxu0 %v2525_v34 }
 0x3e5   :  { %v1921_v38 = vadd.f32 %v1920_v9, %v1832_v22  ;;  %v2009_v60 = vpop.f32.mrf.mxu3  ;;  %v2528_v22 = vpack.c.bf16 %v2450_v36, %v2447_v49  ;;  %v6069_v9 = vld [vmem:[#allocation33_spill] sm:$0xff]  ;;  %v2455_v49 = vmax.f32 %v5444_v10, 0.0  ;;  %v6076_v10 = vld [vmem:[#allocation4_spill] sm:$0xff] }
 0x3e6   :  { %v6074_v36 = vld [vmem:[#allocation53_spill] sm:$0xff] }
 0x3e7   :  { %v5574_v4 = vadd.f32 %v2009_v60, %v1921_v38  ;;  %v1837_v38 = vadd.f32 %v6071_v1, %v6070_v3 }
 0x3e8   :  { %2296 = vmatmul.f32.gmra.mxu1 %v5470_v29 }
 0x3e9   :  { %2346 = vmatmul.f32.gmra.mxu2 %v6066_v27  ;;  %v5577_v35 = vpop.f32.mrf.mxu0  ;;  %v2249_v15 = vpop.f32.mrf.mxu1 }
 0x3ec   :  { %v1922_v28 = vpop.f32.mrf.mxu2 }
 0x3ed   :  { %v1923_v31 = vadd.f32 %v1922_v28, %v1834_v47  ;;  %v2011_v34 = vpop.f32.mrf.mxu3  ;;  %v2452_v28 = vmax.f32 %v5421_v56, 0.0 }
 0x3ef   :  { %v5584_v46 = vadd.f32 %v2011_v34, %v1923_v31  ;;  %v6075_v31 = vld [vmem:[#allocation41_spill] sm:$0xff]  ;;  %v2530_v1 = vpack.c.bf16 %v2455_v49, %v2452_v28  ;;  %v2458_v49 = vmax.f32 %v5458_v21, 0.0  ;;  %v6082_v21 = vld [vmem:[#allocation20_spill] sm:$0xff] }
 0x3f0   :  { %2299 = vmatmul.f32.gmra.mxu1 %v5485_v57  ;;  %v1839_v34 = vadd.f32 %v6075_v31, %v6074_v36 }
 0x3f1   :  { %2349 = vmatmul.f32.gmra.mxu2 %v6069_v9  ;;  %v5587_v44 = vpop.f32.mrf.mxu0  ;;  %v2252_v41 = vpop.f32.mrf.mxu1  ;;  %v2456_v9 = vmax.f32 %v2246_v12, 0.0 }
 0x3f2   :  { %2785 = vmatmul.bf16.gmra.mxu3 %v2527_v18 }
 0x3f4   :  { %v1925_v60 = vpop.f32.mrf.mxu2  ;;  %2874 = vmatmul.bf16.gmra.mxu0 %v2528_v22  ;;  %v2453_v22 = vmax.f32 %v2243_v25, 0.0 }
 0x3f5   :  { %v1926_v27 = vadd.f32 %v1925_v60, %v1837_v38  ;;  %v2014_v5 = vpop.f32.mrf.mxu3 }
 0x3f7   :  { %v5595_v39 = vadd.f32 %v2014_v5, %v1926_v27  ;;  %v2531_v27 = vpack.c.bf16 %v2456_v9, %v2453_v22  ;;  %v6077_v5 = vld [vmem:[#allocation42_spill] sm:$0xff] }
 0x3f9   :  { %6072 = vst [vmem:[#allocation10_spill] sm:$0xff] %v5595_v39  ;;  %2352 = vmatmul.f32.gmra.mxu2 %v6073_v51  ;;  %v5598_v47 = vpop.f32.mrf.mxu0  ;;  %v2255_v60 = vpop.f32.mrf.mxu1  ;;  %v1842_v51 = vadd.f32 %v6077_v5, %v6076_v10 }
 0x3fc   :  { %v1927_v18 = vpop.f32.mrf.mxu2 }
 0x3fd   :  { %v1928_v33 = vadd.f32 %v1927_v18, %v1839_v34  ;;  %v2016_v3 = vpop.f32.mrf.mxu3  ;;  %v6079_v34 = vld [vmem:[#allocation8_spill] sm:$0xff]  ;;  %v6080_v18 = vld [vmem:[#allocation23_spill] sm:$0xff] }
 0x3fe   :  { %v1844_v22 = vadd.f32 %v6080_v18, %v6079_v34 }
 0x3ff   :  { %v5605_v38 = vadd.f32 %v2016_v3, %v1928_v33  ;;  %v2459_v33 = vmax.f32 %v2249_v15, 0.0  ;;  %v2462_v3 = vmax.f32 %v2252_v41, 0.0 }
 0x401   :  { %2355 = vmatmul.f32.gmra.mxu2 %v5129_v62  ;;  %v5608_v56 = vpop.f32.mrf.mxu0  ;;  %v2258_v31 = vpop.f32.mrf.mxu1  ;;  %v2461_v62 = vmax.f32 %v5475_v40, 0.0  ;;  %v6083_v40 = vld [vmem:[#allocation25_spill] sm:$0xff] }
 0x402   :  { %2790 = vmatmul.bf16.gmra.mxu3 %v2530_v1 }
 0x404   :  { %v1930_v39 = vpop.f32.mrf.mxu2  ;;  %2879 = vmatmul.bf16.gmra.mxu0 %v2531_v27  ;;  %v2533_v27 = vpack.c.bf16 %v2461_v62, %v2458_v49  ;;  %v2464_v62 = vmax.f32 %v5491_v32, 0.0 }
 0x405   :  { %v1931_v36 = vadd.f32 %v1930_v39, %v1842_v51  ;;  %v2019_v25 = vpop.f32.mrf.mxu3  ;;  %v2534_v51 = vpack.c.bf16 %v2462_v3, %v2459_v33  ;;  %v6085_v33 = vld [vmem:[#allocation49_spill] sm:$0xff] }
 0x407   :  { %v5612_v12 = vadd.f32 %v2019_v25, %v1931_v36  ;;  %v1847_v25 = vadd.f32 %v6083_v40, %v6082_v21 }
 0x409   :  { %6078 = vst [vmem:[#allocation57_spill] sm:$0xff] %v5612_v12  ;;  %2358 = vmatmul.f32.gmra.mxu2 %v5145_v53  ;;  %v5615_v28 = vpop.f32.mrf.mxu0  ;;  %v2261_v5 = vpop.f32.mrf.mxu1  ;;  %v6081_v53 = vld [vmem:[#allocation16_spill] sm:$0xff] }
 0x40c   :  { %v1932_v9 = vpop.f32.mrf.mxu2 }
 0x40d   :  { %v1933_v1 = vadd.f32 %v1932_v9, %v1844_v22  ;;  %v2021_v39 = vpop.f32.mrf.mxu3  ;;  %v2467_v22 = vmax.f32 %v5499_v26, 0.0  ;;  %v6084_v9 = vld [vmem:[#allocation30_spill] sm:$0xff] }
 0x40e   :  { %v1849_v3 = vadd.f32 %v6085_v33, %v6084_v9  ;;  %v6086_v9 = vld [vmem:[#allocation3_spill] sm:$0xff]  ;;  %v2471_v33 = vmax.f32 %v2261_v5, 0.0 }
 0x40f   :  { %v5621_v10 = vadd.f32 %v2021_v39, %v1933_v1  ;;  %v2465_v39 = vmax.f32 %v2255_v60, 0.0  ;;  %v6088_v5 = vld [vmem:[#allocation11_spill] sm:$0xff] }
 0x411   :  { %2361 = vmatmul.f32.gmra.mxu2 %v6081_v53  ;;  %v5624_v36 = vpop.f32.mrf.mxu0  ;;  %v2264_v18 = vpop.f32.mrf.mxu1  ;;  %v2536_v53 = vpack.c.bf16 %v2467_v22, %v2464_v62  ;;  %v2473_v62 = vmax.f32 %v5520_v23, 0.0 }
 0x412   :  { %2795 = vmatmul.bf16.gmra.mxu3 %v2533_v27  ;;  %v2468_v27 = vmax.f32 %v2258_v31, 0.0  ;;  %v2470_v31 = vmax.f32 %v5509_v54, 0.0 }
 0x414   :  { %v1935_v12 = vpop.f32.mrf.mxu2  ;;  %2884 = vmatmul.bf16.gmra.mxu0 %v2534_v51 }
 0x415   :  { %v1936_v34 = vadd.f32 %v1935_v12, %v1847_v25  ;;  %v2024_v15 = vpop.f32.mrf.mxu3  ;;  %v2537_v25 = vpack.c.bf16 %v2468_v27, %v2465_v39  ;;  %v2539_v27 = vpack.c.bf16 %v2473_v62, %v2470_v31  ;;  %v2479_v31 = vmax.f32 %v5538_v13, 0.0 }
 0x417   :  { %v5628_v41 = vadd.f32 %v2024_v15, %v1936_v34 }
 0x419   :  { %2364 = vmatmul.f32.gmra.mxu2 %v5175_v24  ;;  %v5631_v49 = vpop.f32.mrf.mxu0  ;;  %v2267_v40 = vpop.f32.mrf.mxu1 }
 0x41c   :  { %v1937_v1 = vpop.f32.mrf.mxu2 }
 0x41d   :  { %v1938_v51 = vadd.f32 %v1937_v1, %v1849_v3  ;;  %v2026_v12 = vpop.f32.mrf.mxu3  ;;  %v2474_v3 = vmax.f32 %v2264_v18, 0.0 }
 0x41f   :  { %v5637_v21 = vadd.f32 %v2026_v12, %v1938_v51 }
 0x421   :  { %2367 = vmatmul.f32.gmra.mxu2 %v5193_v42  ;;  %v2850_v24 = vpop.f32.mrf.mxu0  ;;  %v2270_v15 = vpop.f32.mrf.mxu1 }
 0x422   :  { %2800 = vmatmul.bf16.gmra.mxu3 %v2536_v53 }
 0x424   :  { %v2320_v32 = vpop.f32.mrf.mxu2  ;;  %2889 = vmatmul.bf16.gmra.mxu0 %v2537_v25  ;;  %v2540_v25 = vpack.c.bf16 %v2474_v3, %v2471_v33  ;;  %v2480_v33 = vmax.f32 %v2270_v15, 0.0  ;;  %v2482_v15 = vmax.f32 %v5548_v61, 0.0 }
 0x425   :  { %v2761_v26 = vpop.f32.mrf.mxu3  ;;  %v2418_v1 = vmax.f32 %v2320_v32, 0.0 }
 0x426   :  { %v5640_v34 = vadd.f32 %v2850_v24, %v2761_v26  ;;  %v6087_v24 = vld [vmem:[#allocation7_spill] sm:$0xff] }
 0x429   :  { %2370 = vmatmul.f32.gmra.mxu2 %v6086_v9  ;;  %v2852_v60 = vpop.f32.mrf.mxu0  ;;  %v2273_v53 = vpop.f32.mrf.mxu1 }
 0x42c   :  { %v2323_v22 = vpop.f32.mrf.mxu2 }
 0x42d   :  { %v2421_v42 = vmax.f32 %v2323_v22, 0.0  ;;  %v2763_v39 = vpop.f32.mrf.mxu3  ;;  %v2477_v22 = vmax.f32 %v2267_v40, 0.0 }
 0x42e   :  { %v5645_v51 = vadd.f32 %v2852_v60, %v2763_v39  ;;  %v2476_v60 = vmax.f32 %v5530_v20, 0.0 }
 0x42f   :  { %v2514_v12 = vpack.c.bf16 %v2421_v42, %v2418_v1 }
 0x430   :  { %v2542_v39 = vpack.c.bf16 %v2479_v31, %v2476_v60 }
 0x431   :  { %2373 = vmatmul.f32.gmra.mxu2 %v6087_v24  ;;  %2938 = vmatmul.bf16.vlgmr.msra.gmra.mxu1 %v2514_v12  ;;  %v2855_v26 = vpop.f32.mrf.mxu0  ;;  %v2276_v32 = vpop.f32.mrf.mxu1 }
 0x432   :  { %2805 = vmatmul.bf16.gmra.mxu3 %v2539_v27  ;;  %v2486_v60 = vmax.f32 %v2276_v32, 0.0  ;;  %v2488_v32 = vmax.f32 %v5569_v8, 0.0 }
 0x434   :  { %v2326_v54 = vpop.f32.mrf.mxu2  ;;  %2894 = vmatmul.bf16.gmra.mxu0 %v2540_v25  ;;  %v2543_v25 = vpack.c.bf16 %v2480_v33, %v2477_v22 }
 0x435   :  { %v2766_v23 = vpop.f32.mrf.mxu3  ;;  %v2424_v3 = vmax.f32 %v2326_v54, 0.0  ;;  %v2485_v54 = vmax.f32 %v5559_v50, 0.0 }
 0x436   :  { %v5648_v9 = vadd.f32 %v2855_v26, %v2766_v23 }
 0x437   :  { %v2545_v33 = vpack.c.bf16 %v2485_v54, %v2482_v15 }
 0x439   :  { %2376 = vmatmul.f32.gmra.mxu2 %v6088_v5  ;;  %v2857_v18 = vpop.f32.mrf.mxu0  ;;  %v2279_v26 = vpop.f32.mrf.mxu1 }
 0x43c   :  { %v2329_v62 = vpop.f32.mrf.mxu2 }
 0x43d   :  { %v2427_v1 = vmax.f32 %v2329_v62, 0.0  ;;  %v2768_v42 = vpop.f32.mrf.mxu3 }
 0x43e   :  { %v5653_v27 = vadd.f32 %v2857_v18, %v2768_v42  ;;  %v2483_v18 = vmax.f32 %v2273_v53, 0.0 }
 0x43f   :  { %v2517_v12 = vpack.c.bf16 %v2427_v1, %v2424_v3 }
 0x440   :  { %v2546_v42 = vpack.c.bf16 %v2486_v60, %v2483_v18 }
 0x441   :  { %2379 = vmatmul.f32.gmra.mxu2 %v5266_v43  ;;  %2943 = vmatmul.bf16.gmra.mxu1 %v2517_v12  ;;  %v2860_v24 = vpop.f32.mrf.mxu0  ;;  %v2282_v22 = vpop.f32.mrf.mxu1  ;;  %v2491_v12 = vmax.f32 %v5577_v35, 0.0  ;;  %v2494_v35 = vmax.f32 %v5587_v44, 0.0  ;;  %v2500_v44 = vmax.f32 %v5608_v56, 0.0  ;;  %v2506_v56 = vmax.f32 %v5624_v36, 0.0 }
 0x442   :  { %2810 = vmatmul.bf16.gmra.mxu3 %v2542_v39 }
 0x443   :  { %v2548_v54 = vpack.c.bf16 %v2491_v12, %v2488_v32 }
 0x444   :  { %v2332_v20 = vpop.f32.mrf.mxu2  ;;  %2899 = vmatmul.bf16.gmra.mxu0 %v2543_v25 }
 0x445   :  { %v2771_v13 = vpop.f32.mrf.mxu3  ;;  %v2430_v43 = vmax.f32 %v2332_v20, 0.0  ;;  %v2489_v20 = vmax.f32 %v2279_v26, 0.0  ;;  %v2497_v26 = vmax.f32 %v5598_v47, 0.0  ;;  %v2503_v47 = vmax.f32 %v5615_v28, 0.0 }
 0x446   :  { %v5656_v23 = vadd.f32 %v2860_v24, %v2771_v13  ;;  %v2492_v13 = vmax.f32 %v2282_v22, 0.0  ;;  %v2509_v28 = vmax.f32 %v5631_v49, 0.0 }
 0x448   :  { %v2549_v60 = vpack.c.bf16 %v2492_v13, %v2489_v20 }
 0x449   :  { %2382 = vmatmul.f32.gmra.mxu2 %v5283_v48  ;;  %v2862_v40 = vpop.f32.mrf.mxu0  ;;  %v2285_v53 = vpop.f32.mrf.mxu1 }
 0x44c   :  { %v2335_v5 = vpop.f32.mrf.mxu2 }
 0x44d   :  { %v2433_v31 = vmax.f32 %v2335_v5, 0.0  ;;  %v2773_v62 = vpop.f32.mrf.mxu3 }
 0x44e   :  { %v5661_v3 = vadd.f32 %v2862_v40, %v2773_v62  ;;  %v2495_v62 = vmax.f32 %v2285_v53, 0.0 }
 0x44f   :  { %v2520_v1 = vpack.c.bf16 %v2433_v31, %v2430_v43 }
 0x451   :  { %2385 = vmatmul.f32.gmra.mxu2 %v5308_v59  ;;  %2948 = vmatmul.bf16.gmra.mxu1 %v2520_v1  ;;  %v2865_v48 = vpop.f32.mrf.mxu0 }
 0x452   :  { %2815 = vmatmul.bf16.gmra.mxu3 %v2545_v33 }
 0x454   :  { %v2338_v61 = vpop.f32.mrf.mxu2  ;;  %2904 = vmatmul.bf16.gmra.mxu0 %v2546_v42  ;;  %v2551_v42 = vpack.c.bf16 %v2497_v26, %v2494_v35 }
 0x455   :  { %v2776_v50 = vpop.f32.mrf.mxu3  ;;  %v2436_v59 = vmax.f32 %v2338_v61, 0.0 }
 0x456   :  { %v5664_v39 = vadd.f32 %v2865_v48, %v2776_v50 }
 0x459   :  { %2388 = vmatmul.f32.gmra.mxu2 %v5322_v55  ;;  %v2867_v25 = vpop.f32.mrf.mxu0  ;;  %v2288_v55 = vpop.f32.mrf.mxu1 }
 0x45a   :  { %v2498_v22 = vmax.f32 %v2288_v55, 0.0  ;;  %v2557_v55 = vpack.c.bf16 %v2509_v28, %v2506_v56 }
 0x45c   :  { %v2341_v24 = vpop.f32.mrf.mxu2 }
 0x45d   :  { %v2439_v40 = vmax.f32 %v2341_v24, 0.0  ;;  %v2778_v15 = vpop.f32.mrf.mxu3  ;;  %v2554_v24 = vpack.c.bf16 %v2503_v47, %v2500_v44 }
 0x45e   :  { %v5669_v5 = vadd.f32 %v2867_v25, %v2778_v15 }
 0x45f   :  { %v2523_v18 = vpack.c.bf16 %v2439_v40, %v2436_v59 }
 0x461   :  { %2391 = vmatmul.f32.gmra.mxu2 %v5343_v14  ;;  %2953 = vmatmul.bf16.gmra.mxu1 %v2523_v18  ;;  %v2291_v43 = vpop.f32.mrf.mxu1  ;;  %v2552_v14 = vpack.c.bf16 %v2498_v22, %v2495_v62 }
 0x462   :  { %2820 = vmatmul.bf16.gmra.mxu3 %v2548_v54  ;;  %v2501_v53 = vmax.f32 %v2291_v43, 0.0 }
 0x464   :  { %v2344_v8 = vpop.f32.mrf.mxu2  ;;  %2909 = vmatmul.bf16.gmra.mxu0 %v2549_v60 }
 0x465   :  { %v2442_v33 = vmax.f32 %v2344_v8, 0.0 }
 0x469   :  { %2394 = vmatmul.f32.gmra.mxu2 %v5359_v17  ;;  %v2294_v17 = vpop.f32.mrf.mxu1 }
 0x46a   :  { %v2504_v32 = vmax.f32 %v2294_v17, 0.0 }
 0x46c   :  { %v2347_v31 = vpop.f32.mrf.mxu2 }
 0x46d   :  { %v2445_v1 = vmax.f32 %v2347_v31, 0.0 }
 0x46f   :  { %v2526_v48 = vpack.c.bf16 %v2445_v1, %v2442_v33 }
 0x471   :  { %2397 = vmatmul.f32.gmra.mxu2 %v5385_v6  ;;  %2958 = vmatmul.bf16.gmra.mxu1 %v2526_v48  ;;  %v2297_v13 = vpop.f32.mrf.mxu1  ;;  %v2555_v6 = vpack.c.bf16 %v2504_v32, %v2501_v53  ;;  %v6089_v48 = vld [vmem:[#allocation2_spill] sm:$0xff]  ;;  %v5698_v53 = vpop.f32.mrf.mxu0 }
 0x472   :  { %2825 = vmatmul.bf16.gmra.mxu3 %v2551_v42  ;;  %v2507_v15 = vmax.f32 %v2297_v13, 0.0 }
 0x474   :  { %v2350_v61 = vpop.f32.mrf.mxu2  ;;  %2914 = vmatmul.bf16.gmra.mxu0 %v2552_v14 }
 0x475   :  { %v2448_v12 = vmax.f32 %v2350_v61, 0.0 }
 0x479   :  { %2400 = vmatmul.f32.gmra.mxu2 %v5409_v52  ;;  %v2300_v52 = vpop.f32.mrf.mxu1 }
 0x47a   :  { %v2510_v54 = vmax.f32 %v2300_v52, 0.0  ;;  %v6091_v52 = vld [vmem:[#allocation39_spill] sm:$0xff] }
 0x47c   :  { %v2353_v50 = vpop.f32.mrf.mxu2  ;;  %v2558_v35 = vpack.c.bf16 %v2510_v54, %v2507_v15  ;;  %v5709_v15 = vpop.f32.mrf.mxu0 }
 0x47d   :  { %v2451_v25 = vmax.f32 %v2353_v50, 0.0 }
 0x47f   :  { %v2529_v20 = vpack.c.bf16 %v2451_v25, %v2448_v12  ;;  %v5701_v12 = vpop.f32.mrf.mxu3 }
 0x481   :  { %2403 = vmatmul.f32.gmra.mxu2 %v5436_v2  ;;  %2963 = vmatmul.bf16.gmra.mxu1 %v2529_v20 }
 0x482   :  { %2830 = vmatmul.bf16.gmra.mxu3 %v2554_v24 }
 0x484   :  { %v2356_v59 = vpop.f32.mrf.mxu2  ;;  %2919 = vmatmul.bf16.gmra.mxu0 %v2555_v6 }
 0x485   :  { %v2454_v18 = vmax.f32 %v2356_v59, 0.0 }
 0x489   :  { %2406 = vmatmul.f32.gmra.mxu2 %v5452_v7 }
 0x48c   :  { %v2359_v40 = vpop.f32.mrf.mxu2 }
 0x48d   :  { %v2457_v60 = vmax.f32 %v2359_v40, 0.0 }
 0x48f   :  { %v2532_v8 = vpack.c.bf16 %v2457_v60, %v2454_v18  ;;  %v5711_v18 = vpop.f32.mrf.mxu3 }
 0x491   :  { %2409 = vmatmul.f32.gmra.mxu2 %v5470_v29  ;;  %2968 = vmatmul.bf16.gmra.mxu1 %v2532_v8  ;;  %v5689_v29 = vld [vmem:[%s5876_s3] ss:$0 sm:$0xff]  ;;  %v6092_v8 = vld [vmem:[#allocation40_spill] sm:$0xff] }
 0x492   :  { %2835 = vmatmul.bf16.gmra.mxu3 %v2557_v55 }
 0x494   :  { %v2362_v2 = vpop.f32.mrf.mxu2  ;;  %2924 = vmatmul.bf16.gmra.mxu0 %v2558_v35 }
 0x495   :  { %v2460_v36 = vmax.f32 %v2362_v2, 0.0 }
 0x499   :  { %2412 = vmatmul.f32.gmra.mxu2 %v5485_v57 }
 0x49c   :  { %v2365_v7 = vpop.f32.mrf.mxu2 }
 0x49d   :  { %v2463_v26 = vmax.f32 %v2365_v7, 0.0 }
 0x49f   :  { %v2535_v49 = vpack.c.bf16 %v2463_v26, %v2460_v36 }
 0x4a1   :  { %2973 = vmatmul.bf16.gmra.mxu1 %v2535_v49 }
 0x4a4   :  { %v2368_v43 = vpop.f32.mrf.mxu2 }
 0x4a5   :  { %v2466_v62 = vmax.f32 %v2368_v43, 0.0  ;;  %v2875_v43 = vpop.f32.mrf.mxu0 }
 0x4ac   :  { %v2371_v31 = vpop.f32.mrf.mxu2 }
 0x4ad   :  { %v2469_v22 = vmax.f32 %v2371_v31, 0.0 }
 0x4ae   :  { %v2939_v33 = vpop.f32.mrf.mxu1 }
 0x4af   :  { %v2538_v1 = vpack.c.bf16 %v2469_v22, %v2466_v62  ;;  %v2940_v42 = vadd.f32 %v2939_v33, %v5640_v34  ;;  %v6090_v34 = vld [vmem:[#allocation38_spill] sm:$0xff]  ;;  %v2786_v22 = vpop.f32.mrf.mxu3  ;;  %v6093_v33 = vld [vmem:[#allocation15_spill] sm:$0xff] }
 0x4b1   :  { %v3019_v57 = vadd.f32 %v2940_v42, %v6089_v48  ;;  %2978 = vmatmul.bf16.gmra.mxu1 %v2538_v1 }
 0x4b3   :  { %v3055_v14 = vadd.f32 %v5689_v29, %v3019_v57 }
 0x4b4   :  { %v2374_v61 = vpop.f32.mrf.mxu2 }
 0x4b5   :  { %v3087_v17 = vmax.f32 %v3055_v14, 0.0  ;;  %v2472_v24 = vmax.f32 %v2374_v61, 0.0  ;;  %v5729_v61 = vpop.f32.mrf.mxu0 }
 0x4b6   :  { %v2941_v44 = vpop.f32.mrf.mxu1 }
 0x4b7   :  { %3119 = vst [vmem:[%s5877_s4] sm:$0xff] %v3087_v17  ;;  %v2942_v47 = vadd.f32 %v2941_v44, %v5645_v51  ;;  %v6094_v17 = vld [vmem:[#allocation17_spill] sm:$0xff] }
 0x4b9   :  { %v3020_v50 = vadd.f32 %v2942_v47, %v6090_v34 }
 0x4bb   :  { %v3056_v32 = vadd.f32 %v5689_v29, %v3020_v50 }
 0x4bc   :  { %v2377_v25 = vpop.f32.mrf.mxu2 }
 0x4bd   :  { %v3088_v20 = vmax.f32 %v3056_v32, 0.0  ;;  %v2475_v13 = vmax.f32 %v2377_v25, 0.0 }
 0x4be   :  { %v2944_v6 = vpop.f32.mrf.mxu1 }
 0x4bf   :  { %3120 = vst [vmem:[%s5877_s4 + $0x8] sm:$0xff] %v3088_v20  ;;  %v2541_v59 = vpack.c.bf16 %v2475_v13, %v2472_v24  ;;  %v2945_v51 = vadd.f32 %v2944_v6, %v5648_v9 }
 0x4c1   :  { %v3021_v56 = vadd.f32 %v2945_v51, %v6091_v52  ;;  %2983 = vmatmul.bf16.gmra.mxu1 %v2541_v59  ;;  %v2880_v59 = vpop.f32.mrf.mxu0 }
 0x4c3   :  { %v3057_v28 = vadd.f32 %v5689_v29, %v3021_v56 }
 0x4c4   :  { %v2380_v40 = vpop.f32.mrf.mxu2 }
 0x4c5   :  { %v3089_v54 = vmax.f32 %v3057_v28, 0.0  ;;  %v2478_v7 = vmax.f32 %v2380_v40, 0.0 }
 0x4c6   :  { %v2946_v60 = vpop.f32.mrf.mxu1 }
 0x4c7   :  { %3121 = vst [vmem:[%s5877_s4 + $0x10] sm:$0xff] %v3089_v54  ;;  %v2947_v55 = vadd.f32 %v2946_v60, %v5653_v27  ;;  %v6096_v60 = vld [vmem:[#allocation21_spill] sm:$0xff] }
 0x4c9   :  { %v3022_v9 = vadd.f32 %v2947_v55, %v6092_v8 }
 0x4cb   :  { %v3058_v35 = vadd.f32 %v5689_v29, %v3022_v9  ;;  %v2871_v9 = vadd.f32 %v5698_v53, %v5701_v12  ;;  %v2873_v53 = vadd.f32 %v5709_v15, %v5711_v18 }
 0x4cc   :  { %v2383_v2 = vpop.f32.mrf.mxu2 }
 0x4cd   :  { %v3090_v36 = vmax.f32 %v3058_v35, 0.0  ;;  %v2481_v26 = vmax.f32 %v2383_v2, 0.0  ;;  %v2882_v35 = vpop.f32.mrf.mxu0 }
 0x4ce   :  { %v2949_v49 = vpop.f32.mrf.mxu1 }
 0x4cf   :  { %3122 = vst [vmem:[%s5877_s4 + $0x18] sm:$0xff] %v3090_v36  ;;  %v2544_v31 = vpack.c.bf16 %v2481_v26, %v2478_v7  ;;  %v2950_v62 = vadd.f32 %v2949_v49, %v5656_v23  ;;  %v2788_v23 = vpop.f32.mrf.mxu3 }
 0x4d1   :  { %v3023_v27 = vadd.f32 %v2950_v62, %v6093_v33  ;;  %2988 = vmatmul.bf16.gmra.mxu1 %v2544_v31  ;;  %v6097_v62 = vld [vmem:[#allocation43_spill] sm:$0xff] }
 0x4d3   :  { %v3059_v1 = vadd.f32 %v5689_v29, %v3023_v27 }
 0x4d4   :  { %v2386_v42 = vpop.f32.mrf.mxu2 }
 0x4d5   :  { %v3091_v48 = vmax.f32 %v3059_v1, 0.0  ;;  %v2484_v50 = vmax.f32 %v2386_v42, 0.0 }
 0x4d6   :  { %v2951_v57 = vpop.f32.mrf.mxu1 }
 0x4d7   :  { %3123 = vst [vmem:[%s5877_s4 + $0x20] sm:$0xff] %v3091_v48  ;;  %v2952_v14 = vadd.f32 %v2951_v57, %v5661_v3  ;;  %v6095_v3 = vld [vmem:[#allocation19_spill] sm:$0xff]  ;;  %v2791_v52 = vpop.f32.mrf.mxu3  ;;  %v2885_v48 = vpop.f32.mrf.mxu0 }
 0x4d9   :  { %v3024_v44 = vadd.f32 %v2952_v14, %v6094_v17  ;;  %v6098_v17 = vld [vmem:[#allocation28_spill] sm:$0xff] }
 0x4db   :  { %v3060_v47 = vadd.f32 %v5689_v29, %v3024_v44 }
 0x4dc   :  { %v2389_v34 = vpop.f32.mrf.mxu2 }
 0x4dd   :  { %v3092_v32 = vmax.f32 %v3060_v47, 0.0  ;;  %v2487_v25 = vmax.f32 %v2389_v34, 0.0 }
 0x4de   :  { %v2954_v24 = vpop.f32.mrf.mxu1 }
 0x4df   :  { %3124 = vst [vmem:[%s5877_s4 + $0x28] sm:$0xff] %v3092_v32  ;;  %v2547_v20 = vpack.c.bf16 %v2487_v25, %v2484_v50  ;;  %v2955_v13 = vadd.f32 %v2954_v24, %v5664_v39  ;;  %v2793_v26 = vpop.f32.mrf.mxu3  ;;  %v2876_v50 = vadd.f32 %v2875_v43, %v2786_v22  ;;  %v2878_v43 = vadd.f32 %v5729_v61, %v2788_v23 }
 0x4e1   :  { %v3025_v6 = vadd.f32 %v2955_v13, %v6095_v3  ;;  %2993 = vmatmul.bf16.gmra.mxu1 %v2547_v20  ;;  %v2887_v13 = vpop.f32.mrf.mxu0  ;;  %v6099_v3 = vld [vmem:[#allocation31_spill] sm:$0xff] }
 0x4e3   :  { %v3061_v51 = vadd.f32 %v5689_v29, %v3025_v6 }
 0x4e4   :  { %v2392_v56 = vpop.f32.mrf.mxu2 }
 0x4e5   :  { %v3093_v28 = vmax.f32 %v3061_v51, 0.0  ;;  %v2490_v2 = vmax.f32 %v2392_v56, 0.0 }
 0x4e6   :  { %v2956_v40 = vpop.f32.mrf.mxu1 }
 0x4e7   :  { %3125 = vst [vmem:[%s5877_s4 + $0x30] sm:$0xff] %v3093_v28  ;;  %v2957_v54 = vadd.f32 %v2956_v40, %v5669_v5  ;;  %v2796_v14 = vpop.f32.mrf.mxu3 }
 0x4e9   :  { %v3026_v55 = vadd.f32 %v2957_v54, %v6096_v60  ;;  %v6100_v60 = vld [vmem:[#allocation34_spill] sm:$0xff] }
 0x4eb   :  { %v3062_v39 = vadd.f32 %v5689_v29, %v3026_v55 }
 0x4ec   :  { %v2395_v8 = vpop.f32.mrf.mxu2 }
 0x4ed   :  { %v3094_v7 = vmax.f32 %v3062_v39, 0.0  ;;  %v2493_v36 = vmax.f32 %v2395_v8, 0.0  ;;  %v2890_v39 = vpop.f32.mrf.mxu0 }
 0x4ee   :  { %v2959_v49 = vpop.f32.mrf.mxu1 }
 0x4ef   :  { %3126 = vst [vmem:[%s5877_s4 + $0x38] sm:$0xff] %v3094_v7  ;;  %v2550_v31 = vpack.c.bf16 %v2493_v36, %v2490_v2  ;;  %v2960_v5 = vadd.f32 %v2959_v49, %v2871_v9  ;;  %v2798_v51 = vpop.f32.mrf.mxu3  ;;  %v2881_v7 = vadd.f32 %v2880_v59, %v2791_v52 }
 0x4f1   :  { %v3027_v33 = vadd.f32 %v2960_v5, %v6097_v62  ;;  %2998 = vmatmul.bf16.gmra.mxu1 %v2550_v31  ;;  %v6101_v62 = vld [vmem:[#allocation55_spill] sm:$0xff] }
 0x4f3   :  { %v3063_v27 = vadd.f32 %v5689_v29, %v3027_v33 }
 0x4f4   :  { %v2398_v1 = vpop.f32.mrf.mxu2 }
 0x4f5   :  { %v3095_v12 = vmax.f32 %v3063_v27, 0.0  ;;  %v2496_v32 = vmax.f32 %v2398_v1, 0.0 }
 0x4f6   :  { %v2961_v42 = vpop.f32.mrf.mxu1 }
 0x4f7   :  { %3127 = vst [vmem:[%s5877_s4 + $0x40] sm:$0xff] %v3095_v12  ;;  %v2962_v57 = vadd.f32 %v2961_v42, %v2873_v53  ;;  %v2801_v9 = vpop.f32.mrf.mxu3  ;;  %v2883_v53 = vadd.f32 %v2882_v35, %v2793_v26  ;;  %v2892_v12 = vpop.f32.mrf.mxu0 }
 0x4f9   :  { %v3028_v44 = vadd.f32 %v2962_v57, %v6098_v17  ;;  %v6102_v17 = vld [vmem:[#allocation6_spill] sm:$0xff] }
 0x4fb   :  { %v3064_v47 = vadd.f32 %v5689_v29, %v3028_v44 }
 0x4fc   :  { %v2401_v34 = vpop.f32.mrf.mxu2 }
 0x4fd   :  { %v3096_v25 = vmax.f32 %v3064_v47, 0.0  ;;  %v2499_v24 = vmax.f32 %v2401_v34, 0.0 }
 0x4fe   :  { %v2964_v20 = vpop.f32.mrf.mxu1 }
 0x4ff   :  { %3128 = vst [vmem:[%s5877_s4 + $0x48] sm:$0xff] %v3096_v25  ;;  %v2553_v15 = vpack.c.bf16 %v2499_v24, %v2496_v32  ;;  %v2965_v18 = vadd.f32 %v2964_v20, %v2876_v50  ;;  %v2803_v59 = vpop.f32.mrf.mxu3  ;;  %v2886_v50 = vadd.f32 %v2885_v48, %v2796_v14  ;;  %v2895_v35 = vpop.f32.mrf.mxu0 }
 0x501   :  { %v3029_v6 = vadd.f32 %v2965_v18, %v6099_v3  ;;  %3003 = vmatmul.bf16.gmra.mxu1 %v2553_v15  ;;  %v6103_v3 = vld [vmem:[#allocation56_spill] sm:$0xff] }
 0x503   :  { %v3065_v56 = vadd.f32 %v5689_v29, %v3029_v6 }
 0x504   :  { %v2404_v28 = vpop.f32.mrf.mxu2 }
 0x505   :  { %v3097_v22 = vmax.f32 %v3065_v56, 0.0  ;;  %v2502_v36 = vmax.f32 %v2404_v28, 0.0  ;;  %v2888_v28 = vadd.f32 %v2887_v13, %v2798_v51 }
 0x506   :  { %v2966_v40 = vpop.f32.mrf.mxu1 }
 0x507   :  { %3129 = vst [vmem:[%s5877_s4 + $0x50] sm:$0xff] %v3097_v22  ;;  %v2967_v54 = vadd.f32 %v2966_v40, %v2878_v43  ;;  %v2806_v18 = vpop.f32.mrf.mxu3  ;;  %v2897_v22 = vpop.f32.mrf.mxu0 }
 0x509   :  { %v3030_v55 = vadd.f32 %v2967_v54, %v6100_v60 }
 0x50b   :  { %v3066_v8 = vadd.f32 %v5689_v29, %v3030_v55  ;;  %v2891_v55 = vadd.f32 %v2890_v39, %v2801_v9 }
 0x50c   :  { %v2407_v2 = vpop.f32.mrf.mxu2 }
 0x50d   :  { %v3098_v49 = vmax.f32 %v3066_v8, 0.0  ;;  %v2505_v31 = vmax.f32 %v2407_v2, 0.0 }
 0x50e   :  { %v2969_v5 = vpop.f32.mrf.mxu1 }
 0x50f   :  { %3130 = vst [vmem:[%s5877_s4 + $0x58] sm:$0xff] %v3098_v49  ;;  %v2556_v61 = vpack.c.bf16 %v2505_v31, %v2502_v36  ;;  %v2970_v23 = vadd.f32 %v2969_v5, %v2881_v7  ;;  %v2808_v54 = vpop.f32.mrf.mxu3  ;;  %v2900_v7 = vpop.f32.mrf.mxu0  ;;  %v2893_v31 = vadd.f32 %v2892_v12, %v2803_v59 }
 0x511   :  { %v3031_v33 = vadd.f32 %v2970_v23, %v6101_v62  ;;  %3008 = vmatmul.bf16.gmra.mxu1 %v2556_v61  ;;  %v2896_v23 = vadd.f32 %v2895_v35, %v2806_v18 }
 0x513   :  { %v3067_v27 = vadd.f32 %v5689_v29, %v3031_v33 }
 0x514   :  { %v2410_v1 = vpop.f32.mrf.mxu2 }
 0x515   :  { %v3099_v42 = vmax.f32 %v3067_v27, 0.0  ;;  %v2508_v32 = vmax.f32 %v2410_v1, 0.0 }
 0x516   :  { %v2971_v52 = vpop.f32.mrf.mxu1 }
 0x517   :  { %3131 = vst [vmem:[%s5877_s4 + $0x60] sm:$0xff] %v3099_v42  ;;  %v2972_v57 = vadd.f32 %v2971_v52, %v2883_v53  ;;  %v2811_v49 = vpop.f32.mrf.mxu3  ;;  %v2902_v62 = vpop.f32.mrf.mxu0  ;;  %v2898_v42 = vadd.f32 %v2897_v22, %v2808_v54 }
 0x519   :  { %v3032_v44 = vadd.f32 %v2972_v57, %v6102_v17 }
 0x51b   :  { %v3068_v47 = vadd.f32 %v5689_v29, %v3032_v44 }
 0x51c   :  { %v2413_v34 = vpop.f32.mrf.mxu2 }
 0x51d   :  { %v3100_v25 = vmax.f32 %v3068_v47, 0.0  ;;  %v2511_v24 = vmax.f32 %v2413_v34, 0.0  ;;  %v2901_v34 = vadd.f32 %v2900_v7, %v2811_v49 }
 0x51e   :  { %v2974_v20 = vpop.f32.mrf.mxu1 }
 0x51f   :  { %3132 = vst [vmem:[%s5877_s4 + $0x68] sm:$0xff] %v3100_v25  ;;  %v2559_v26 = vpack.c.bf16 %v2511_v24, %v2508_v32  ;;  %v2975_v15 = vadd.f32 %v2974_v20, %v2886_v50 }
 0x521   :  { %v3033_v6 = vadd.f32 %v2975_v15, %v6103_v3  ;;  %3013 = vmatmul.bf16.gmra.mxu1 %v2559_v26 }
 0x523   :  { %v3069_v56 = vadd.f32 %v5689_v29, %v3033_v6 }
 0x525   :  { %v3101_v43 = vmax.f32 %v3069_v56, 0.0 }
 0x526   :  { %v2976_v48 = vpop.f32.mrf.mxu1 }
 0x527   :  { %3133 = vst [vmem:[%s5877_s4 + $0x70] sm:$0xff] %v3101_v43  ;;  %v2977_v14 = vadd.f32 %v2976_v48, %v2888_v28 }
 0x529   :  { %v3034_v40 = vadd.f32 %v2977_v14, %v5488_v11 }
 0x52b   :  { %v3070_v60 = vadd.f32 %v5689_v29, %v3034_v40 }
 0x52d   :  { %v3102_v8 = vmax.f32 %v3070_v60, 0.0 }
 0x52e   :  { %v2979_v2 = vpop.f32.mrf.mxu1 }
 0x52f   :  { %3134 = vst [vmem:[%s5877_s4 + $0x78] sm:$0xff] %v3102_v8  ;;  %v2980_v13 = vadd.f32 %v2979_v2, %v2891_v55 }
 0x531   :  { %v3035_v51 = vadd.f32 %v2980_v13, %v5496_v30  ;;  %v2813_v30 = vpop.f32.mrf.mxu3 }
 0x532   :  { %v2903_v26 = vadd.f32 %v2902_v62, %v2813_v30 }
 0x533   :  { %v3071_v36 = vadd.f32 %v5689_v29, %v3035_v51 }
 0x535   :  { %v3103_v5 = vmax.f32 %v3071_v36, 0.0 }
 0x536   :  { %v2981_v11 = vpop.f32.mrf.mxu1 }
 0x537   :  { %3135 = vst [vmem:[%s5877_s4 + $0x80] sm:$0xff] %v3103_v5  ;;  %v2982_v39 = vadd.f32 %v2981_v11, %v2893_v31 }
 0x539   :  { %v3036_v9 = vadd.f32 %v2982_v39, %v5506_v45  ;;  %v2905_v45 = vpop.f32.mrf.mxu0  ;;  %v2816_v17 = vpop.f32.mrf.mxu3 }
 0x53a   :  { %v2906_v43 = vadd.f32 %v2905_v45, %v2816_v17 }
 0x53b   :  { %v3072_v61 = vadd.f32 %v5689_v29, %v3036_v9 }
 0x53d   :  { %v3104_v33 = vmax.f32 %v3072_v61, 0.0 }
 0x53e   :  { %v2984_v27 = vpop.f32.mrf.mxu1 }
 0x53f   :  { %3136 = vst [vmem:[%s5877_s4 + $0x88] sm:$0xff] %v3104_v33  ;;  %v2985_v1 = vadd.f32 %v2984_v27, %v2896_v23 }
 0x541   :  { %v3037_v53 = vadd.f32 %v2985_v1, %v5517_v37  ;;  %v2907_v25 = vpop.f32.mrf.mxu0  ;;  %v2818_v20 = vpop.f32.mrf.mxu3 }
 0x542   :  { %v2908_v54 = vadd.f32 %v2907_v25, %v2818_v20 }
 0x543   :  { %v3073_v12 = vadd.f32 %v5689_v29, %v3037_v53 }
 0x545   :  { %v3105_v59 = vmax.f32 %v3073_v12, 0.0 }
 0x546   :  { %v2986_v52 = vpop.f32.mrf.mxu1 }
 0x547   :  { %3137 = vst [vmem:[%s5877_s4 + $0x90] sm:$0xff] %v3105_v59  ;;  %v2987_v57 = vadd.f32 %v2986_v52, %v2898_v42  ;;  %v6104_v42 = vld [vmem:[#allocation10_spill] sm:$0xff] }
 0x549   :  { %v3038_v44 = vadd.f32 %v2987_v57, %v5527_v58  ;;  %v2910_v6 = vpop.f32.mrf.mxu0  ;;  %v2821_v28 = vpop.f32.mrf.mxu3 }
 0x54a   :  { %v2911_v7 = vadd.f32 %v2910_v6, %v2821_v28 }
 0x54b   :  { %v3074_v47 = vadd.f32 %v5689_v29, %v3038_v44 }
 0x54d   :  { %v3106_v50 = vmax.f32 %v3074_v47, 0.0 }
 0x54e   :  { %v2989_v32 = vpop.f32.mrf.mxu1 }
 0x54f   :  { %3138 = vst [vmem:[%s5877_s4 + $0x98] sm:$0xff] %v3106_v50  ;;  %v2990_v37 = vadd.f32 %v2989_v32, %v2901_v34 }
 0x551   :  { %v3039_v24 = vadd.f32 %v2990_v37, %v5535_v16  ;;  %v2912_v60 = vpop.f32.mrf.mxu0 }
 0x553   :  { %v3075_v35 = vadd.f32 %v5689_v29, %v3039_v24 }
 0x555   :  { %v3107_v15 = vmax.f32 %v3075_v35, 0.0 }
 0x556   :  { %v2991_v18 = vpop.f32.mrf.mxu1 }
 0x557   :  { %3139 = vst [vmem:[%s5877_s4 + $0xa0] sm:$0xff] %v3107_v15  ;;  %v2992_v58 = vadd.f32 %v2991_v18, %v2903_v26  ;;  %v6105_v26 = vld [vmem:[#allocation57_spill] sm:$0xff] }
 0x559   :  { %v3040_v3 = vadd.f32 %v2992_v58, %v5545_v0  ;;  %v2823_v0 = vpop.f32.mrf.mxu3 }
 0x55a   :  { %v2913_v9 = vadd.f32 %v2912_v60, %v2823_v0 }
 0x55b   :  { %v3076_v56 = vadd.f32 %v5689_v29, %v3040_v3 }
 0x55d   :  { %v3108_v48 = vmax.f32 %v3076_v56, 0.0 }
 0x55e   :  { %v2994_v16 = vpop.f32.mrf.mxu1 }
 0x55f   :  { %3140 = vst [vmem:[%s5877_s4 + $0xa8] sm:$0xff] %v3108_v48  ;;  %v2995_v14 = vadd.f32 %v2994_v16, %v2906_v43 }
 0x561   :  { %v3041_v22 = vadd.f32 %v2995_v14, %v5556_v19  ;;  %v2915_v19 = vpop.f32.mrf.mxu0  ;;  %v2826_v5 = vpop.f32.mrf.mxu3 }
 0x562   :  { %v2916_v1 = vadd.f32 %v2915_v19, %v2826_v5 }
 0x563   :  { %v3077_v40 = vadd.f32 %v5689_v29, %v3041_v22 }
 0x565   :  { %v3109_v55 = vmax.f32 %v3077_v40, 0.0 }
 0x566   :  { %v2996_v8 = vpop.f32.mrf.mxu1 }
 0x567   :  { %3141 = vst [vmem:[%s5877_s4 + $0xb0] sm:$0xff] %v3109_v55  ;;  %v2997_v2 = vadd.f32 %v2996_v8, %v2908_v54 }
 0x569   :  { %v3042_v13 = vadd.f32 %v2997_v2, %v5566_v63  ;;  %v2917_v62 = vpop.f32.mrf.mxu0  ;;  %v2828_v30 = vpop.f32.mrf.mxu3 }
 0x56a   :  { %v2918_v17 = vadd.f32 %v2917_v62, %v2828_v30 }
 0x56b   :  { %v3078_v51 = vadd.f32 %v5689_v29, %v3042_v13 }
 0x56d   :  { %v3110_v36 = vmax.f32 %v3078_v51, 0.0 }
 0x56e   :  { %v2999_v49 = vpop.f32.mrf.mxu1 }
 0x56f   :  { %3142 = vst [vmem:[%s5877_s4 + $0xb8] sm:$0xff] %v3110_v36  ;;  %v3000_v31 = vadd.f32 %v2999_v49, %v2911_v7 }
 0x571   :  { %v3043_v11 = vadd.f32 %v3000_v31, %v5574_v4  ;;  %v2920_v52 = vpop.f32.mrf.mxu0  ;;  %v2831_v57 = vpop.f32.mrf.mxu3 }
 0x572   :  { %v2921_v32 = vadd.f32 %v2920_v52, %v2831_v57 }
 0x573   :  { %v3079_v39 = vadd.f32 %v5689_v29, %v3043_v11 }
 0x575   :  { %v3111_v61 = vmax.f32 %v3079_v39, 0.0 }
 0x576   :  { %v3001_v23 = vpop.f32.mrf.mxu1 }
 0x577   :  { %3143 = vst [vmem:[%s5877_s4 + $0xc0] sm:$0xff] %v3111_v61  ;;  %v3002_v63 = vadd.f32 %v3001_v23, %v2913_v9 }
 0x579   :  { %v3044_v33 = vadd.f32 %v3002_v63, %v5584_v46  ;;  %v2922_v37 = vpop.f32.mrf.mxu0  ;;  %v2833_v24 = vpop.f32.mrf.mxu3 }
 0x57a   :  { %v2923_v58 = vadd.f32 %v2922_v37, %v2833_v24 }
 0x57b   :  { %v3080_v27 = vadd.f32 %v5689_v29, %v3044_v33 }
 0x57d   :  { %v3112_v53 = vmax.f32 %v3080_v27, 0.0 }
 0x57e   :  { %v3004_v12 = vpop.f32.mrf.mxu1 }
 0x57f   :  { %3144 = vst [vmem:[%s5877_s4 + $0xc8] sm:$0xff] %v3112_v53  ;;  %v3005_v4 = vadd.f32 %v3004_v12, %v2916_v1 }
 0x581   :  { %v3045_v59 = vadd.f32 %v3005_v4, %v6104_v42  ;;  %v2836_v56 = vpop.f32.mrf.mxu3  ;;  %v2925_v28 = vpop.f32.mrf.mxu0 }
 0x582   :  { %v2926_v16 = vadd.f32 %v2925_v28, %v2836_v56 }
 0x583   :  { %v3081_v45 = vadd.f32 %v5689_v29, %v3045_v59 }
 0x585   :  { %v3113_v44 = vmax.f32 %v3081_v45, 0.0 }
 0x586   :  { %v3006_v46 = vpop.f32.mrf.mxu1 }
 0x587   :  { %3145 = vst [vmem:[%s5877_s4 + $0xd0] sm:$0xff] %v3113_v44  ;;  %v3007_v47 = vadd.f32 %v3006_v46, %v2918_v17 }
 0x589   :  { %v3046_v34 = vadd.f32 %v3007_v47, %v5605_v38  ;;  %v2838_v60 = vpop.f32.mrf.mxu3  ;;  %v2927_v55 = vpop.f32.mrf.mxu0 }
 0x58a   :  { %v2928_v8 = vadd.f32 %v2927_v55, %v2838_v60 }
 0x58b   :  { %v3082_v50 = vadd.f32 %v5689_v29, %v3046_v34 }
 0x58d   :  { %v3114_v25 = vmax.f32 %v3082_v50, 0.0 }
 0x58e   :  { %v3009_v20 = vpop.f32.mrf.mxu1 }
 0x58f   :  { %3146 = vst [vmem:[%s5877_s4 + $0xd8] sm:$0xff] %v3114_v25  ;;  %v3010_v35 = vadd.f32 %v3009_v20, %v2921_v32 }
 0x591   :  { %v3047_v15 = vadd.f32 %v3010_v35, %v6105_v26 }
 0x593   :  { %v3083_v18 = vadd.f32 %v5689_v29, %v3047_v15 }
 0x595   :  { %v3115_v3 = vmax.f32 %v3083_v18, 0.0 }
 0x596   :  { %v3011_v6 = vpop.f32.mrf.mxu1 }
 0x597   :  { %3147 = vst [vmem:[%s5877_s4 + $0xe0] sm:$0xff] %v3115_v3  ;;  %v3012_v38 = vadd.f32 %v3011_v6, %v2923_v58 }
 0x599   :  { %v3048_v43 = vadd.f32 %v3012_v38, %v5621_v10 }
 0x59b   :  { %v3084_v48 = vadd.f32 %v5689_v29, %v3048_v43 }
 0x59d   :  { %v3116_v14 = vmax.f32 %v3084_v48, 0.0 }
 0x59e   :  { %v3014_v22 = vpop.f32.mrf.mxu1 }
 0x59f   :  { %3148 = vst [vmem:[%s5877_s4 + $0xe8] sm:$0xff] %v3116_v14  ;;  %v3015_v40 = vadd.f32 %v3014_v22, %v2926_v16 }
 0x5a1   :  { %v3049_v54 = vadd.f32 %v3015_v40, %v5628_v41 }
 0x5a3   :  { %v3085_v0 = vadd.f32 %v5689_v29, %v3049_v54 }
 0x5a5   :  { %v3117_v2 = vmax.f32 %v3085_v0, 0.0 }
 0x5a6   :  { %v3016_v13 = vpop.f32.mrf.mxu1 }
 0x5a7   :  { %3149 = vst [vmem:[%s5877_s4 + $0xf0] sm:$0xff] %v3117_v2  ;;  %v3017_v10 = vadd.f32 %v3016_v13, %v2928_v8 }
 0x5a9   :  { %v3050_v51 = vadd.f32 %v3017_v10, %v5637_v21 }
 0x5ab   :  { %v3086_v7 = vadd.f32 %v5689_v29, %v3050_v51 }
 0x5ad   :  { %v3118_v36 = vmax.f32 %v3086_v7, 0.0 }
 0x5af   :  { %3150 = vst [vmem:[%s5877_s4 + $0xf8] sm:$0xff] %v3118_v36 }

</bundles_post_ra>
